<compile_context>
chip_gen: v5e
topology: v5e:2x2
jax: 0.10.0
libtpu: 0.0.40
codegen_flags: <defaults>
</compile_context>

<pallas_src>
import functools

import jax
import jax.numpy as jnp
from jax import lax
from jax.experimental import pallas as pl
from jax.experimental.pallas import tpu as pltpu

EPS = 1e-5
LANE = 128       # lane width: channel dims padded to multiples of this
SUBLANE = 8
_TM_CAP = 8192   # diminishing returns beyond this many rows per tile


def _round_up(x, m):
    return (x + m - 1) // m * m


def _pad2d(a, rows, cols):
    r, c = a.shape
    if r == rows and c == cols:
        return a
    return jnp.pad(a, ((0, rows - r), (0, cols - c)))


# ----------------------------------------------------------------------------
# Per-generation VMEM budget (v5e/v6e: 128 MiB physical, v7x: 64 MiB per TC).
# ----------------------------------------------------------------------------
def _vmem_budget():
    cap = 64 << 20
    try:
        info = pltpu.get_tpu_info()
        cap = int(getattr(info, "vmem_capacity_bytes", cap))
    except Exception:
        pass
    target = max(12 << 20, min(40 << 20, cap // 3))     # working-set target
    limit = int(min(int(cap * 0.9), target * 2 + (16 << 20)))
    return int(target), limit


_VMEM_TARGET, _VMEM_LIMIT = _vmem_budget()


def _conv_row_budget(kp, cp, out_bytes):
    """Rows/tile for the matmul passes: bf16 x-tile + out-tile, double
    buffered, plus a resident (double-buffered) bf16 weight panel."""
    weight = 2 * kp * cp * 2
    per_row = 2 * (kp * 2 + cp * out_bytes) + cp * 4      # + f32 temps
    avail = _VMEM_TARGET - weight - (2 << 20)
    return max(SUBLANE, avail // per_row)


def _norm_row_budget(cp, in_bytes, out_bytes, res_bytes):
    per_row = 2 * cp * (in_bytes + out_bytes + res_bytes) + 2 * cp * 4
    avail = _VMEM_TARGET - (2 << 20)
    return max(SUBLANE, avail // per_row)


def _choose_tm(m, max_rows):
    """Padded row count (multiple of 8) and the largest tile that divides it,
    fits the budget, and leaves >= 2 grid steps (so v7x's two TCs share)."""
    mp = _round_up(m, SUBLANE)
    cap = min(int(max_rows), _TM_CAP, mp)
    if mp >= 2 * SUBLANE:
        cap = min(cap, mp // 2)
    cap = max(SUBLANE, (cap // SUBLANE) * SUBLANE)
    tm = SUBLANE
    for t in range(cap, SUBLANE - 1, -SUBLANE):
        if mp % t == 0:
            tm = t
            break
    return mp, tm


# ----------------------------------------------------------------------------
# BN statistics helpers (packed partials: row 0 = sum, row 1 = sum of squares)
# ----------------------------------------------------------------------------
def _pack_stats(y, stats_ref):
    csum = jnp.sum(y, axis=0, keepdims=True)
    cssq = jnp.sum(y * y, axis=0, keepdims=True)
    rows = lax.broadcasted_iota(jnp.int32, stats_ref.shape, 0)
    stats_ref[...] = jnp.where(rows == 0, csum, jnp.where(rows == 1, cssq, 0.0))


def _combine_stats(stats, ntiles, m_valid, gamma, beta, cp):
    """Combine per-tile partials and fold gamma/beta into scale/shift.

    NOTE: single-pass E[y^2]-E[y]^2 variance (f32); can understate var when
    |mean| >> std.  Fine at the tested tolerance; switch to a shifted/centered
    second pass if tolerances tighten.
    """
    st = stats.reshape(ntiles, SUBLANE, cp)
    tot_sum = st[:, 0, :].sum(axis=0)
    tot_ssq = st[:, 1, :].sum(axis=0)
    mean = tot_sum / m_valid
    var = jnp.maximum(tot_ssq / m_valid - mean * mean, 0.0)
    gp = jnp.pad(gamma.astype(jnp.float32), (0, cp - gamma.shape[0]))
    bp = jnp.pad(beta.astype(jnp.float32), (0, cp - beta.shape[0]))
    scale = gp * lax.rsqrt(var + EPS)
    shift = bp - mean * scale
    return scale, shift


# ----------------------------------------------------------------------------
# Kernel 1: matmul (1x1 conv) + packed BN statistics, optionally fusing the
#           previous layer's BN (folded scale/shift) + ReLU on the input rows.
# ----------------------------------------------------------------------------
def _matmul_bn_stats_kernel(*refs, pre_norm, row_mask, m_valid, tm):
    if pre_norm:
        x_ref, w_ref, ps_ref, pb_ref, y_ref, stats_ref = refs
    else:
        x_ref, w_ref, y_ref, stats_ref = refs

    x = x_ref[...]
    if pre_norm:
        x = jnp.maximum(x.astype(jnp.float32) * ps_ref[...] + pb_ref[...], 0.0)
        if row_mask:
            # zero padded rows so they don't pollute this layer's statistics
            row = pl.program_id(0) * tm + lax.broadcasted_iota(
                jnp.int32, x.shape, 0)
            x = jnp.where(row < m_valid, x, 0.0)
        x = x.astype(jnp.bfloat16)

    y = jnp.dot(x, w_ref[...], preferred_element_type=jnp.float32)
    y_ref[...] = y.astype(y_ref.dtype)
    _pack_stats(y, stats_ref)


def conv_bn(x2d, w, gamma, beta, *, pre=None, m_valid=None,
            y_dtype=jnp.bfloat16):
    """1x1-conv-as-matmul fused with BatchNorm statistics (M-tiled pipeline).

    Returns (y, scale, shift): y is the (Mp, Cp) pre-BN conv output and
    BatchNorm(conv(x)) == y * scale + shift (per padded channel).
    """
    M, K = x2d.shape
    m_valid = M if m_valid is None else m_valid
    C = w.shape[1]
    Kp, Cp = _round_up(K, LANE), _round_up(C, LANE)
    Mp, tm = _choose_tm(M, _conv_row_budget(Kp, Cp, jnp.dtype(y_dtype).itemsize))
    ntiles = Mp // tm

    xp = _pad2d(x2d.astype(jnp.bfloat16), Mp, Kp)
    wp = _pad2d(w.astype(jnp.bfloat16), Kp, Cp)

    pre_norm = pre is not None
    row_mask = pre_norm and (Mp != m_valid)

    kernel = functools.partial(_matmul_bn_stats_kernel, pre_norm=pre_norm,
                               row_mask=row_mask, m_valid=m_valid, tm=tm)
    in_specs = [pl.BlockSpec((tm, Kp), lambda i: (i, 0)),
                pl.BlockSpec((Kp, Cp), lambda i: (0, 0))]
    args = [xp, wp]
    if pre_norm:
        ps, pb = pre
        ps = jnp.pad(ps.astype(jnp.float32), (0, Kp - ps.shape[0]))
        pb = jnp.pad(pb.astype(jnp.float32), (0, Kp - pb.shape[0]))
        in_specs += [pl.BlockSpec((1, Kp), lambda i: (0, 0)),
                     pl.BlockSpec((1, Kp), lambda i: (0, 0))]
        args += [ps.reshape(1, Kp), pb.reshape(1, Kp)]

    # TODO(synk): on v5e with very large weight panels (Cmid >= 256) add an
    # "arbitrary" K grid axis + f32 VMEM accumulator so tm stays large.
    y, stats = pl.pallas_call(
        kernel,
        out_shape=(jax.ShapeDtypeStruct((Mp, Cp), y_dtype),
                   jax.ShapeDtypeStruct((ntiles * SUBLANE, Cp), jnp.float32)),
        grid=(ntiles,),
        in_specs=in_specs,
        out_specs=(pl.BlockSpec((tm, Cp), lambda i: (i, 0)),
                   pl.BlockSpec((SUBLANE, Cp), lambda i: (i, 0))),
        compiler_params=pltpu.CompilerParams(
            dimension_semantics=("parallel",),
            vmem_limit_bytes=_VMEM_LIMIT),
    )(*args)

    scale, shift = _combine_stats(stats, ntiles, m_valid, gamma, beta, Cp)
    return y, scale, shift


# ----------------------------------------------------------------------------
# Kernel 2: 3x3 stride-s conv (pad=1) via 9 shifted-window matmuls over a
#           per-image resident slab (no im2col), + packed BN statistics.
# ----------------------------------------------------------------------------
def _conv3x3_bn_kernel(x_ref, w_ref, y_ref, stats_ref, *, stride, Ho, Wo):
    s = stride
    planes = [x_ref[i] for i in range(s * s)]      # each (Hq, Wq, Cp) bf16
    acc = None
    for dh in range(3):
        for dw in range(3):
            win = planes[(dh % s) * s + (dw % s)][dh // s:dh // s + Ho,
                                                  dw // s:dw // s + Wo, :]
            part = jnp.dot(win.reshape(Ho * Wo, win.shape[-1]),
                           w_ref[dh * 3 + dw],
                           preferred_element_type=jnp.float32)
            acc = part if acc is None else acc + part
    y_ref[0] = acc.astype(y_ref.dtype)
    _pack_stats(acc, stats_ref)


def conv2_bn(a1_nhwc, w2_hwio, gamma, beta, stride, y_dtype=jnp.bfloat16):
    """a1_nhwc: (N, H, W, Cp) post BN1+ReLU activations, channels lane-padded.

    Returns (y2, scale, shift): y2 is (N, Ho*Wo, Cp) pre-BN conv2 output.
    """
    N, H, W, Cp = a1_nhwc.shape
    Cmid = w2_hwio.shape[-1]
    assert Cp == _round_up(Cmid, LANE)
    s = stride
    Ho = (H - 1) // s + 1
    Wo = (W - 1) // s + 1
    Hp, Wp = H + 2, W + 2
    Hq, Wq = -(-Hp // s), -(-Wp // s)

    # Spatial zero-pad (conv border + fill to stride multiples), then split
    # into the s*s stride phases so every tap window is a contiguous slice.
    a1p = jnp.pad(a1_nhwc, ((0, 0), (1, Hq * s - Hp + 1),
                            (1, Wq * s - Wp + 1), (0, 0)))
    phases = a1p.reshape(N, Hq, s, Wq, s, Cp).transpose(0, 2, 4, 1, 3, 5)
    phases = phases.reshape(N * s * s, Hq, Wq, Cp)

    w = w2_hwio.reshape(9, Cmid, Cmid).astype(jnp.bfloat16)
    w = jnp.pad(w, ((0, 0), (0, Cp - Cmid), (0, Cp - Cmid)))

    kernel = functools.partial(_conv3x3_bn_kernel, stride=s, Ho=Ho, Wo=Wo)
    # TODO(synk): for very large images or N==1, row-tile each image with a
    # halo DMA (manual make_async_copy) instead of a whole-plane slab.
    y2, stats = pl.pallas_call(
        kernel,
        out_shape=(jax.ShapeDtypeStruct((N, Ho * Wo, Cp), y_dtype),
                   jax.ShapeDtypeStruct((N * SUBLANE, Cp), jnp.float32)),
        grid=(N,),
        in_specs=[pl.BlockSpec((s * s, Hq, Wq, Cp), lambda n: (n, 0, 0, 0)),
                  pl.BlockSpec((9, Cp, Cp), lambda n: (0, 0, 0))],
        out_specs=(pl.BlockSpec((1, Ho * Wo, Cp), lambda n: (n, 0, 0)),
                   pl.BlockSpec((SUBLANE, Cp), lambda n: (n, 0))),
        compiler_params=pltpu.CompilerParams(
            dimension_semantics=("parallel",),
            vmem_limit_bytes=_VMEM_LIMIT),
    )(phases, w)

    scale, shift = _combine_stats(stats, N, N * Ho * Wo, gamma, beta, Cp)
    return y2, scale, shift


# ----------------------------------------------------------------------------
# Kernel 3: tiled normalize (folded scale/shift) + optional residual-BN add
#           + optional ReLU.
# ----------------------------------------------------------------------------
def _norm_act_kernel(*refs, has_res, relu):
    if has_res:
        y_ref, s_ref, b_ref, r_ref, rs_ref, rb_ref, o_ref = refs
    else:
        y_ref, s_ref, b_ref, o_ref = refs
    out = y_ref[...].astype(jnp.float32) * s_ref[...] + b_ref[...]
    if has_res:
        out = out + r_ref[...].astype(jnp.float32) * rs_ref[...] + rb_ref[...]
    if relu:
        out = jnp.maximum(out, 0.0)
    o_ref[...] = out.astype(o_ref.dtype)


def norm_act(y, scale, shift, *, relu=True, res=None, res_scale=None,
             res_shift=None, out_dtype=jnp.float32):
    Mp, Cp = y.shape
    has_res = res is not None
    in_b = jnp.dtype(y.dtype).itemsize
    out_b = jnp.dtype(out_dtype).itemsize
    res_b = jnp.dtype(res.dtype).itemsize if has_res else 0
    _, tm = _choose_tm(Mp, _norm_row_budget(Cp, in_b, out_b, res_b))
    assert Mp % tm == 0
    ntiles = Mp // tm

    kernel = functools.partial(_norm_act_kernel, has_res=has_res, relu=relu)
    row_spec = lambda: pl.BlockSpec((tm, Cp), lambda i: (i, 0))
    vec_spec = lambda: pl.BlockSpec((1, Cp), lambda i: (0, 0))
    in_specs = [row_spec(), vec_spec(), vec_spec()]
    args = [y, scale.reshape(1, Cp), shift.reshape(1, Cp)]
    if has_res:
        in_specs += [row_spec(), vec_spec(), vec_spec()]
        args += [_pad2d(res, Mp, Cp), res_scale.reshape(1, Cp),
                 res_shift.reshape(1, Cp)]

    return pl.pallas_call(
        kernel,
        out_shape=jax.ShapeDtypeStruct((Mp, Cp), out_dtype),
        grid=(ntiles,),
        in_specs=in_specs,
        out_specs=row_spec(),
        compiler_params=pltpu.CompilerParams(
            dimension_semantics=("parallel",),
            vmem_limit_bytes=_VMEM_LIMIT),
    )(*args)


# ----------------------------------------------------------------------------
# Bottleneck forward (Pallas-backed)
# ----------------------------------------------------------------------------
def bottleneck_forward(x_nchw, p, stride):
    # NCHW -> NHWC in bf16 (no f32 upcast at entry; matmuls use bf16 anyway)
    x = jnp.transpose(x_nchw, (0, 2, 3, 1)).astype(jnp.bfloat16)
    N, H, W, Cin = x.shape
    Cmid = p["w1"].shape[-1]
    Cout = p["w3"].shape[-1]
    Ho = (H - 1) // stride + 1
    Wo = (W - 1) // stride + 1
    M1, M2 = N * H * W, N * Ho * Wo
    Cp_mid = _round_up(Cmid, LANE)
    Cp_out = _round_up(Cout, LANE)

    # ---- conv1 (1x1) + BN1 statistics --------------------------------------
    # TODO(synk): when stride==1 and a downsample conv exists, fuse conv1 and
    # the 1x1 downsample into one matmul by concatenating output channels.
    y1, s1, b1 = conv_bn(x.reshape(M1, Cin), p["w1"].reshape(Cin, Cmid),
                         p["g1"], p["b1"], y_dtype=jnp.bfloat16)
    # BN1+ReLU needs its own pass: conv2's spatial zero-padding is applied
    # *after* this nonlinearity, so it cannot be folded into conv2's matmuls.
    a1 = norm_act(y1, s1, b1, relu=True, out_dtype=jnp.bfloat16)
    a1 = a1[:M1].reshape(N, H, W, Cp_mid)

    # ---- conv2 (3x3, stride, pad=1) + BN2 statistics (no im2col) -----------
    y2, s2, b2 = conv2_bn(a1, p["w2"], p["g2"], p["b2"], stride,
                          y_dtype=jnp.bfloat16)
    y2 = y2.reshape(M2, Cp_mid)

    # ---- conv3 (1x1) + BN3 statistics, BN2+ReLU fused into the matmul ------
    y3, s3, b3 = conv_bn(y2, p["w3"].reshape(Cmid, Cout), p["g3"], p["b3"],
                         pre=(s2, b2), m_valid=M2, y_dtype=jnp.bfloat16)

    # ---- identity / downsample branch ---------------------------------------
    if stride != 1 or Cin != Cout:
        xs = x[:, ::stride, ::stride, :].reshape(M2, Cin)
        res, rs, rb = conv_bn(xs, p["wd"].reshape(Cin, Cout),
                              p["gd"], p["bd"], y_dtype=jnp.bfloat16)
    else:
        res = x.reshape(M2, Cin)                       # bf16 identity
        rs = jnp.ones((Cp_out,), jnp.float32)
        rb = jnp.zeros((Cp_out,), jnp.float32)

    # ---- BN3 + residual-BN + add + ReLU fused in one tiled pass ------------
    out = norm_act(y3, s3, b3, relu=True, res=res,
                   res_scale=rs, res_shift=rb, out_dtype=jnp.float32)
    out = out[:M2, :Cout].reshape(N, Ho, Wo, Cout)
    # TODO(synk): keep NHWC between chained blocks; only the PyTorch NCHW
    # module boundary needs this transpose.
    return jnp.transpose(out, (0, 3, 1, 2))            # NHWC -> NCHW


# ----------------------------------------------------------------------------
# Reference (lax.conv with the same bf16-operand / f32-accumulate precision)
# ----------------------------------------------------------------------------
def bottleneck_reference(x_nchw, p, stride):
    dn = ("NHWC", "HWIO", "NHWC")
    x = jnp.transpose(x_nchw, (0, 2, 3, 1)).astype(jnp.float32)

    def conv(a, w, s, pad):
        return lax.conv_general_dilated(
            a.astype(jnp.bfloat16), w.astype(jnp.bfloat16), (s, s), pad,
            dimension_numbers=dn, preferred_element_type=jnp.float32)

    def bn(y, g, b):
        mean = jnp.mean(y, axis=(0, 1, 2), keepdims=True)
        var = jnp.mean((y - mean) ** 2, axis=(0, 1, 2), keepdims=True)
        return (y - mean) * lax.rsqrt(var + EPS) * g + b

    o = jax.nn.relu(bn(conv(x, p["w1"], 1, "VALID"), p["g1"], p["b1"]))
    o = jax.nn.relu(bn(conv(o, p["w2"], stride, [(1, 1), (1, 1)]),
                       p["g2"], p["b2"]))
    o = bn(conv(o, p["w3"], 1, "VALID"), p["g3"], p["b3"])
    if stride != 1 or x.shape[-1] != p["w3"].shape[-1]:
        ident = bn(conv(x, p["wd"], stride, "VALID"), p["gd"], p["bd"])
    else:
        ident = x
    return jnp.transpose(jax.nn.relu(o + ident), (0, 3, 1, 2))


if __name__ == "__main__":
    # in_channels=8, out_channels=16, stride=2 => mid_channels=4, downsample on
    N, Cin, H, W = 2, 8, 16, 16
    Cout, stride = 16, 2
    Cmid = Cout // 4

    key = jax.random.PRNGKey(0)
    ks = jax.random.split(key, 13)
    x = jax.random.normal(ks[0], (N, Cin, H, W), jnp.float32)

    params = {
        # conv weights stored HWIO
        "w1": 0.3 * jax.random.normal(ks[1], (1, 1, Cin, Cmid), jnp.float32),
        "w2": 0.2 * jax.random.normal(ks[2], (3, 3, Cmid, Cmid), jnp.float32),
        "w3": 0.3 * jax.random.normal(ks[3], (1, 1, Cmid, Cout), jnp.float32),
        "wd": 0.3 * jax.random.normal(ks[4], (1, 1, Cin, Cout), jnp.float32),
        # BN affine params
        "g1": 1.0 + 0.1 * jax.random.normal(ks[5], (Cmid,), jnp.float32),
        "b1": 0.1 * jax.random.normal(ks[6], (Cmid,), jnp.float32),
        "g2": 1.0 + 0.1 * jax.random.normal(ks[7], (Cmid,), jnp.float32),
        "b2": 0.1 * jax.random.normal(ks[8], (Cmid,), jnp.float32),
        "g3": 1.0 + 0.1 * jax.random.normal(ks[9], (Cout,), jnp.float32),
        "b3": 0.1 * jax.random.normal(ks[10], (Cout,), jnp.float32),
        "gd": 1.0 + 0.1 * jax.random.normal(ks[11], (Cout,), jnp.float32),
        "bd": 0.1 * jax.random.normal(ks[12], (Cout,), jnp.float32),
    }

    fwd = jax.jit(bottleneck_forward, static_argnums=2)
    out = jax.block_until_ready(fwd(x, params, stride))

    ref = jax.block_until_ready(bottleneck_reference(x, params, stride))

    assert out.shape == (N, Cout, H // stride, W // stride), out.shape
    # bf16 matmul operands and bf16-stored intermediates (f32 accumulate /
    # f32 BatchNorm statistics) => loosened tolerance.
    assert jnp.allclose(out, ref, atol=5e-2, rtol=5e-2), float(
        jnp.max(jnp.abs(out - ref)))

    print("KERNEL_OK")
</pallas_src>

<mosaic_0001>
module attributes {stable_mosaic.version = 11 : i64} {
  func.func @_matmul_bn_stats_kernel(%arg0: i32, %arg1: memref<256x128xbf16, #tpu.memory_space<vmem>>, %arg2: memref<128x128xbf16, #tpu.memory_space<vmem>>, %arg3: memref<256x128xbf16, #tpu.memory_space<vmem>>, %arg4: memref<8x128xf32, #tpu.memory_space<vmem>>) attributes {dimension_semantics = [#tpu.dimension_semantics<parallel>], iteration_bounds = array<i64: 2>, scalar_prefetch = 0 : i64, scratch_operands = 0 : i64, tpu.core_type = #tpu.core_type<tc>, window_params = [{transform_indices = @transform_0, window_bounds = array<i64: 256, 128>}, {pipeline_mode = #tpu.pipeline_mode<synchronous>, transform_indices = @transform_1, window_bounds = array<i64: 128, 128>}, {transform_indices = @transform_2, window_bounds = array<i64: 256, 128>}, {transform_indices = @transform_3, window_bounds = array<i64: 8, 128>}]} {
    %c0 = arith.constant 0 : index
    %c0_0 = arith.constant 0 : index
    %0 = vector.load %arg1[%c0, %c0_0] : memref<256x128xbf16, #tpu.memory_space<vmem>>, vector<256x128xbf16>
    %c0_1 = arith.constant 0 : index
    %c0_2 = arith.constant 0 : index
    %1 = vector.load %arg2[%c0_1, %c0_2] : memref<128x128xbf16, #tpu.memory_space<vmem>>, vector<128x128xbf16>
    %cst = arith.constant dense<0.000000e+00> : vector<256x128xf32>
    %2 = tpu.matmul %0, %1, %cst {dimension_numbers = #tpu.dot_dimension_numbers<[1], [0], [0], [1], [0, 0, 1, 1], [], []>} : vector<256x128xbf16>, vector<128x128xbf16>, vector<256x128xf32> -> vector<256x128xf32>
    %3 = arith.truncf %2 : vector<256x128xf32> to vector<256x128xbf16>
    %c0_3 = arith.constant 0 : index
    %c0_4 = arith.constant 0 : index
    %4 = vector.load %arg3[%c0_3, %c0_4] : memref<256x128xbf16, #tpu.memory_space<vmem>>, vector<256x128xbf16>
    tpu.vector_store %arg3[%c0_3, %c0_4], %3 {strides = array<i32>} : memref<256x128xbf16, #tpu.memory_space<vmem>>, vector<256x128xbf16>,
    %cst_5 = arith.constant dense<0.000000e+00> : vector<128xf32>
    %5 = vector.multi_reduction <add>, %2, %cst_5 [0] : vector<256x128xf32> to vector<128xf32>
    %6 = vector.shape_cast %5 : vector<128xf32> to vector<1x128xf32>
    %7 = arith.mulf %2, %2 : vector<256x128xf32>
    %cst_6 = arith.constant dense<0.000000e+00> : vector<128xf32>
    %8 = vector.multi_reduction <add>, %7, %cst_6 [0] : vector<256x128xf32> to vector<128xf32>
    %9 = vector.shape_cast %8 : vector<128xf32> to vector<1x128xf32>
    %10 = tpu.iota {dimensions = array<i32: 0>} : vector<8x128xi32>
    %c0_i32 = arith.constant 0 : i32
    %11 = vector.broadcast %c0_i32 : i32 to vector<8x128xi32>
    %12 = arith.cmpi eq, %10, %11 : vector<8x128xi32>
    %c1_i32 = arith.constant 1 : i32
    %13 = vector.broadcast %c1_i32 : i32 to vector<8x128xi32>
    %14 = arith.cmpi eq, %10, %13 : vector<8x128xi32>
    %cst_7 = arith.constant 0.000000e+00 : f32
    %15 = vector.shape_cast %9 : vector<1x128xf32> to vector<1x128xf32>
    %16 = vector.broadcast %15 : vector<1x128xf32> to vector<8x128xf32>
    %17 = vector.broadcast %cst_7 : f32 to vector<8x128xf32>
    %18 = arith.select %14, %16, %17 : vector<8x128xi1>, vector<8x128xf32>
    %19 = vector.shape_cast %6 : vector<1x128xf32> to vector<1x128xf32>
    %20 = vector.broadcast %19 : vector<1x128xf32> to vector<8x128xf32>
    %21 = arith.select %12, %20, %18 : vector<8x128xi1>, vector<8x128xf32>
    %c0_8 = arith.constant 0 : index
    %c0_9 = arith.constant 0 : index
    %22 = vector.load %arg4[%c0_8, %c0_9] : memref<8x128xf32, #tpu.memory_space<vmem>>, vector<8x128xf32>
    tpu.vector_store %arg4[%c0_8, %c0_9], %21 {strides = array<i32>} : memref<8x128xf32, #tpu.memory_space<vmem>>, vector<8x128xf32>,
    return
  }
  func.func @transform_0(%arg0: i32) -> (i32, i32) {
    %c0_i32 = arith.constant 0 : i32
    %c0_i32_0 = arith.constant 0 : i32
    return %arg0, %c0_i32 : i32, i32
  }
  func.func @transform_1(%arg0: i32) -> (i32, i32) {
    %c0_i32 = arith.constant 0 : i32
    %c0_i32_0 = arith.constant 0 : i32
    %c0_i32_1 = arith.constant 0 : i32
    return %c0_i32, %c0_i32_0 : i32, i32
  }
  func.func @transform_2(%arg0: i32) -> (i32, i32) {
    %c0_i32 = arith.constant 0 : i32
    %c0_i32_0 = arith.constant 0 : i32
    return %arg0, %c0_i32 : i32, i32
  }
  func.func @transform_3(%arg0: i32) -> (i32, i32) {
    %c0_i32 = arith.constant 0 : i32
    %c0_i32_0 = arith.constant 0 : i32
    return %arg0, %c0_i32 : i32, i32
  }
}

module attributes {stable_mosaic.version = 11 : i64} {
  func.func @_norm_act_kernel(%arg0: i32, %arg1: memref<256x128xbf16, #tpu.memory_space<vmem>>, %arg2: memref<1x128xf32, #tpu.memory_space<vmem>>, %arg3: memref<1x128xf32, #tpu.memory_space<vmem>>, %arg4: memref<256x128xbf16, #tpu.memory_space<vmem>>) attributes {dimension_semantics = [#tpu.dimension_semantics<parallel>], iteration_bounds = array<i64: 2>, scalar_prefetch = 0 : i64, scratch_operands = 0 : i64, tpu.core_type = #tpu.core_type<tc>, window_params = [{transform_indices = @transform_0, window_bounds = array<i64: 256, 128>}, {pipeline_mode = #tpu.pipeline_mode<synchronous>, transform_indices = @transform_1, window_bounds = array<i64: 1, 128>}, {pipeline_mode = #tpu.pipeline_mode<synchronous>, transform_indices = @transform_2, window_bounds = array<i64: 1, 128>}, {transform_indices = @transform_3, window_bounds = array<i64: 256, 128>}]} {
    %c0 = arith.constant 0 : index
    %c0_0 = arith.constant 0 : index
    %0 = vector.load %arg1[%c0, %c0_0] : memref<256x128xbf16, #tpu.memory_space<vmem>>, vector<256x128xbf16>
    %1 = arith.extf %0 : vector<256x128xbf16> to vector<256x128xf32>
    %c0_1 = arith.constant 0 : index
    %c0_2 = arith.constant 0 : index
    %2 = vector.load %arg2[%c0_1, %c0_2] : memref<1x128xf32, #tpu.memory_space<vmem>>, vector<1x128xf32>
    %3 = vector.broadcast %2 : vector<1x128xf32> to vector<256x128xf32>
    %4 = arith.mulf %1, %3 : vector<256x128xf32>
    %c0_3 = arith.constant 0 : index
    %c0_4 = arith.constant 0 : index
    %5 = vector.load %arg3[%c0_3, %c0_4] : memref<1x128xf32, #tpu.memory_space<vmem>>, vector<1x128xf32>
    %6 = vector.broadcast %5 : vector<1x128xf32> to vector<256x128xf32>
    %7 = arith.addf %4, %6 : vector<256x128xf32>
    %cst = arith.constant 0.000000e+00 : f32
    %8 = vector.broadcast %cst : f32 to vector<256x128xf32>
    %9 = arith.maximumf %7, %8 : vector<256x128xf32>
    %10 = arith.truncf %9 : vector<256x128xf32> to vector<256x128xbf16>
    %c0_5 = arith.constant 0 : index
    %c0_6 = arith.constant 0 : index
    %11 = vector.load %arg4[%c0_5, %c0_6] : memref<256x128xbf16, #tpu.memory_space<vmem>>, vector<256x128xbf16>
    tpu.vector_store %arg4[%c0_5, %c0_6], %10 {strides = array<i32>} : memref<256x128xbf16, #tpu.memory_space<vmem>>, vector<256x128xbf16>,
    return
  }
  func.func @transform_0(%arg0: i32) -> (i32, i32) {
    %c0_i32 = arith.constant 0 : i32
    %c0_i32_0 = arith.constant 0 : i32
    return %arg0, %c0_i32 : i32, i32
  }
  func.func @transform_1(%arg0: i32) -> (i32, i32) {
    %c0_i32 = arith.constant 0 : i32
    %c0_i32_0 = arith.constant 0 : i32
    %c0_i32_1 = arith.constant 0 : i32
    return %c0_i32, %c0_i32_0 : i32, i32
  }
  func.func @transform_2(%arg0: i32) -> (i32, i32) {
    %c0_i32 = arith.constant 0 : i32
    %c0_i32_0 = arith.constant 0 : i32
    %c0_i32_1 = arith.constant 0 : i32
    return %c0_i32, %c0_i32_0 : i32, i32
  }
  func.func @transform_3(%arg0: i32) -> (i32, i32) {
    %c0_i32 = arith.constant 0 : i32
    %c0_i32_0 = arith.constant 0 : i32
    return %arg0, %c0_i32 : i32, i32
  }
}

module attributes {stable_mosaic.version = 11 : i64} {
  func.func @_conv3x3_bn_kernel(%arg0: i32, %arg1: memref<4x9x9x128xbf16, #tpu.memory_space<vmem>>, %arg2: memref<9x128x128xbf16, #tpu.memory_space<vmem>>, %arg3: memref<1x64x128xbf16, #tpu.memory_space<vmem>>, %arg4: memref<8x128xf32, #tpu.memory_space<vmem>>) attributes {dimension_semantics = [#tpu.dimension_semantics<parallel>], iteration_bounds = array<i64: 2>, scalar_prefetch = 0 : i64, scratch_operands = 0 : i64, tpu.core_type = #tpu.core_type<tc>, window_params = [{transform_indices = @transform_0, window_bounds = array<i64: 4, 9, 9, 128>}, {pipeline_mode = #tpu.pipeline_mode<synchronous>, transform_indices = @transform_1, window_bounds = array<i64: 9, 128, 128>}, {transform_indices = @transform_2, window_bounds = array<i64: 1, 64, 128>}, {transform_indices = @transform_3, window_bounds = array<i64: 8, 128>}]} {
    %c0 = arith.constant 0 : index
    %c0_0 = arith.constant 0 : index
    %c0_1 = arith.constant 0 : index
    %c0_2 = arith.constant 0 : index
    %0 = vector.load %arg1[%c0, %c0_0, %c0_1, %c0_2] : memref<4x9x9x128xbf16, #tpu.memory_space<vmem>>, vector<1x9x9x128xbf16>
    %1 = vector.shape_cast %0 : vector<1x9x9x128xbf16> to vector<9x9x128xbf16>
    %c1 = arith.constant 1 : index
    %c0_3 = arith.constant 0 : index
    %c0_4 = arith.constant 0 : index
    %c0_5 = arith.constant 0 : index
    %2 = vector.load %arg1[%c1, %c0_3, %c0_4, %c0_5] : memref<4x9x9x128xbf16, #tpu.memory_space<vmem>>, vector<1x9x9x128xbf16>
    %3 = vector.shape_cast %2 : vector<1x9x9x128xbf16> to vector<9x9x128xbf16>
    %c2 = arith.constant 2 : index
    %c0_6 = arith.constant 0 : index
    %c0_7 = arith.constant 0 : index
    %c0_8 = arith.constant 0 : index
    %4 = vector.load %arg1[%c2, %c0_6, %c0_7, %c0_8] : memref<4x9x9x128xbf16, #tpu.memory_space<vmem>>, vector<1x9x9x128xbf16>
    %5 = vector.shape_cast %4 : vector<1x9x9x128xbf16> to vector<9x9x128xbf16>
    %c3 = arith.constant 3 : index
    %c0_9 = arith.constant 0 : index
    %c0_10 = arith.constant 0 : index
    %c0_11 = arith.constant 0 : index
    %6 = vector.load %arg1[%c3, %c0_9, %c0_10, %c0_11] : memref<4x9x9x128xbf16, #tpu.memory_space<vmem>>, vector<1x9x9x128xbf16>
    %7 = vector.shape_cast %6 : vector<1x9x9x128xbf16> to vector<9x9x128xbf16>
    %8 = vector.extract_strided_slice %1 {offsets = [0, 0, 0], sizes = [8, 8, 128], strides = [1, 1, 1]} : vector<9x9x128xbf16> to vector<8x8x128xbf16>
    %9 = vector.shape_cast %8 : vector<8x8x128xbf16> to vector<64x128xbf16>
    %c0_12 = arith.constant 0 : index
    %c0_13 = arith.constant 0 : index
    %c0_14 = arith.constant 0 : index
    %10 = vector.load %arg2[%c0_12, %c0_13, %c0_14] : memref<9x128x128xbf16, #tpu.memory_space<vmem>>, vector<1x128x128xbf16>
    %11 = vector.shape_cast %10 : vector<1x128x128xbf16> to vector<128x128xbf16>
    %cst = arith.constant dense<0.000000e+00> : vector<64x128xf32>
    %12 = tpu.matmul %9, %11, %cst {dimension_numbers = #tpu.dot_dimension_numbers<[1], [0], [0], [1], [0, 0, 1, 1], [], []>} : vector<64x128xbf16>, vector<128x128xbf16>, vector<64x128xf32> -> vector<64x128xf32>
    %13 = vector.extract_strided_slice %3 {offsets = [0, 0, 0], sizes = [8, 8, 128], strides = [1, 1, 1]} : vector<9x9x128xbf16> to vector<8x8x128xbf16>
    %14 = vector.shape_cast %13 : vector<8x8x128xbf16> to vector<64x128xbf16>
    %c1_15 = arith.constant 1 : index
    %c0_16 = arith.constant 0 : index
    %c0_17 = arith.constant 0 : index
    %15 = vector.load %arg2[%c1_15, %c0_16, %c0_17] : memref<9x128x128xbf16, #tpu.memory_space<vmem>>, vector<1x128x128xbf16>
    %16 = vector.shape_cast %15 : vector<1x128x128xbf16> to vector<128x128xbf16>
    %cst_18 = arith.constant dense<0.000000e+00> : vector<64x128xf32>
    %17 = tpu.matmul %14, %16, %cst_18 {dimension_numbers = #tpu.dot_dimension_numbers<[1], [0], [0], [1], [0, 0, 1, 1], [], []>} : vector<64x128xbf16>, vector<128x128xbf16>, vector<64x128xf32> -> vector<64x128xf32>
    %18 = arith.addf %12, %17 : vector<64x128xf32>
    %19 = vector.extract_strided_slice %1 {offsets = [0, 1, 0], sizes = [8, 8, 128], strides = [1, 1, 1]} : vector<9x9x128xbf16> to vector<8x8x128xbf16>
    %20 = vector.shape_cast %19 : vector<8x8x128xbf16> to vector<64x128xbf16>
    %c2_19 = arith.constant 2 : index
    %c0_20 = arith.constant 0 : index
    %c0_21 = arith.constant 0 : index
    %21 = vector.load %arg2[%c2_19, %c0_20, %c0_21] : memref<9x128x128xbf16, #tpu.memory_space<vmem>>, vector<1x128x128xbf16>
    %22 = vector.shape_cast %21 : vector<1x128x128xbf16> to vector<128x128xbf16>
    %cst_22 = arith.constant dense<0.000000e+00> : vector<64x128xf32>
    %23 = tpu.matmul %20, %22, %cst_22 {dimension_numbers = #tpu.dot_dimension_numbers<[1], [0], [0], [1], [0, 0, 1, 1], [], []>} : vector<64x128xbf16>, vector<128x128xbf16>, vector<64x128xf32> -> vector<64x128xf32>
    %24 = arith.addf %18, %23 : vector<64x128xf32>
    %25 = vector.extract_strided_slice %5 {offsets = [0, 0, 0], sizes = [8, 8, 128], strides = [1, 1, 1]} : vector<9x9x128xbf16> to vector<8x8x128xbf16>
    %26 = vector.shape_cast %25 : vector<8x8x128xbf16> to vector<64x128xbf16>
    %c3_23 = arith.constant 3 : index
    %c0_24 = arith.constant 0 : index
    %c0_25 = arith.constant 0 : index
    %27 = vector.load %arg2[%c3_23, %c0_24, %c0_25] : memref<9x128x128xbf16, #tpu.memory_space<vmem>>, vector<1x128x128xbf16>
    %28 = vector.shape_cast %27 : vector<1x128x128xbf16> to vector<128x128xbf16>
    %cst_26 = arith.constant dense<0.000000e+00> : vector<64x128xf32>
    %29 = tpu.matmul %26, %28, %cst_26 {dimension_numbers = #tpu.dot_dimension_numbers<[1], [0], [0], [1], [0, 0, 1, 1], [], []>} : vector<64x128xbf16>, vector<128x128xbf16>, vector<64x128xf32> -> vector<64x128xf32>
    %30 = arith.addf %24, %29 : vector<64x128xf32>
    %31 = vector.extract_strided_slice %7 {offsets = [0, 0, 0], sizes = [8, 8, 128], strides = [1, 1, 1]} : vector<9x9x128xbf16> to vector<8x8x128xbf16>
    %32 = vector.shape_cast %31 : vector<8x8x128xbf16> to vector<64x128xbf16>
    %c4 = arith.constant 4 : index
    %c0_27 = arith.constant 0 : index
    %c0_28 = arith.constant 0 : index
    %33 = vector.load %arg2[%c4, %c0_27, %c0_28] : memref<9x128x128xbf16, #tpu.memory_space<vmem>>, vector<1x128x128xbf16>
    %34 = vector.shape_cast %33 : vector<1x128x128xbf16> to vector<128x128xbf16>
    %cst_29 = arith.constant dense<0.000000e+00> : vector<64x128xf32>
    %35 = tpu.matmul %32, %34, %cst_29 {dimension_numbers = #tpu.dot_dimension_numbers<[1], [0], [0], [1], [0, 0, 1, 1], [], []>} : vector<64x128xbf16>, vector<128x128xbf16>, vector<64x128xf32> -> vector<64x128xf32>
    %36 = arith.addf %30, %35 : vector<64x128xf32>
    %37 = vector.extract_strided_slice %5 {offsets = [0, 1, 0], sizes = [8, 8, 128], strides = [1, 1, 1]} : vector<9x9x128xbf16> to vector<8x8x128xbf16>
    %38 = vector.shape_cast %37 : vector<8x8x128xbf16> to vector<64x128xbf16>
    %c5 = arith.constant 5 : index
    %c0_30 = arith.constant 0 : index
    %c0_31 = arith.constant 0 : index
    %39 = vector.load %arg2[%c5, %c0_30, %c0_31] : memref<9x128x128xbf16, #tpu.memory_space<vmem>>, vector<1x128x128xbf16>
    %40 = vector.shape_cast %39 : vector<1x128x128xbf16> to vector<128x128xbf16>
    %cst_32 = arith.constant dense<0.000000e+00> : vector<64x128xf32>
    %41 = tpu.matmul %38, %40, %cst_32 {dimension_numbers = #tpu.dot_dimension_numbers<[1], [0], [0], [1], [0, 0, 1, 1], [], []>} : vector<64x128xbf16>, vector<128x128xbf16>, vector<64x128xf32> -> vector<64x128xf32>
    %42 = arith.addf %36, %41 : vector<64x128xf32>
    %43 = vector.extract_strided_slice %1 {offsets = [1, 0, 0], sizes = [8, 8, 128], strides = [1, 1, 1]} : vector<9x9x128xbf16> to vector<8x8x128xbf16>
    %44 = vector.shape_cast %43 : vector<8x8x128xbf16> to vector<64x128xbf16>
    %c6 = arith.constant 6 : index
    %c0_33 = arith.constant 0 : index
    %c0_34 = arith.constant 0 : index
    %45 = vector.load %arg2[%c6, %c0_33, %c0_34] : memref<9x128x128xbf16, #tpu.memory_space<vmem>>, vector<1x128x128xbf16>
    %46 = vector.shape_cast %45 : vector<1x128x128xbf16> to vector<128x128xbf16>
    %cst_35 = arith.constant dense<0.000000e+00> : vector<64x128xf32>
    %47 = tpu.matmul %44, %46, %cst_35 {dimension_numbers = #tpu.dot_dimension_numbers<[1], [0], [0], [1], [0, 0, 1, 1], [], []>} : vector<64x128xbf16>, vector<128x128xbf16>, vector<64x128xf32> -> vector<64x128xf32>
    %48 = arith.addf %42, %47 : vector<64x128xf32>
    %49 = vector.extract_strided_slice %3 {offsets = [1, 0, 0], sizes = [8, 8, 128], strides = [1, 1, 1]} : vector<9x9x128xbf16> to vector<8x8x128xbf16>
    %50 = vector.shape_cast %49 : vector<8x8x128xbf16> to vector<64x128xbf16>
    %c7 = arith.constant 7 : index
    %c0_36 = arith.constant 0 : index
    %c0_37 = arith.constant 0 : index
    %51 = vector.load %arg2[%c7, %c0_36, %c0_37] : memref<9x128x128xbf16, #tpu.memory_space<vmem>>, vector<1x128x128xbf16>
    %52 = vector.shape_cast %51 : vector<1x128x128xbf16> to vector<128x128xbf16>
    %cst_38 = arith.constant dense<0.000000e+00> : vector<64x128xf32>
    %53 = tpu.matmul %50, %52, %cst_38 {dimension_numbers = #tpu.dot_dimension_numbers<[1], [0], [0], [1], [0, 0, 1, 1], [], []>} : vector<64x128xbf16>, vector<128x128xbf16>, vector<64x128xf32> -> vector<64x128xf32>
    %54 = arith.addf %48, %53 : vector<64x128xf32>
    %55 = vector.extract_strided_slice %1 {offsets = [1, 1, 0], sizes = [8, 8, 128], strides = [1, 1, 1]} : vector<9x9x128xbf16> to vector<8x8x128xbf16>
    %56 = vector.shape_cast %55 : vector<8x8x128xbf16> to vector<64x128xbf16>
    %c8 = arith.constant 8 : index
    %c0_39 = arith.constant 0 : index
    %c0_40 = arith.constant 0 : index
    %57 = vector.load %arg2[%c8, %c0_39, %c0_40] : memref<9x128x128xbf16, #tpu.memory_space<vmem>>, vector<1x128x128xbf16>
    %58 = vector.shape_cast %57 : vector<1x128x128xbf16> to vector<128x128xbf16>
    %cst_41 = arith.constant dense<0.000000e+00> : vector<64x128xf32>
    %59 = tpu.matmul %56, %58, %cst_41 {dimension_numbers = #tpu.dot_dimension_numbers<[1], [0], [0], [1], [0, 0, 1, 1], [], []>} : vector<64x128xbf16>, vector<128x128xbf16>, vector<64x128xf32> -> vector<64x128xf32>
    %60 = arith.addf %54, %59 : vector<64x128xf32>
    %61 = arith.truncf %60 : vector<64x128xf32> to vector<64x128xbf16>
    %c0_42 = arith.constant 0 : index
    %c0_43 = arith.constant 0 : index
    %c0_44 = arith.constant 0 : index
    %62 = vector.load %arg3[%c0_42, %c0_43, %c0_44] : memref<1x64x128xbf16, #tpu.memory_space<vmem>>, vector<1x64x128xbf16>
    %63 = vector.shape_cast %62 : vector<1x64x128xbf16> to vector<64x128xbf16>
    %64 = vector.shape_cast %61 : vector<64x128xbf16> to vector<1x64x128xbf16>
    tpu.vector_store %arg3[%c0_42, %c0_43, %c0_44], %64 {strides = array<i32>} : memref<1x64x128xbf16, #tpu.memory_space<vmem>>, vector<1x64x128xbf16>,
    %cst_45 = arith.constant dense<0.000000e+00> : vector<128xf32>
    %65 = vector.multi_reduction <add>, %60, %cst_45 [0] : vector<64x128xf32> to vector<128xf32>
    %66 = vector.shape_cast %65 : vector<128xf32> to vector<1x128xf32>
    %67 = arith.mulf %60, %60 : vector<64x128xf32>
    %cst_46 = arith.constant dense<0.000000e+00> : vector<128xf32>
    %68 = vector.multi_reduction <add>, %67, %cst_46 [0] : vector<64x128xf32> to vector<128xf32>
    %69 = vector.shape_cast %68 : vector<128xf32> to vector<1x128xf32>
    %70 = tpu.iota {dimensions = array<i32: 0>} : vector<8x128xi32>
    %c0_i32 = arith.constant 0 : i32
    %71 = vector.broadcast %c0_i32 : i32 to vector<8x128xi32>
    %72 = arith.cmpi eq, %70, %71 : vector<8x128xi32>
    %c1_i32 = arith.constant 1 : i32
    %73 = vector.broadcast %c1_i32 : i32 to vector<8x128xi32>
    %74 = arith.cmpi eq, %70, %73 : vector<8x128xi32>
    %cst_47 = arith.constant 0.000000e+00 : f32
    %75 = vector.shape_cast %69 : vector<1x128xf32> to vector<1x128xf32>
    %76 = vector.broadcast %75 : vector<1x128xf32> to vector<8x128xf32>
    %77 = vector.broadcast %cst_47 : f32 to vector<8x128xf32>
    %78 = arith.select %74, %76, %77 : vector<8x128xi1>, vector<8x128xf32>
    %79 = vector.shape_cast %66 : vector<1x128xf32> to vector<1x128xf32>
    %80 = vector.broadcast %79 : vector<1x128xf32> to vector<8x128xf32>
    %81 = arith.select %72, %80, %78 : vector<8x128xi1>, vector<8x128xf32>
    %c0_48 = arith.constant 0 : index
    %c0_49 = arith.constant 0 : index
    %82 = vector.load %arg4[%c0_48, %c0_49] : memref<8x128xf32, #tpu.memory_space<vmem>>, vector<8x128xf32>
    tpu.vector_store %arg4[%c0_48, %c0_49], %81 {strides = array<i32>} : memref<8x128xf32, #tpu.memory_space<vmem>>, vector<8x128xf32>,
    return
  }
  func.func @transform_0(%arg0: i32) -> (i32, i32, i32, i32) {
    %c0_i32 = arith.constant 0 : i32
    %c0_i32_0 = arith.constant 0 : i32
    %c0_i32_1 = arith.constant 0 : i32
    %c0_i32_2 = arith.constant 0 : i32
    return %arg0, %c0_i32, %c0_i32_0, %c0_i32_1 : i32, i32, i32, i32
  }
  func.func @transform_1(%arg0: i32) -> (i32, i32, i32) {
    %c0_i32 = arith.constant 0 : i32
    %c0_i32_0 = arith.constant 0 : i32
    %c0_i32_1 = arith.constant 0 : i32
    %c0_i32_2 = arith.constant 0 : i32
    return %c0_i32, %c0_i32_0, %c0_i32_1 : i32, i32, i32
  }
  func.func @transform_2(%arg0: i32) -> (i32, i32, i32) {
    %c0_i32 = arith.constant 0 : i32
    %c0_i32_0 = arith.constant 0 : i32
    %c0_i32_1 = arith.constant 0 : i32
    return %arg0, %c0_i32, %c0_i32_0 : i32, i32, i32
  }
  func.func @transform_3(%arg0: i32) -> (i32, i32) {
    %c0_i32 = arith.constant 0 : i32
    %c0_i32_0 = arith.constant 0 : i32
    return %arg0, %c0_i32 : i32, i32
  }
}

module attributes {stable_mosaic.version = 11 : i64} {
  func.func @_matmul_bn_stats_kernel(%arg0: i32, %arg1: memref<64x128xbf16, #tpu.memory_space<vmem>>, %arg2: memref<128x128xbf16, #tpu.memory_space<vmem>>, %arg3: memref<1x128xf32, #tpu.memory_space<vmem>>, %arg4: memref<1x128xf32, #tpu.memory_space<vmem>>, %arg5: memref<64x128xbf16, #tpu.memory_space<vmem>>, %arg6: memref<8x128xf32, #tpu.memory_space<vmem>>) attributes {dimension_semantics = [#tpu.dimension_semantics<parallel>], iteration_bounds = array<i64: 2>, scalar_prefetch = 0 : i64, scratch_operands = 0 : i64, tpu.core_type = #tpu.core_type<tc>, window_params = [{transform_indices = @transform_0, window_bounds = array<i64: 64, 128>}, {pipeline_mode = #tpu.pipeline_mode<synchronous>, transform_indices = @transform_1, window_bounds = array<i64: 128, 128>}, {pipeline_mode = #tpu.pipeline_mode<synchronous>, transform_indices = @transform_2, window_bounds = array<i64: 1, 128>}, {pipeline_mode = #tpu.pipeline_mode<synchronous>, transform_indices = @transform_3, window_bounds = array<i64: 1, 128>}, {transform_indices = @transform_4, window_bounds = array<i64: 64, 128>}, {transform_indices = @transform_5, window_bounds = array<i64: 8, 128>}]} {
    %c0 = arith.constant 0 : index
    %c0_0 = arith.constant 0 : index
    %0 = vector.load %arg1[%c0, %c0_0] : memref<64x128xbf16, #tpu.memory_space<vmem>>, vector<64x128xbf16>
    %1 = arith.extf %0 : vector<64x128xbf16> to vector<64x128xf32>
    %c0_1 = arith.constant 0 : index
    %c0_2 = arith.constant 0 : index
    %2 = vector.load %arg3[%c0_1, %c0_2] : memref<1x128xf32, #tpu.memory_space<vmem>>, vector<1x128xf32>
    %3 = vector.broadcast %2 : vector<1x128xf32> to vector<64x128xf32>
    %4 = arith.mulf %1, %3 : vector<64x128xf32>
    %c0_3 = arith.constant 0 : index
    %c0_4 = arith.constant 0 : index
    %5 = vector.load %arg4[%c0_3, %c0_4] : memref<1x128xf32, #tpu.memory_space<vmem>>, vector<1x128xf32>
    %6 = vector.broadcast %5 : vector<1x128xf32> to vector<64x128xf32>
    %7 = arith.addf %4, %6 : vector<64x128xf32>
    %cst = arith.constant 0.000000e+00 : f32
    %8 = vector.broadcast %cst : f32 to vector<64x128xf32>
    %9 = arith.maximumf %7, %8 : vector<64x128xf32>
    %10 = arith.truncf %9 : vector<64x128xf32> to vector<64x128xbf16>
    %c0_5 = arith.constant 0 : index
    %c0_6 = arith.constant 0 : index
    %11 = vector.load %arg2[%c0_5, %c0_6] : memref<128x128xbf16, #tpu.memory_space<vmem>>, vector<128x128xbf16>
    %cst_7 = arith.constant dense<0.000000e+00> : vector<64x128xf32>
    %12 = tpu.matmul %10, %11, %cst_7 {dimension_numbers = #tpu.dot_dimension_numbers<[1], [0], [0], [1], [0, 0, 1, 1], [], []>} : vector<64x128xbf16>, vector<128x128xbf16>, vector<64x128xf32> -> vector<64x128xf32>
    %13 = arith.truncf %12 : vector<64x128xf32> to vector<64x128xbf16>
    %c0_8 = arith.constant 0 : index
    %c0_9 = arith.constant 0 : index
    %14 = vector.load %arg5[%c0_8, %c0_9] : memref<64x128xbf16, #tpu.memory_space<vmem>>, vector<64x128xbf16>
    tpu.vector_store %arg5[%c0_8, %c0_9], %13 {strides = array<i32>} : memref<64x128xbf16, #tpu.memory_space<vmem>>, vector<64x128xbf16>,
    %cst_10 = arith.constant dense<0.000000e+00> : vector<128xf32>
    %15 = vector.multi_reduction <add>, %12, %cst_10 [0] : vector<64x128xf32> to vector<128xf32>
    %16 = vector.shape_cast %15 : vector<128xf32> to vector<1x128xf32>
    %17 = arith.mulf %12, %12 : vector<64x128xf32>
    %cst_11 = arith.constant dense<0.000000e+00> : vector<128xf32>
    %18 = vector.multi_reduction <add>, %17, %cst_11 [0] : vector<64x128xf32> to vector<128xf32>
    %19 = vector.shape_cast %18 : vector<128xf32> to vector<1x128xf32>
    %20 = tpu.iota {dimensions = array<i32: 0>} : vector<8x128xi32>
    %c0_i32 = arith.constant 0 : i32
    %21 = vector.broadcast %c0_i32 : i32 to vector<8x128xi32>
    %22 = arith.cmpi eq, %20, %21 : vector<8x128xi32>
    %c1_i32 = arith.constant 1 : i32
    %23 = vector.broadcast %c1_i32 : i32 to vector<8x128xi32>
    %24 = arith.cmpi eq, %20, %23 : vector<8x128xi32>
    %cst_12 = arith.constant 0.000000e+00 : f32
    %25 = vector.shape_cast %19 : vector<1x128xf32> to vector<1x128xf32>
    %26 = vector.broadcast %25 : vector<1x128xf32> to vector<8x128xf32>
    %27 = vector.broadcast %cst_12 : f32 to vector<8x128xf32>
    %28 = arith.select %24, %26, %27 : vector<8x128xi1>, vector<8x128xf32>
    %29 = vector.shape_cast %16 : vector<1x128xf32> to vector<1x128xf32>
    %30 = vector.broadcast %29 : vector<1x128xf32> to vector<8x128xf32>
    %31 = arith.select %22, %30, %28 : vector<8x128xi1>, vector<8x128xf32>
    %c0_13 = arith.constant 0 : index
    %c0_14 = arith.constant 0 : index
    %32 = vector.load %arg6[%c0_13, %c0_14] : memref<8x128xf32, #tpu.memory_space<vmem>>, vector<8x128xf32>
    tpu.vector_store %arg6[%c0_13, %c0_14], %31 {strides = array<i32>} : memref<8x128xf32, #tpu.memory_space<vmem>>, vector<8x128xf32>,
    return
  }
  func.func @transform_0(%arg0: i32) -> (i32, i32) {
    %c0_i32 = arith.constant 0 : i32
    %c0_i32_0 = arith.constant 0 : i32
    return %arg0, %c0_i32 : i32, i32
  }
  func.func @transform_1(%arg0: i32) -> (i32, i32) {
    %c0_i32 = arith.constant 0 : i32
    %c0_i32_0 = arith.constant 0 : i32
    %c0_i32_1 = arith.constant 0 : i32
    return %c0_i32, %c0_i32_0 : i32, i32
  }
  func.func @transform_2(%arg0: i32) -> (i32, i32) {
    %c0_i32 = arith.constant 0 : i32
    %c0_i32_0 = arith.constant 0 : i32
    %c0_i32_1 = arith.constant 0 : i32
    return %c0_i32, %c0_i32_0 : i32, i32
  }
  func.func @transform_3(%arg0: i32) -> (i32, i32) {
    %c0_i32 = arith.constant 0 : i32
    %c0_i32_0 = arith.constant 0 : i32
    %c0_i32_1 = arith.constant 0 : i32
    return %c0_i32, %c0_i32_0 : i32, i32
  }
  func.func @transform_4(%arg0: i32) -> (i32, i32) {
    %c0_i32 = arith.constant 0 : i32
    %c0_i32_0 = arith.constant 0 : i32
    return %arg0, %c0_i32 : i32, i32
  }
  func.func @transform_5(%arg0: i32) -> (i32, i32) {
    %c0_i32 = arith.constant 0 : i32
    %c0_i32_0 = arith.constant 0 : i32
    return %arg0, %c0_i32 : i32, i32
  }
}

module attributes {stable_mosaic.version = 11 : i64} {
  func.func @_matmul_bn_stats_kernel(%arg0: i32, %arg1: memref<64x128xbf16, #tpu.memory_space<vmem>>, %arg2: memref<128x128xbf16, #tpu.memory_space<vmem>>, %arg3: memref<64x128xbf16, #tpu.memory_space<vmem>>, %arg4: memref<8x128xf32, #tpu.memory_space<vmem>>) attributes {dimension_semantics = [#tpu.dimension_semantics<parallel>], iteration_bounds = array<i64: 2>, scalar_prefetch = 0 : i64, scratch_operands = 0 : i64, tpu.core_type = #tpu.core_type<tc>, window_params = [{transform_indices = @transform_0, window_bounds = array<i64: 64, 128>}, {pipeline_mode = #tpu.pipeline_mode<synchronous>, transform_indices = @transform_1, window_bounds = array<i64: 128, 128>}, {transform_indices = @transform_2, window_bounds = array<i64: 64, 128>}, {transform_indices = @transform_3, window_bounds = array<i64: 8, 128>}]} {
    %c0 = arith.constant 0 : index
    %c0_0 = arith.constant 0 : index
    %0 = vector.load %arg1[%c0, %c0_0] : memref<64x128xbf16, #tpu.memory_space<vmem>>, vector<64x128xbf16>
    %c0_1 = arith.constant 0 : index
    %c0_2 = arith.constant 0 : index
    %1 = vector.load %arg2[%c0_1, %c0_2] : memref<128x128xbf16, #tpu.memory_space<vmem>>, vector<128x128xbf16>
    %cst = arith.constant dense<0.000000e+00> : vector<64x128xf32>
    %2 = tpu.matmul %0, %1, %cst {dimension_numbers = #tpu.dot_dimension_numbers<[1], [0], [0], [1], [0, 0, 1, 1], [], []>} : vector<64x128xbf16>, vector<128x128xbf16>, vector<64x128xf32> -> vector<64x128xf32>
    %3 = arith.truncf %2 : vector<64x128xf32> to vector<64x128xbf16>
    %c0_3 = arith.constant 0 : index
    %c0_4 = arith.constant 0 : index
    %4 = vector.load %arg3[%c0_3, %c0_4] : memref<64x128xbf16, #tpu.memory_space<vmem>>, vector<64x128xbf16>
    tpu.vector_store %arg3[%c0_3, %c0_4], %3 {strides = array<i32>} : memref<64x128xbf16, #tpu.memory_space<vmem>>, vector<64x128xbf16>,
    %cst_5 = arith.constant dense<0.000000e+00> : vector<128xf32>
    %5 = vector.multi_reduction <add>, %2, %cst_5 [0] : vector<64x128xf32> to vector<128xf32>
    %6 = vector.shape_cast %5 : vector<128xf32> to vector<1x128xf32>
    %7 = arith.mulf %2, %2 : vector<64x128xf32>
    %cst_6 = arith.constant dense<0.000000e+00> : vector<128xf32>
    %8 = vector.multi_reduction <add>, %7, %cst_6 [0] : vector<64x128xf32> to vector<128xf32>
    %9 = vector.shape_cast %8 : vector<128xf32> to vector<1x128xf32>
    %10 = tpu.iota {dimensions = array<i32: 0>} : vector<8x128xi32>
    %c0_i32 = arith.constant 0 : i32
    %11 = vector.broadcast %c0_i32 : i32 to vector<8x128xi32>
    %12 = arith.cmpi eq, %10, %11 : vector<8x128xi32>
    %c1_i32 = arith.constant 1 : i32
    %13 = vector.broadcast %c1_i32 : i32 to vector<8x128xi32>
    %14 = arith.cmpi eq, %10, %13 : vector<8x128xi32>
    %cst_7 = arith.constant 0.000000e+00 : f32
    %15 = vector.shape_cast %9 : vector<1x128xf32> to vector<1x128xf32>
    %16 = vector.broadcast %15 : vector<1x128xf32> to vector<8x128xf32>
    %17 = vector.broadcast %cst_7 : f32 to vector<8x128xf32>
    %18 = arith.select %14, %16, %17 : vector<8x128xi1>, vector<8x128xf32>
    %19 = vector.shape_cast %6 : vector<1x128xf32> to vector<1x128xf32>
    %20 = vector.broadcast %19 : vector<1x128xf32> to vector<8x128xf32>
    %21 = arith.select %12, %20, %18 : vector<8x128xi1>, vector<8x128xf32>
    %c0_8 = arith.constant 0 : index
    %c0_9 = arith.constant 0 : index
    %22 = vector.load %arg4[%c0_8, %c0_9] : memref<8x128xf32, #tpu.memory_space<vmem>>, vector<8x128xf32>
    tpu.vector_store %arg4[%c0_8, %c0_9], %21 {strides = array<i32>} : memref<8x128xf32, #tpu.memory_space<vmem>>, vector<8x128xf32>,
    return
  }
  func.func @transform_0(%arg0: i32) -> (i32, i32) {
    %c0_i32 = arith.constant 0 : i32
    %c0_i32_0 = arith.constant 0 : i32
    return %arg0, %c0_i32 : i32, i32
  }
  func.func @transform_1(%arg0: i32) -> (i32, i32) {
    %c0_i32 = arith.constant 0 : i32
    %c0_i32_0 = arith.constant 0 : i32
    %c0_i32_1 = arith.constant 0 : i32
    return %c0_i32, %c0_i32_0 : i32, i32
  }
  func.func @transform_2(%arg0: i32) -> (i32, i32) {
    %c0_i32 = arith.constant 0 : i32
    %c0_i32_0 = arith.constant 0 : i32
    return %arg0, %c0_i32 : i32, i32
  }
  func.func @transform_3(%arg0: i32) -> (i32, i32) {
    %c0_i32 = arith.constant 0 : i32
    %c0_i32_0 = arith.constant 0 : i32
    return %arg0, %c0_i32 : i32, i32
  }
}

module attributes {stable_mosaic.version = 11 : i64} {
  func.func @_norm_act_kernel(%arg0: i32, %arg1: memref<64x128xbf16, #tpu.memory_space<vmem>>, %arg2: memref<1x128xf32, #tpu.memory_space<vmem>>, %arg3: memref<1x128xf32, #tpu.memory_space<vmem>>, %arg4: memref<64x128xbf16, #tpu.memory_space<vmem>>, %arg5: memref<1x128xf32, #tpu.memory_space<vmem>>, %arg6: memref<1x128xf32, #tpu.memory_space<vmem>>, %arg7: memref<64x128xf32, #tpu.memory_space<vmem>>) attributes {dimension_semantics = [#tpu.dimension_semantics<parallel>], iteration_bounds = array<i64: 2>, scalar_prefetch = 0 : i64, scratch_operands = 0 : i64, tpu.core_type = #tpu.core_type<tc>, window_params = [{transform_indices = @transform_0, window_bounds = array<i64: 64, 128>}, {pipeline_mode = #tpu.pipeline_mode<synchronous>, transform_indices = @transform_1, window_bounds = array<i64: 1, 128>}, {pipeline_mode = #tpu.pipeline_mode<synchronous>, transform_indices = @transform_2, window_bounds = array<i64: 1, 128>}, {transform_indices = @transform_3, window_bounds = array<i64: 64, 128>}, {pipeline_mode = #tpu.pipeline_mode<synchronous>, transform_indices = @transform_4, window_bounds = array<i64: 1, 128>}, {pipeline_mode = #tpu.pipeline_mode<synchronous>, transform_indices = @transform_5, window_bounds = array<i64: 1, 128>}, {transform_indices = @transform_6, window_bounds = array<i64: 64, 128>}]} {
    %c0 = arith.constant 0 : index
    %c0_0 = arith.constant 0 : index
    %0 = vector.load %arg1[%c0, %c0_0] : memref<64x128xbf16, #tpu.memory_space<vmem>>, vector<64x128xbf16>
    %1 = arith.extf %0 : vector<64x128xbf16> to vector<64x128xf32>
    %c0_1 = arith.constant 0 : index
    %c0_2 = arith.constant 0 : index
    %2 = vector.load %arg2[%c0_1, %c0_2] : memref<1x128xf32, #tpu.memory_space<vmem>>, vector<1x128xf32>
    %3 = vector.broadcast %2 : vector<1x128xf32> to vector<64x128xf32>
    %4 = arith.mulf %1, %3 : vector<64x128xf32>
    %c0_3 = arith.constant 0 : index
    %c0_4 = arith.constant 0 : index
    %5 = vector.load %arg3[%c0_3, %c0_4] : memref<1x128xf32, #tpu.memory_space<vmem>>, vector<1x128xf32>
    %6 = vector.broadcast %5 : vector<1x128xf32> to vector<64x128xf32>
    %7 = arith.addf %4, %6 : vector<64x128xf32>
    %c0_5 = arith.constant 0 : index
    %c0_6 = arith.constant 0 : index
    %8 = vector.load %arg4[%c0_5, %c0_6] : memref<64x128xbf16, #tpu.memory_space<vmem>>, vector<64x128xbf16>
    %9 = arith.extf %8 : vector<64x128xbf16> to vector<64x128xf32>
    %c0_7 = arith.constant 0 : index
    %c0_8 = arith.constant 0 : index
    %10 = vector.load %arg5[%c0_7, %c0_8] : memref<1x128xf32, #tpu.memory_space<vmem>>, vector<1x128xf32>
    %11 = vector.broadcast %10 : vector<1x128xf32> to vector<64x128xf32>
    %12 = arith.mulf %9, %11 : vector<64x128xf32>
    %13 = arith.addf %7, %12 : vector<64x128xf32>
    %c0_9 = arith.constant 0 : index
    %c0_10 = arith.constant 0 : index
    %14 = vector.load %arg6[%c0_9, %c0_10] : memref<1x128xf32, #tpu.memory_space<vmem>>, vector<1x128xf32>
    %15 = vector.broadcast %14 : vector<1x128xf32> to vector<64x128xf32>
    %16 = arith.addf %13, %15 : vector<64x128xf32>
    %cst = arith.constant 0.000000e+00 : f32
    %17 = vector.broadcast %cst : f32 to vector<64x128xf32>
    %18 = arith.maximumf %16, %17 : vector<64x128xf32>
    %c0_11 = arith.constant 0 : index
    %c0_12 = arith.constant 0 : index
    %19 = vector.load %arg7[%c0_11, %c0_12] : memref<64x128xf32, #tpu.memory_space<vmem>>, vector<64x128xf32>
    tpu.vector_store %arg7[%c0_11, %c0_12], %18 {strides = array<i32>} : memref<64x128xf32, #tpu.memory_space<vmem>>, vector<64x128xf32>,
    return
  }
  func.func @transform_0(%arg0: i32) -> (i32, i32) {
    %c0_i32 = arith.constant 0 : i32
    %c0_i32_0 = arith.constant 0 : i32
    return %arg0, %c0_i32 : i32, i32
  }
  func.func @transform_1(%arg0: i32) -> (i32, i32) {
    %c0_i32 = arith.constant 0 : i32
    %c0_i32_0 = arith.constant 0 : i32
    %c0_i32_1 = arith.constant 0 : i32
    return %c0_i32, %c0_i32_0 : i32, i32
  }
  func.func @transform_2(%arg0: i32) -> (i32, i32) {
    %c0_i32 = arith.constant 0 : i32
    %c0_i32_0 = arith.constant 0 : i32
    %c0_i32_1 = arith.constant 0 : i32
    return %c0_i32, %c0_i32_0 : i32, i32
  }
  func.func @transform_3(%arg0: i32) -> (i32, i32) {
    %c0_i32 = arith.constant 0 : i32
    %c0_i32_0 = arith.constant 0 : i32
    return %arg0, %c0_i32 : i32, i32
  }
  func.func @transform_4(%arg0: i32) -> (i32, i32) {
    %c0_i32 = arith.constant 0 : i32
    %c0_i32_0 = arith.constant 0 : i32
    %c0_i32_1 = arith.constant 0 : i32
    return %c0_i32, %c0_i32_0 : i32, i32
  }
  func.func @transform_5(%arg0: i32) -> (i32, i32) {
    %c0_i32 = arith.constant 0 : i32
    %c0_i32_0 = arith.constant 0 : i32
    %c0_i32_1 = arith.constant 0 : i32
    return %c0_i32, %c0_i32_0 : i32, i32
  }
  func.func @transform_6(%arg0: i32) -> (i32, i32) {
    %c0_i32 = arith.constant 0 : i32
    %c0_i32_0 = arith.constant 0 : i32
    return %arg0, %c0_i32 : i32, i32
  }
}

</mosaic_0001>

<bundles_post_ra>
// kernel: bottleneck_forward.7
= control target key start
LH: loop header
LB: loop body
LE: loop exit
PB: predicated region body
PF: predicated region fallthrough
CT: control target
= control target key end

     0   :  { %s685_s12 = smov 0   ;;  %s819_s0 = inlined_call_operand.vmem [shape: bf16[512,128], index: 0, kind: input, shape index: {}]   ;;  %s820_s1 = inlined_call_operand.vmem [shape: f32[1,128], index: 1, kind: input, shape index: {}]   ;;  %s821_s2 = inlined_call_operand.vmem [shape: f32[1,128], index: 2, kind: input, shape index: {}]   ;;  %s822_s3 = inlined_call_operand.vmem [shape: bf16[512,128], index: 3, kind: output, shape index: {}]  }
   0x1 LB: > { %s462_s13 = sadd.s32 4294967295, %s663_s12   ;;  %p466_p0 = scmp.ge.s32.totalorder %s663_s12, 1  ;;  %s663_s12 = sphi %s685_s12, %s13_s12  }
   0x2   : > { %p138_p1 = scmp.lt.s32.totalorder %s663_s12, 3 }
   0x4   : > { %p139_p2 = pnand %p466_p0, %p138_p1 }
   0x5   : > { %s467_s14 = sshll.u32 (!%p139_p2), %s462_s13, 5 }
   0x6   : > { %142 = sbr.rel (%p139_p2) target bundleno = 57 (0x39), region = 32  ;;  %p163_p3 = scmp.lt.s32.totalorder (!%p139_p2), %s467_s14, 63 }
   0xb   : > { %s824_s14 = smov (!%p163_p3, %s467_s14), 63  ;;  %v706_v0 = vld [vmem:[%s820_s1] ss:$0 sm:$0xff] }
   0xc   : > { %s468_s15 = sshll.u32 %s824_s14, 2  ;;  %v714_v6 = vld [vmem:[%s821_s2] ss:$0 sm:$0xff] }
   0xd   : > { %s701_s18 = scalar_lea.vmem %s819_s0, %s468_s15  ;;  %s740_s25 = scalar_lea.vmem %s822_s3, %s468_s15 }
   0xe   : > { %v474_v1 = vld [vmem:[%s701_s18] sm:$0xff]   ;;  %v617_v2 = vld [vmem:[%s701_s18 + $0x8] sm:$0xff]   ;;  %v618_v3 = vld [vmem:[%s701_s18 + $0x10] sm:$0xff]  }
   0xf   : > { %v475_v4 = vunpack.c.l.bf16 %v474_v1  ;;  %v476_v5 = vunpack.c.h.bf16 %v474_v1  ;;  %v479_v7 = vunpack.c.l.bf16 %v617_v2  ;;  %v480_v8 = vunpack.c.h.bf16 %v617_v2  ;;  %v619_v9 = vld [vmem:[%s701_s18 + $0x18] sm:$0xff]   ;;  %v620_v30 = vld [vmem:[%s701_s18 + $0x20] sm:$0xff]   ;;  %v621_v35 = vld [vmem:[%s701_s18 + $0x28] sm:$0xff]  }
  0x10   : > { %v483_v10 = vunpack.c.l.bf16 %v618_v3  ;;  %v484_v11 = vunpack.c.h.bf16 %v618_v3  ;;  %v487_v12 = vunpack.c.l.bf16 %v619_v9  ;;  %v488_v13 = vunpack.c.h.bf16 %v619_v9  ;;  %v622_v40 = vld [vmem:[%s701_s18 + $0x30] sm:$0xff]   ;;  %v623_v45 = vld [vmem:[%s701_s18 + $0x38] sm:$0xff]   ;;  %v624_v3 = vld [vmem:[%s701_s18 + $0x40] sm:$0xff]  }
  0x11   : > { %v242_v14 = vmul.f32 %v706_v0, %v475_v4  ;;  %v243_v15 = vmul.f32 %v706_v0, %v476_v5  ;;  %v244_v16 = vmul.f32 %v706_v0, %v479_v7  ;;  %v245_v17 = vmul.f32 %v706_v0, %v480_v8 }
  0x12   : > { %v246_v18 = vmul.f32 %v706_v0, %v483_v10  ;;  %v247_v19 = vmul.f32 %v706_v0, %v484_v11  ;;  %v248_v20 = vmul.f32 %v706_v0, %v487_v12  ;;  %v249_v21 = vmul.f32 %v706_v0, %v488_v13  ;;  %v625_v13 = vld [vmem:[%s701_s18 + $0x48] sm:$0xff]  }
  0x13   : > { %v278_v22 = vadd.f32 %v714_v6, %v242_v14  ;;  %v279_v23 = vadd.f32 %v714_v6, %v243_v15  ;;  %v280_v24 = vadd.f32 %v714_v6, %v244_v16  ;;  %v281_v25 = vadd.f32 %v714_v6, %v245_v17 }
  0x14   : > { %v282_v26 = vadd.f32 %v714_v6, %v246_v18  ;;  %v283_v27 = vadd.f32 %v714_v6, %v247_v19  ;;  %v284_v28 = vadd.f32 %v714_v6, %v248_v20  ;;  %v285_v29 = vadd.f32 %v714_v6, %v249_v21  ;;  %v626_v18 = vld [vmem:[%s701_s18 + $0x50] sm:$0xff]  }
  0x15   : > { %v310_v31 = vmax.f32 %v278_v22, 0.0  ;;  %v311_v32 = vmax.f32 %v279_v23, 0.0  ;;  %v312_v33 = vmax.f32 %v280_v24, 0.0  ;;  %v313_v34 = vmax.f32 %v281_v25, 0.0  ;;  %v627_v23 = vld [vmem:[%s701_s18 + $0x58] sm:$0xff]  }
  0x16   : > { %v314_v36 = vmax.f32 %v282_v26, 0.0  ;;  %v315_v37 = vmax.f32 %v283_v27, 0.0  ;;  %v316_v38 = vmax.f32 %v284_v28, 0.0  ;;  %v317_v39 = vmax.f32 %v285_v29, 0.0 }
  0x17   : > { %v540_v41 = vpack.c.bf16 %v311_v32, %v310_v31  ;;  %v545_v42 = vpack.c.bf16 %v313_v34, %v312_v33  ;;  %v491_v43 = vunpack.c.l.bf16 %v620_v30  ;;  %v492_v44 = vunpack.c.h.bf16 %v620_v30 }
  0x18   : > { %v550_v46 = vpack.c.bf16 %v315_v37, %v314_v36  ;;  %v555_v47 = vpack.c.bf16 %v317_v39, %v316_v38  ;;  %v495_v48 = vunpack.c.l.bf16 %v621_v35  ;;  %v496_v49 = vunpack.c.h.bf16 %v621_v35 }
  0x19   : > { %541 = vst [vmem:[%s740_s25] sm:$0xff] %v540_v41   ;;  %v250_v50 = vmul.f32 %v706_v0, %v491_v43  ;;  %v251_v51 = vmul.f32 %v706_v0, %v492_v44  ;;  %v499_v52 = vunpack.c.l.bf16 %v622_v40  ;;  %v500_v53 = vunpack.c.h.bf16 %v622_v40  ;;  %v628_v40 = vld [vmem:[%s701_s18 + $0x60] sm:$0xff]  }
  0x1a   : > { %632 = vst [vmem:[%s740_s25 + $0x8] sm:$0xff] %v545_v42   ;;  %v252_v54 = vmul.f32 %v706_v0, %v495_v48  ;;  %v253_v55 = vmul.f32 %v706_v0, %v496_v49  ;;  %v503_v56 = vunpack.c.l.bf16 %v623_v45  ;;  %v504_v57 = vunpack.c.h.bf16 %v623_v45 }
  0x1b   : > { %633 = vst [vmem:[%s740_s25 + $0x10] sm:$0xff] %v550_v46   ;;  %v286_v58 = vadd.f32 %v714_v6, %v250_v50  ;;  %v287_v59 = vadd.f32 %v714_v6, %v251_v51  ;;  %v254_v60 = vmul.f32 %v706_v0, %v499_v52  ;;  %v255_v61 = vmul.f32 %v706_v0, %v500_v53  ;;  %v629_v53 = vld [vmem:[%s701_s18 + $0x68] sm:$0xff]  }
  0x1c   : > { %634 = vst [vmem:[%s740_s25 + $0x18] sm:$0xff] %v555_v47   ;;  %v288_v62 = vadd.f32 %v714_v6, %v252_v54  ;;  %v289_v63 = vadd.f32 %v714_v6, %v253_v55  ;;  %v256_v1 = vmul.f32 %v706_v0, %v503_v56  ;;  %v257_v2 = vmul.f32 %v706_v0, %v504_v57 }
  0x1d   : > { %v318_v4 = vmax.f32 %v286_v58, 0.0  ;;  %v319_v5 = vmax.f32 %v287_v59, 0.0  ;;  %v290_v7 = vadd.f32 %v714_v6, %v254_v60  ;;  %v291_v8 = vadd.f32 %v714_v6, %v255_v61  ;;  %v630_v58 = vld [vmem:[%s701_s18 + $0x70] sm:$0xff]  }
  0x1e   : > { %v320_v9 = vmax.f32 %v288_v62, 0.0  ;;  %v321_v10 = vmax.f32 %v289_v63, 0.0  ;;  %v292_v11 = vadd.f32 %v714_v6, %v256_v1  ;;  %v293_v12 = vadd.f32 %v714_v6, %v257_v2  ;;  %v631_v63 = vld [vmem:[%s701_s18 + $0x78] sm:$0xff]  }
  0x1f   : > { %v560_v14 = vpack.c.bf16 %v319_v5, %v318_v4  ;;  %v322_v15 = vmax.f32 %v290_v7, 0.0  ;;  %v323_v16 = vmax.f32 %v291_v8, 0.0  ;;  %v507_v17 = vunpack.c.l.bf16 %v624_v3 }
  0x20   : > { %v565_v19 = vpack.c.bf16 %v321_v10, %v320_v9  ;;  %v324_v20 = vmax.f32 %v292_v11, 0.0  ;;  %v325_v21 = vmax.f32 %v293_v12, 0.0  ;;  %v508_v22 = vunpack.c.h.bf16 %v624_v3 }
  0x21   : > { %635 = vst [vmem:[%s740_s25 + $0x20] sm:$0xff] %v560_v14   ;;  %v570_v24 = vpack.c.bf16 %v323_v16, %v322_v15  ;;  %v258_v25 = vmul.f32 %v706_v0, %v507_v17  ;;  %v511_v26 = vunpack.c.l.bf16 %v625_v13  ;;  %v512_v27 = vunpack.c.h.bf16 %v625_v13 }
  0x22   : > { %636 = vst [vmem:[%s740_s25 + $0x28] sm:$0xff] %v565_v19   ;;  %v575_v28 = vpack.c.bf16 %v325_v21, %v324_v20  ;;  %v259_v29 = vmul.f32 %v706_v0, %v508_v22  ;;  %v515_v30 = vunpack.c.l.bf16 %v626_v18  ;;  %v516_v31 = vunpack.c.h.bf16 %v626_v18 }
  0x23   : > { %637 = vst [vmem:[%s740_s25 + $0x30] sm:$0xff] %v570_v24   ;;  %v294_v32 = vadd.f32 %v714_v6, %v258_v25  ;;  %v260_v33 = vmul.f32 %v706_v0, %v511_v26  ;;  %v261_v34 = vmul.f32 %v706_v0, %v512_v27  ;;  %v519_v35 = vunpack.c.l.bf16 %v627_v23 }
  0x24   : > { %638 = vst [vmem:[%s740_s25 + $0x38] sm:$0xff] %v575_v28   ;;  %v295_v36 = vadd.f32 %v714_v6, %v259_v29  ;;  %v262_v37 = vmul.f32 %v706_v0, %v515_v30  ;;  %v263_v38 = vmul.f32 %v706_v0, %v516_v31  ;;  %v520_v39 = vunpack.c.h.bf16 %v627_v23 }
  0x25   : > { %v326_v41 = vmax.f32 %v294_v32, 0.0  ;;  %v296_v42 = vadd.f32 %v714_v6, %v260_v33  ;;  %v297_v43 = vadd.f32 %v714_v6, %v261_v34  ;;  %v264_v44 = vmul.f32 %v706_v0, %v519_v35 }
  0x26   : > { %v327_v45 = vmax.f32 %v295_v36, 0.0  ;;  %v298_v46 = vadd.f32 %v714_v6, %v262_v37  ;;  %v299_v47 = vadd.f32 %v714_v6, %v263_v38  ;;  %v265_v48 = vmul.f32 %v706_v0, %v520_v39 }
  0x27   : > { %v328_v49 = vmax.f32 %v296_v42, 0.0  ;;  %v329_v50 = vmax.f32 %v297_v43, 0.0  ;;  %v300_v51 = vadd.f32 %v714_v6, %v264_v44  ;;  %v523_v52 = vunpack.c.l.bf16 %v628_v40 }
  0x28   : > { %v580_v54 = vpack.c.bf16 %v327_v45, %v326_v41  ;;  %v330_v55 = vmax.f32 %v298_v46, 0.0  ;;  %v331_v56 = vmax.f32 %v299_v47, 0.0  ;;  %v301_v57 = vadd.f32 %v714_v6, %v265_v48 }
  0x29   : > { %v585_v59 = vpack.c.bf16 %v329_v50, %v328_v49  ;;  %v332_v60 = vmax.f32 %v300_v51, 0.0  ;;  %v524_v61 = vunpack.c.h.bf16 %v628_v40  ;;  %v266_v62 = vmul.f32 %v706_v0, %v523_v52 }
  0x2a   : > { %639 = vst [vmem:[%s740_s25 + $0x40] sm:$0xff] %v580_v54   ;;  %v590_v1 = vpack.c.bf16 %v331_v56, %v330_v55  ;;  %v333_v2 = vmax.f32 %v301_v57, 0.0  ;;  %v527_v3 = vunpack.c.l.bf16 %v629_v53  ;;  %v528_v4 = vunpack.c.h.bf16 %v629_v53 }
  0x2b   : > { %640 = vst [vmem:[%s740_s25 + $0x48] sm:$0xff] %v585_v59   ;;  %v267_v5 = vmul.f32 %v706_v0, %v524_v61  ;;  %v302_v7 = vadd.f32 %v714_v6, %v266_v62  ;;  %v531_v8 = vunpack.c.l.bf16 %v630_v58  ;;  %v532_v9 = vunpack.c.h.bf16 %v630_v58 }
  0x2c   : > { %641 = vst [vmem:[%s740_s25 + $0x50] sm:$0xff] %v590_v1   ;;  %v595_v10 = vpack.c.bf16 %v333_v2, %v332_v60  ;;  %v268_v11 = vmul.f32 %v706_v0, %v527_v3  ;;  %v269_v12 = vmul.f32 %v706_v0, %v528_v4  ;;  %v535_v13 = vunpack.c.l.bf16 %v631_v63 }
  0x2d   : > { %v303_v14 = vadd.f32 %v714_v6, %v267_v5  ;;  %v334_v15 = vmax.f32 %v302_v7, 0.0  ;;  %v270_v16 = vmul.f32 %v706_v0, %v531_v8  ;;  %v271_v17 = vmul.f32 %v706_v0, %v532_v9 }
  0x2e   : > { %642 = vst [vmem:[%s740_s25 + $0x58] sm:$0xff] %v595_v10   ;;  %v304_v18 = vadd.f32 %v714_v6, %v268_v11  ;;  %v305_v19 = vadd.f32 %v714_v6, %v269_v12  ;;  %v536_v20 = vunpack.c.h.bf16 %v631_v63  ;;  %v272_v21 = vmul.f32 %v706_v0, %v535_v13 }
  0x2f   : > { %v335_v22 = vmax.f32 %v303_v14, 0.0  ;;  %v306_v23 = vadd.f32 %v714_v6, %v270_v16  ;;  %v307_v24 = vadd.f32 %v714_v6, %v271_v17 }
  0x30   : > { %v336_v25 = vmax.f32 %v304_v18, 0.0  ;;  %v337_v26 = vmax.f32 %v305_v19, 0.0  ;;  %v273_v27 = vmul.f32 %v706_v0, %v536_v20  ;;  %v308_v28 = vadd.f32 %v714_v6, %v272_v21 }
  0x31   : > { %v600_v29 = vpack.c.bf16 %v335_v22, %v334_v15  ;;  %v338_v30 = vmax.f32 %v306_v23, 0.0  ;;  %v339_v31 = vmax.f32 %v307_v24, 0.0 }
  0x32   : > { %v605_v32 = vpack.c.bf16 %v337_v26, %v336_v25  ;;  %v309_v33 = vadd.f32 %v714_v6, %v273_v27  ;;  %v340_v34 = vmax.f32 %v308_v28, 0.0 }
  0x33   : > { %643 = vst [vmem:[%s740_s25 + $0x60] sm:$0xff] %v600_v29   ;;  %v610_v35 = vpack.c.bf16 %v339_v31, %v338_v30 }
  0x34   : > { %644 = vst [vmem:[%s740_s25 + $0x68] sm:$0xff] %v605_v32   ;;  %v341_v36 = vmax.f32 %v309_v33, 0.0 }
  0x35   : > { %645 = vst [vmem:[%s740_s25 + $0x70] sm:$0xff] %v610_v35  }
  0x36   : > { %v615_v37 = vpack.c.bf16 %v341_v36, %v340_v34 }
  0x38   : > { %646 = vst [vmem:[%s740_s25 + $0x78] sm:$0xff] %v615_v37  }
  0x39 PF: > { %s13_s12 = sadd.s32 1, %s663_s12  }
  0x3a   : > { %p10_p4 = scmp.ge.s32.totalorder %s13_s12, 4  }
  0x3c   :  { %12 = sbr.rel (!%p10_p4) target bundleno = 1 (0x1), region = 62 }

// kernel: bottleneck_forward.6
= control target key start
LH: loop header
LB: loop body
LE: loop exit
PB: predicated region body
PF: predicated region fallthrough
CT: control target
= control target key end

     0   :  { %s1017_s12 = smov 0   ;;  %s1223_s0 = inlined_call_operand.vmem [shape: bf16[512,128], index: 0, kind: input, shape index: {}]   ;;  %s1224_s1 = inlined_call_operand.vmem [shape: bf16[128,128], index: 1, kind: input, shape index: {}]   ;;  %s1225_s2 = inlined_call_operand.vmem [shape: bf16[512,128], index: 2, kind: output, shape index: {0}]   ;;  %s1226_s3 = inlined_call_operand.vmem [shape: f32[16,128], index: 3, kind: output, shape index: {1}]  }
   0x1 LB: > { %s1023_s13 = sadd.s32 4294967295, %s995_s12   ;;  %p734_p0 = scmp.ge.s32.totalorder %s995_s12, 1  ;;  %s995_s12 = sphi %s1017_s12, %s14_s12  }
   0x2   : > { %p141_p1 = scmp.lt.s32.totalorder %s995_s12, 3 }
   0x4   : > { %p142_p2 = pnand %p734_p0, %p141_p1 }
   0x5   : > { %s735_s22 = sshll.u32 (!%p142_p2), %s1023_s13, 5  ;;  %p181_p4 = scmp.lt.s32.totalorder (!%p142_p2), %s1023_s13, 1 }
   0x6   : > { %145 = sbr.rel (%p142_p2) target bundleno = 292 (0x124), region = 28  ;;  %p170_p3 = scmp.lt.s32.totalorder (!%p142_p2), %s735_s22, 63 }
   0xb   : > { %v861_v0 = vld [vmem:[%s1224_s1 + $0x38] sm:$0xff]  ;;  %v860_v1 = vld [vmem:[%s1224_s1 + $0x30] sm:$0xff]  ;;  %v859_v2 = vld [vmem:[%s1224_s1 + $0x28] sm:$0xff]  ;;  %s1228_s22 = smov (!%p170_p3, %s735_s22), 63  ;;  %s1230_s13 = smov (!%p181_p4, %s1023_s13), 1 }
   0xc   : > { %377 = vmatpush.bf16.msra.mxu0 %v861_v0  ;;  %957 = vmatpush.bf16.msra.mxu1 %v861_v0  ;;  %v858_v3 = vld [vmem:[%s1224_s1 + $0x20] sm:$0xff]  ;;  %v857_v4 = vld [vmem:[%s1224_s1 + $0x18] sm:$0xff]  ;;  %v856_v5 = vld [vmem:[%s1224_s1 + $0x10] sm:$0xff]  ;;  %s736_s29 = sshll.u32 %s1228_s22, 2  ;;  %s739_s11 = sshll.u32 %s1230_s13, 3 }
   0xd   : > { %958 = vmatpush.bf16.msra.mxu2 %v861_v0  ;;  %959 = vmatpush.bf16.msra.mxu3 %v861_v0  ;;  %v855_v6 = vld [vmem:[%s1224_s1 + $0x8] sm:$0xff]  ;;  %v854_v7 = vld [vmem:[%s1224_s1] sm:$0xff]  ;;  %s1060_s7 = scalar_lea.vmem %s1223_s0, %s736_s29  ;;  %s1087_s10 = scalar_lea.vmem %s1225_s2, %s736_s29 }
   0xe   : > { %v838_v8 = vld [vmem:[%s1060_s7] sm:$0xff]  ;;  %v839_v12 = vld [vmem:[%s1060_s7 + $0x8] sm:$0xff]  ;;  %v840_v16 = vld [vmem:[%s1060_s7 + $0x10] sm:$0xff]  ;;  %s184_s16 = scalar_lea.vmem %s1226_s3, %s739_s11 }
   0xf   : > { %v842_v9 = vld [vmem:[%s1060_s7 + $0x20] sm:$0xff]  ;;  %v843_v13 = vld [vmem:[%s1060_s7 + $0x28] sm:$0xff]  ;;  %v844_v17 = vld [vmem:[%s1060_s7 + $0x30] sm:$0xff] }
  0x10   : > { %378 = vmatpush.bf16.msra.mxu0 %v860_v1  ;;  %960 = vmatpush.bf16.msra.mxu1 %v860_v1  ;;  %v846_v10 = vld [vmem:[%s1060_s7 + $0x40] sm:$0xff]  ;;  %v847_v14 = vld [vmem:[%s1060_s7 + $0x48] sm:$0xff]  ;;  %v848_v18 = vld [vmem:[%s1060_s7 + $0x50] sm:$0xff] }
  0x11   : > { %961 = vmatpush.bf16.msra.mxu2 %v860_v1  ;;  %962 = vmatpush.bf16.msra.mxu3 %v860_v1  ;;  %v850_v11 = vld [vmem:[%s1060_s7 + $0x60] sm:$0xff]  ;;  %v851_v15 = vld [vmem:[%s1060_s7 + $0x68] sm:$0xff]  ;;  %v852_v19 = vld [vmem:[%s1060_s7 + $0x70] sm:$0xff] }
  0x12   : > { %v841_v20 = vld [vmem:[%s1060_s7 + $0x18] sm:$0xff] }
  0x13   : > { %v845_v21 = vld [vmem:[%s1060_s7 + $0x38] sm:$0xff] }
  0x14   : > { %379 = vmatpush.bf16.msra.mxu0 %v859_v2  ;;  %963 = vmatpush.bf16.msra.mxu1 %v859_v2  ;;  %v849_v22 = vld [vmem:[%s1060_s7 + $0x58] sm:$0xff] }
  0x15   : > { %964 = vmatpush.bf16.msra.mxu2 %v859_v2  ;;  %965 = vmatpush.bf16.msra.mxu3 %v859_v2  ;;  %v853_v23 = vld [vmem:[%s1060_s7 + $0x78] sm:$0xff] }
  0x18   : > { %380 = vmatpush.bf16.msra.mxu0 %v858_v3  ;;  %966 = vmatpush.bf16.msra.mxu1 %v858_v3 }
  0x19   : > { %967 = vmatpush.bf16.msra.mxu2 %v858_v3  ;;  %968 = vmatpush.bf16.msra.mxu3 %v858_v3 }
  0x1c   : > { %381 = vmatpush.bf16.msra.mxu0 %v857_v4  ;;  %969 = vmatpush.bf16.msra.mxu1 %v857_v4 }
  0x1d   : > { %970 = vmatpush.bf16.msra.mxu2 %v857_v4  ;;  %971 = vmatpush.bf16.msra.mxu3 %v857_v4 }
  0x20   : > { %382 = vmatpush.bf16.msra.mxu0 %v856_v5  ;;  %972 = vmatpush.bf16.msra.mxu1 %v856_v5 }
  0x21   : > { %973 = vmatpush.bf16.msra.mxu2 %v856_v5  ;;  %974 = vmatpush.bf16.msra.mxu3 %v856_v5 }
  0x24   : > { %383 = vmatpush.bf16.msra.mxu0 %v855_v6  ;;  %975 = vmatpush.bf16.msra.mxu1 %v855_v6 }
  0x25   : > { %976 = vmatpush.bf16.msra.mxu2 %v855_v6  ;;  %977 = vmatpush.bf16.msra.mxu3 %v855_v6 }
  0x28   : > { %384 = vmatpush.bf16.msra.mxu0 %v854_v7  ;;  %978 = vmatpush.bf16.msra.mxu1 %v854_v7 }
  0x29   : > { %979 = vmatpush.bf16.msra.mxu2 %v854_v7  ;;  %980 = vmatpush.bf16.msra.mxu3 %v854_v7 }
  0x2b   : > { %385 = vmatmul.bf16.vlgmr.msra.gmra.mxu0 %v838_v8  ;;  %405 = vmatmul.bf16.vlgmr.msra.gmra.mxu1 %v842_v9 }
  0x2c   : > { %425 = vmatmul.bf16.vlgmr.msra.gmra.mxu2 %v846_v10  ;;  %445 = vmatmul.bf16.vlgmr.msra.gmra.mxu3 %v850_v11 }
  0x3b   : > { %390 = vmatmul.bf16.gmra.mxu0 %v839_v12  ;;  %410 = vmatmul.bf16.gmra.mxu1 %v843_v13 }
  0x3c   : > { %430 = vmatmul.bf16.gmra.mxu2 %v847_v14  ;;  %450 = vmatmul.bf16.gmra.mxu3 %v851_v15 }
  0x4b   : > { %395 = vmatmul.bf16.gmra.mxu0 %v840_v16  ;;  %415 = vmatmul.bf16.gmra.mxu1 %v844_v17 }
  0x4c   : > { %435 = vmatmul.bf16.gmra.mxu2 %v848_v18  ;;  %455 = vmatmul.bf16.gmra.mxu3 %v852_v19 }
  0x5b   : > { %400 = vmatmul.bf16.gmra.mxu0 %v841_v20  ;;  %420 = vmatmul.bf16.gmra.mxu1 %v845_v21 }
  0x5c   : > { %440 = vmatmul.bf16.gmra.mxu2 %v849_v22  ;;  %460 = vmatmul.bf16.gmra.mxu3 %v853_v23 }
  0xa8   : > { %v386_v24 = vpop.f32.mrf.mxu0  ;;  %v1078_v25 = vpop.f32.mrf.mxu1 }
  0xa9   : > { %v567_v57 = vmul.f32 %v386_v24, %v386_v24 }
  0xaf   : > { %v1080_v26 = vpop.f32.mrf.mxu2  ;;  %v1093_v31 = vpop.f32.mrf.mxu3 }
  0xb0   : > { %v388_v27 = vpop.f32.mrf.mxu0  ;;  %v1089_v28 = vpop.f32.mrf.mxu1 }
  0xb1   : > { %v865_v29 = vpack.c.bf16 %v388_v27, %v386_v24  ;;  %v885_v30 = vpack.c.bf16 %v1089_v28, %v1078_v25  ;;  %v568_v56 = vmul.f32 %v388_v27, %v388_v27  ;;  %v530_v59 = vadd.f32 %v388_v27, %v386_v24 }
  0xb2   : > { %v575_v27 = vmul.f32 %v1078_v25, %v1078_v25 }
  0xb3   : > { %866 = vst [vmem:[%s1087_s10] sm:$0xff] %v865_v29   ;;  %v599_v60 = vadd.f32 %v568_v56, %v567_v57 }
  0xb4   : > { %945 = vst [vmem:[%s1087_s10 + $0x20] sm:$0xff] %v885_v30  }
  0xb7   : > { %v1097_v32 = vpop.f32.mrf.mxu2  ;;  %v1103_v36 = vpop.f32.mrf.mxu3 }
  0xb8   : > { %v391_v33 = vpop.f32.mrf.mxu0  ;;  %v1099_v34 = vpop.f32.mrf.mxu1  ;;  %v905_v35 = vpack.c.bf16 %v1097_v32, %v1080_v26  ;;  %v925_v37 = vpack.c.bf16 %v1103_v36, %v1093_v31 }
  0xb9   : > { %v569_v58 = vmul.f32 %v391_v33, %v391_v33  ;;  %v531_v62 = vadd.f32 %v530_v59, %v391_v33 }
  0xba   : > { %949 = vst [vmem:[%s1087_s10 + $0x40] sm:$0xff] %v905_v35  }
  0xbb   : > { %953 = vst [vmem:[%s1087_s10 + $0x60] sm:$0xff] %v925_v37   ;;  %v600_v0 = vadd.f32 %v599_v60, %v569_v58 }
  0xbf   : > { %v1109_v38 = vpop.f32.mrf.mxu2  ;;  %v1115_v43 = vpop.f32.mrf.mxu3 }
  0xc0   : > { %v393_v39 = vpop.f32.mrf.mxu0  ;;  %v1111_v40 = vpop.f32.mrf.mxu1 }
  0xc1   : > { %v870_v41 = vpack.c.bf16 %v393_v39, %v391_v33  ;;  %v890_v42 = vpack.c.bf16 %v1111_v40, %v1099_v34  ;;  %v570_v61 = vmul.f32 %v393_v39, %v393_v39  ;;  %v532_v5 = vadd.f32 %v531_v62, %v393_v39 }
  0xc2   : > { %v576_v33 = vmul.f32 %v1089_v28, %v1089_v28  ;;  %v577_v39 = vmul.f32 %v1099_v34, %v1099_v34 }
  0xc3   : > { %942 = vst [vmem:[%s1087_s10 + $0x8] sm:$0xff] %v870_v41   ;;  %v601_v7 = vadd.f32 %v600_v0, %v570_v61 }
  0xc4   : > { %946 = vst [vmem:[%s1087_s10 + $0x28] sm:$0xff] %v890_v42  }
  0xc7   : > { %v1119_v44 = vpop.f32.mrf.mxu2  ;;  %v1125_v48 = vpop.f32.mrf.mxu3 }
  0xc8   : > { %v396_v45 = vpop.f32.mrf.mxu0  ;;  %v1121_v46 = vpop.f32.mrf.mxu1  ;;  %v910_v47 = vpack.c.bf16 %v1119_v44, %v1109_v38  ;;  %v930_v49 = vpack.c.bf16 %v1125_v48, %v1115_v43 }
  0xc9   : > { %v571_v1 = vmul.f32 %v396_v45, %v396_v45  ;;  %v533_v10 = vadd.f32 %v532_v5, %v396_v45  ;;  %v584_v5 = vmul.f32 %v1097_v32, %v1097_v32 }
  0xca   : > { %950 = vst [vmem:[%s1087_s10 + $0x48] sm:$0xff] %v910_v47  }
  0xcb   : > { %954 = vst [vmem:[%s1087_s10 + $0x68] sm:$0xff] %v930_v49   ;;  %v602_v11 = vadd.f32 %v601_v7, %v571_v1 }
  0xcf   : > { %v1131_v50 = vpop.f32.mrf.mxu2  ;;  %v1137_v55 = vpop.f32.mrf.mxu3 }
  0xd0   : > { %v398_v51 = vpop.f32.mrf.mxu0  ;;  %v1133_v52 = vpop.f32.mrf.mxu1 }
  0xd1   : > { %v875_v53 = vpack.c.bf16 %v398_v51, %v396_v45  ;;  %v895_v54 = vpack.c.bf16 %v1133_v52, %v1121_v46  ;;  %v572_v8 = vmul.f32 %v398_v51, %v398_v51  ;;  %v534_v13 = vadd.f32 %v533_v10, %v398_v51 }
  0xd2   : > { %v586_v10 = vmul.f32 %v1119_v44, %v1119_v44 }
  0xd3   : > { %943 = vst [vmem:[%s1087_s10 + $0x10] sm:$0xff] %v875_v53   ;;  %v603_v14 = vadd.f32 %v602_v11, %v572_v8 }
  0xd4   : > { %947 = vst [vmem:[%s1087_s10 + $0x30] sm:$0xff] %v895_v54   ;;  %v579_v54 = vmul.f32 %v1121_v46, %v1121_v46 }
  0xd7   : > { %v1141_v63 = vpop.f32.mrf.mxu2  ;;  %v1145_v6 = vpop.f32.mrf.mxu3 }
  0xd8   : > { %v401_v2 = vpop.f32.mrf.mxu0  ;;  %v421_v3 = vpop.f32.mrf.mxu1  ;;  %v915_v4 = vpack.c.bf16 %v1141_v63, %v1131_v50  ;;  %v935_v9 = vpack.c.bf16 %v1145_v6, %v1137_v55 }
  0xd9   : > { %v573_v12 = vmul.f32 %v401_v2, %v401_v2  ;;  %v535_v15 = vadd.f32 %v534_v13, %v401_v2  ;;  %v581_v61 = vmul.f32 %v421_v3, %v421_v3 }
  0xda   : > { %951 = vst [vmem:[%s1087_s10 + $0x50] sm:$0xff] %v915_v4  }
  0xdb   : > { %955 = vst [vmem:[%s1087_s10 + $0x70] sm:$0xff] %v935_v9   ;;  %v604_v17 = vadd.f32 %v603_v14, %v573_v12 }
  0xdf   : > { %v441_v16 = vpop.f32.mrf.mxu2  ;;  %v1151_v24 = vpop.f32.mrf.mxu3 }
  0xe0   : > { %v403_v18 = vpop.f32.mrf.mxu0  ;;  %v423_v19 = vpop.f32.mrf.mxu1 }
  0xe1   : > { %v880_v20 = vpack.c.bf16 %v403_v18, %v401_v2  ;;  %v536_v21 = vadd.f32 %v535_v15, %v403_v18  ;;  %v574_v22 = vmul.f32 %v403_v18, %v403_v18  ;;  %v900_v23 = vpack.c.bf16 %v423_v19, %v421_v3 }
  0xe2   : > { %v582_v1 = vmul.f32 %v423_v19, %v423_v19  ;;  %v583_v2 = vmul.f32 %v1080_v26, %v1080_v26  ;;  %v588_v15 = vmul.f32 %v1141_v63, %v1141_v63 }
  0xe3   : > { %944 = vst [vmem:[%s1087_s10 + $0x18] sm:$0xff] %v880_v20   ;;  %v537_v29 = vadd.f32 %v536_v21, %v1078_v25  ;;  %v605_v30 = vadd.f32 %v604_v17, %v574_v22  ;;  %v578_v25 = vmul.f32 %v1111_v40, %v1111_v40 }
  0xe4   : > { %948 = vst [vmem:[%s1087_s10 + $0x38] sm:$0xff] %v900_v23  }
  0xe5   : > { %v538_v35 = vadd.f32 %v537_v29, %v1089_v28  ;;  %v606_v37 = vadd.f32 %v605_v30, %v575_v27 }
  0xe7   : > { %v539_v41 = vadd.f32 %v538_v35, %v1099_v34  ;;  %v607_v42 = vadd.f32 %v606_v37, %v576_v33  ;;  %v443_v45 = vpop.f32.mrf.mxu2  ;;  %v463_v53 = vpop.f32.mrf.mxu3  ;;  %v580_v34 = vmul.f32 %v1133_v52, %v1133_v52  ;;  %v594_v35 = vmul.f32 %v1125_v48, %v1125_v48 }
  0xe8   : > { %v920_v47 = vpack.c.bf16 %v443_v45, %v441_v16  ;;  %v940_v28 = vpack.c.bf16 %v463_v53, %v1151_v24  ;;  %v590_v22 = vmul.f32 %v443_v45, %v443_v45 }
  0xe9   : > { %v608_v49 = vadd.f32 %v607_v42, %v577_v39  ;;  %v540_v51 = vadd.f32 %v539_v41, %v1111_v40  ;;  %v595_v39 = vmul.f32 %v1137_v55, %v1137_v55 }
  0xea   : > { %952 = vst [vmem:[%s1087_s10 + $0x58] sm:$0xff] %v920_v47  }
  0xeb   : > { %v541_v56 = vadd.f32 %v540_v51, %v1121_v46  ;;  %v609_v57 = vadd.f32 %v608_v49, %v578_v25  ;;  %956 = vst [vmem:[%s1087_s10 + $0x78] sm:$0xff] %v940_v28   ;;  %v597_v49 = vmul.f32 %v1151_v24, %v1151_v24  ;;  %v598_v28 = vmul.f32 %v463_v53, %v463_v53 }
  0xed   : > { %v542_v58 = vadd.f32 %v541_v56, %v1133_v52  ;;  %v610_v59 = vadd.f32 %v609_v57, %v579_v54  ;;  %v585_v52 = vmul.f32 %v1109_v38, %v1109_v38 }
  0xef   : > { %v543_v60 = vadd.f32 %v542_v58, %v421_v3  ;;  %v611_v40 = vadd.f32 %v610_v59, %v580_v34  ;;  %v636_v34 = vlaneseq }
  0xf1   : > { %v612_v62 = vadd.f32 %v611_v40, %v581_v61  ;;  %v544_v0 = vadd.f32 %v543_v60, %v423_v19  ;;  %v589_v19 = vmul.f32 %v441_v16, %v441_v16  ;;  %v637_v61 = vshrl.u32 %v636_v34, 7 }
  0xf3   : > { %v545_v4 = vadd.f32 %v544_v0, %v1080_v26  ;;  %v613_v46 = vadd.f32 %v612_v62, %v582_v1  ;;  %v587_v26 = vmul.f32 %v1131_v50, %v1131_v50  ;;  %vm639_vm0 = vcmp.eq.s32.totalorder %v637_v61, 1 }
  0xf4   : > { %vm638_vm1 = vcmp.eq.s32.totalorder %v637_v61, 0 }
  0xf5   : > { %v546_v7 = vadd.f32 %v545_v4, %v1097_v32  ;;  %v614_v8 = vadd.f32 %v613_v46, %v583_v2 }
  0xf7   : > { %v547_v3 = vadd.f32 %v546_v7, %v1109_v38  ;;  %v615_v9 = vadd.f32 %v614_v8, %v584_v5 }
  0xf9   : > { %v616_v11 = vadd.f32 %v615_v9, %v585_v52  ;;  %v548_v12 = vadd.f32 %v547_v3, %v1119_v44  ;;  %v591_v44 = vmul.f32 %v1093_v31, %v1093_v31 }
  0xfb   : > { %v549_v13 = vadd.f32 %v548_v12, %v1131_v50  ;;  %v617_v14 = vadd.f32 %v616_v11, %v586_v10  ;;  %v592_v50 = vmul.f32 %v1103_v36, %v1103_v36 }
  0xfd   : > { %v550_v32 = vadd.f32 %v549_v13, %v1141_v63  ;;  %v618_v17 = vadd.f32 %v617_v14, %v587_v26  ;;  %v593_v63 = vmul.f32 %v1115_v43, %v1115_v43 }
  0xff   : > { %v619_v38 = vadd.f32 %v618_v17, %v588_v15  ;;  %v551_v18 = vadd.f32 %v550_v32, %v441_v16 }
 0x101   : > { %v620_v20 = vadd.f32 %v619_v38, %v589_v19  ;;  %v552_v21 = vadd.f32 %v551_v18, %v443_v45  ;;  %v596_v45 = vmul.f32 %v1145_v6, %v1145_v6 }
 0x103   : > { %v553_v23 = vadd.f32 %v552_v21, %v1093_v31  ;;  %v621_v27 = vadd.f32 %v620_v20, %v590_v22 }
 0x105   : > { %v554_v29 = vadd.f32 %v553_v23, %v1103_v36  ;;  %v622_v30 = vadd.f32 %v621_v27, %v591_v44 }
 0x107   : > { %v555_v16 = vadd.f32 %v554_v29, %v1115_v43  ;;  %v623_v33 = vadd.f32 %v622_v30, %v592_v50 }
 0x109   : > { %v624_v37 = vadd.f32 %v623_v33, %v593_v63  ;;  %v556_v31 = vadd.f32 %v555_v16, %v1125_v48 }
 0x10b   : > { %v557_v41 = vadd.f32 %v556_v31, %v1137_v55  ;;  %v625_v36 = vadd.f32 %v624_v37, %v594_v35 }
 0x10d   : > { %v558_v42 = vadd.f32 %v557_v41, %v1145_v6  ;;  %v626_v43 = vadd.f32 %v625_v36, %v595_v39 }
 0x10f   : > { %v627_v47 = vadd.f32 %v626_v43, %v596_v45  ;;  %v559_v25 = vadd.f32 %v558_v42, %v1151_v24 }
 0x111   : > { %v628_v48 = vadd.f32 %v627_v47, %v597_v49  ;;  %v560_v51 = vadd.f32 %v559_v25, %v463_v53 }
 0x113   : > { %v561_v54 = vrot.slane %v560_v51, 4  ;;  %v629_v56 = vadd.f32 %v628_v48, %v598_v28 }
 0x115   : > { %v562_v55 = vadd.f32 %v561_v54, %v560_v51  ;;  %v630_v57 = vrot.slane %v629_v56, 4 }
 0x117   : > { %v563_v58 = vrot.slane %v562_v55, 2  ;;  %v631_v59 = vadd.f32 %v630_v57, %v629_v56 }
 0x119   : > { %v564_v6 = vadd.f32 %v563_v58, %v562_v55  ;;  %v632_v60 = vrot.slane %v631_v59, 2 }
 0x11b   : > { %v633_v40 = vadd.f32 %v632_v60, %v631_v59  ;;  %v565_v62 = vrot.slane %v564_v6, 1 }
 0x11d   : > { %v634_v0 = vrot.slane %v633_v40, 1  ;;  %v566_v53 = vadd.f32 %v565_v62, %v564_v6 }
 0x11f   : > { %v635_v24 = vadd.f32 %v634_v0, %v633_v40 }
 0x121   : > { %v640_v1 = vsel %vm639_vm0, %v635_v24, 0.0 }
 0x122   : > { %v641_v2 = vsel %vm638_vm1, %v566_v53, %v640_v1 }
 0x123   : > { %642 = vst [vmem:[%s184_s16] sm:$0xff] %v641_v2 }
 0x124 PF: > { %s14_s12 = sadd.s32 1, %s995_s12  }
 0x125   : > { %p11_p5 = scmp.ge.s32.totalorder %s14_s12, 4  }
 0x127   :  { %13 = sbr.rel (!%p11_p5) target bundleno = 1 (0x1), region = 70 }

// kernel: bottleneck_forward.9
= control target key start
LH: loop header
LB: loop body
LE: loop exit
PB: predicated region body
PF: predicated region fallthrough
CT: control target
= control target key end

     0   :  { %s694_s18 = smov 0   ;;  %s756_s0 = inlined_call_operand.vmem [shape: bf16[128,128], index: 0, kind: input, shape index: {}]   ;;  %s757_s1 = inlined_call_operand.vmem [shape: bf16[128,128], index: 1, kind: input, shape index: {}]   ;;  %s758_s2 = inlined_call_operand.vmem [shape: f32[1,128], index: 2, kind: input, shape index: {}]   ;;  %s759_s3 = inlined_call_operand.vmem [shape: f32[1,128], index: 3, kind: input, shape index: {}]   ;;  %s760_s4 = inlined_call_operand.vmem [shape: bf16[128,128], index: 4, kind: output, shape index: {0}]   ;;  %s761_s5 = inlined_call_operand.vmem [shape: f32[16,128], index: 5, kind: output, shape index: {1}]  }
   0x1 LB: > { %s700_s19 = sadd.s32 4294967295, %s662_s18   ;;  %p532_p0 = scmp.ge.s32.totalorder %s662_s18, 1  ;;  %s662_s18 = sphi %s694_s18, %s16_s18  }
   0x2   : > { %p191_p1 = scmp.lt.s32.totalorder %s662_s18, 3 }
   0x4   : > { %p192_p2 = pnand %p532_p0, %p191_p1 }
   0x5   : > { %s533_s22 = sshll.u32 (!%p192_p2), %s700_s19, 3  ;;  %p235_p4 = scmp.lt.s32.totalorder (!%p192_p2), %s700_s19, 1 }
   0x6   : > { %195 = sbr.rel (%p192_p2) target bundleno = 208 (0xd0), region = 36  ;;  %p224_p3 = scmp.lt.s32.totalorder (!%p192_p2), %s533_s22, 15 }
   0xb   : > { %v579_v0 = vld [vmem:[%s757_s1 + $0x38] sm:$0xff]  ;;  %v578_v1 = vld [vmem:[%s757_s1 + $0x30] sm:$0xff]  ;;  %s763_s22 = smov (!%p224_p3, %s533_s22), 15  ;;  %v577_v2 = vld [vmem:[%s757_s1 + $0x28] sm:$0xff]  ;;  %s765_s19 = smov (!%p235_p4, %s700_s19), 1 }
   0xc   : > { %355 = vmatpush.bf16.msra.mxu0 %v579_v0  ;;  %622 = vmatpush.bf16.msra.mxu1 %v579_v0  ;;  %s534_s25 = sshll.u32 %s763_s22, 2  ;;  %v576_v4 = vld [vmem:[%s757_s1 + $0x20] sm:$0xff]  ;;  %v575_v14 = vld [vmem:[%s757_s1 + $0x18] sm:$0xff]  ;;  %v574_v24 = vld [vmem:[%s757_s1 + $0x10] sm:$0xff]  ;;  %s537_s22 = sshll.u32 %s765_s19, 3 }
   0xd   : > { %623 = vmatpush.bf16.msra.mxu2 %v579_v0  ;;  %624 = vmatpush.bf16.msra.mxu3 %v579_v0  ;;  %s227_s30 = scalar_lea.vmem %s756_s0, %s534_s25  ;;  %v654_v9 = vld [vmem:[%s758_s2] ss:$0 sm:$0xff]  ;;  %v573_v33 = vld [vmem:[%s757_s1 + $0x8] sm:$0xff]  ;;  %s233_s26 = scalar_lea.vmem %s760_s4, %s534_s25 }
   0xe   : > { %v581_v3 = vld [vmem:[%s227_s30] sm:$0xff]   ;;  %v616_v5 = vld [vmem:[%s227_s30 + $0x8] sm:$0xff]   ;;  %v617_v6 = vld [vmem:[%s227_s30 + $0x10] sm:$0xff]   ;;  %s238_s28 = scalar_lea.vmem %s761_s5, %s537_s22 }
   0xf   : > { %v618_v7 = vld [vmem:[%s227_s30 + $0x18] sm:$0xff]   ;;  %v582_v8 = vunpack.c.l.bf16 %v581_v3  ;;  %v583_v10 = vunpack.c.h.bf16 %v581_v3  ;;  %v586_v11 = vunpack.c.l.bf16 %v616_v5  ;;  %v587_v12 = vunpack.c.h.bf16 %v616_v5  ;;  %v655_v19 = vld [vmem:[%s759_s3] ss:$0 sm:$0xff] }
  0x10   : > { %356 = vmatpush.bf16.msra.mxu0 %v578_v1  ;;  %625 = vmatpush.bf16.msra.mxu1 %v578_v1  ;;  %v590_v13 = vunpack.c.l.bf16 %v617_v6  ;;  %v591_v15 = vunpack.c.h.bf16 %v617_v6  ;;  %v594_v16 = vunpack.c.l.bf16 %v618_v7  ;;  %v595_v17 = vunpack.c.h.bf16 %v618_v7  ;;  %v572_v41 = vld [vmem:[%s757_s1] sm:$0xff] }
  0x11   : > { %626 = vmatpush.bf16.msra.mxu2 %v578_v1  ;;  %627 = vmatpush.bf16.msra.mxu3 %v578_v1  ;;  %v259_v18 = vmul.f32 %v654_v9, %v582_v8  ;;  %v260_v20 = vmul.f32 %v654_v9, %v583_v10  ;;  %v261_v21 = vmul.f32 %v654_v9, %v586_v11 }
  0x12   : > { %v262_v22 = vmul.f32 %v654_v9, %v587_v12  ;;  %v263_v23 = vmul.f32 %v654_v9, %v590_v13  ;;  %v264_v25 = vmul.f32 %v654_v9, %v591_v15  ;;  %v265_v26 = vmul.f32 %v654_v9, %v594_v16 }
  0x13   : > { %v266_v27 = vmul.f32 %v654_v9, %v595_v17  ;;  %v271_v28 = vadd.f32 %v655_v19, %v259_v18  ;;  %v272_v29 = vadd.f32 %v655_v19, %v260_v20  ;;  %v273_v30 = vadd.f32 %v655_v19, %v261_v21 }
  0x14   : > { %357 = vmatpush.bf16.msra.mxu0 %v577_v2  ;;  %628 = vmatpush.bf16.msra.mxu1 %v577_v2  ;;  %v274_v31 = vadd.f32 %v655_v19, %v262_v22  ;;  %v275_v32 = vadd.f32 %v655_v19, %v263_v23  ;;  %v276_v34 = vadd.f32 %v655_v19, %v264_v25  ;;  %v434_v23 = vlaneseq }
  0x15   : > { %629 = vmatpush.bf16.msra.mxu2 %v577_v2  ;;  %630 = vmatpush.bf16.msra.mxu3 %v577_v2  ;;  %v277_v35 = vadd.f32 %v655_v19, %v265_v26  ;;  %v278_v36 = vadd.f32 %v655_v19, %v266_v27  ;;  %v279_v37 = vmax.f32 %v271_v28, 0.0  ;;  %v280_v38 = vmax.f32 %v272_v29, 0.0 }
  0x16   : > { %v281_v39 = vmax.f32 %v273_v30, 0.0  ;;  %v282_v40 = vmax.f32 %v274_v31, 0.0  ;;  %v283_v42 = vmax.f32 %v275_v32, 0.0  ;;  %v284_v43 = vmax.f32 %v276_v34, 0.0 }
  0x17   : > { %v285_v44 = vmax.f32 %v277_v35, 0.0  ;;  %v286_v45 = vmax.f32 %v278_v36, 0.0  ;;  %v287_v46 = vpack.c.bf16 %v280_v38, %v279_v37  ;;  %v435_v28 = vshrl.u32 %v434_v23, 7 }
  0x18   : > { %358 = vmatpush.bf16.msra.mxu0 %v576_v4  ;;  %631 = vmatpush.bf16.msra.mxu1 %v576_v4  ;;  %v288_v47 = vpack.c.bf16 %v282_v40, %v281_v39  ;;  %v289_v48 = vpack.c.bf16 %v284_v43, %v283_v42 }
  0x19   : > { %632 = vmatpush.bf16.msra.mxu2 %v576_v4  ;;  %633 = vmatpush.bf16.msra.mxu3 %v576_v4  ;;  %v290_v49 = vpack.c.bf16 %v286_v45, %v285_v44  ;;  %vm437_vm0 = vcmp.eq.s32.totalorder %v435_v28, 1  ;;  %vm436_vm1 = vcmp.eq.s32.totalorder %v435_v28, 0 }
  0x1c   : > { %359 = vmatpush.bf16.msra.mxu0 %v575_v14  ;;  %634 = vmatpush.bf16.msra.mxu1 %v575_v14 }
  0x1d   : > { %635 = vmatpush.bf16.msra.mxu2 %v575_v14  ;;  %636 = vmatpush.bf16.msra.mxu3 %v575_v14 }
  0x20   : > { %360 = vmatpush.bf16.msra.mxu0 %v574_v24  ;;  %637 = vmatpush.bf16.msra.mxu1 %v574_v24 }
  0x21   : > { %638 = vmatpush.bf16.msra.mxu2 %v574_v24  ;;  %639 = vmatpush.bf16.msra.mxu3 %v574_v24 }
  0x24   : > { %361 = vmatpush.bf16.msra.mxu0 %v573_v33  ;;  %640 = vmatpush.bf16.msra.mxu1 %v573_v33 }
  0x25   : > { %641 = vmatpush.bf16.msra.mxu2 %v573_v33  ;;  %642 = vmatpush.bf16.msra.mxu3 %v573_v33 }
  0x28   : > { %362 = vmatpush.bf16.msra.mxu0 %v572_v41  ;;  %643 = vmatpush.bf16.msra.mxu1 %v572_v41 }
  0x29   : > { %644 = vmatpush.bf16.msra.mxu2 %v572_v41  ;;  %645 = vmatpush.bf16.msra.mxu3 %v572_v41 }
  0x2b   : > { %363 = vmatmul.bf16.vlgmr.msra.gmra.mxu0 %v287_v46  ;;  %368 = vmatmul.bf16.vlgmr.msra.gmra.mxu1 %v288_v47 }
  0x2c   : > { %373 = vmatmul.bf16.vlgmr.msra.gmra.mxu2 %v289_v48  ;;  %378 = vmatmul.bf16.vlgmr.msra.gmra.mxu3 %v290_v49 }
  0xa8   : > { %v364_v50 = vpop.f32.mrf.mxu0  ;;  %v369_v51 = vpop.f32.mrf.mxu1 }
  0xa9   : > { %v413_v54 = vmul.f32 %v364_v50, %v364_v50  ;;  %v415_v61 = vmul.f32 %v369_v51, %v369_v51 }
  0xaf   : > { %v374_v52 = vpop.f32.mrf.mxu2  ;;  %v379_v53 = vpop.f32.mrf.mxu3 }
  0xb0   : > { %v366_v55 = vpop.f32.mrf.mxu0  ;;  %v371_v56 = vpop.f32.mrf.mxu1  ;;  %v417_v3 = vmul.f32 %v374_v52, %v374_v52  ;;  %v419_v13 = vmul.f32 %v379_v53, %v379_v53 }
  0xb1   : > { %v599_v57 = vpack.c.bf16 %v366_v55, %v364_v50  ;;  %v400_v58 = vadd.f32 %v366_v55, %v364_v50  ;;  %v414_v59 = vmul.f32 %v366_v55, %v366_v55  ;;  %v604_v60 = vpack.c.bf16 %v371_v56, %v369_v51 }
  0xb2   : > { %v416_v1 = vmul.f32 %v371_v56, %v371_v56 }
  0xb3   : > { %600 = vst [vmem:[%s233_s26] sm:$0xff] %v599_v57   ;;  %v421_v62 = vadd.f32 %v414_v59, %v413_v54  ;;  %v401_v63 = vadd.f32 %v400_v58, %v369_v51 }
  0xb4   : > { %619 = vst [vmem:[%s233_s26 + $0x8] sm:$0xff] %v604_v60  }
  0xb5   : > { %v402_v0 = vadd.f32 %v401_v63, %v371_v56  ;;  %v422_v2 = vadd.f32 %v421_v62, %v415_v61 }
  0xb7   : > { %v423_v4 = vadd.f32 %v422_v2, %v416_v1  ;;  %v376_v5 = vpop.f32.mrf.mxu2  ;;  %v403_v6 = vadd.f32 %v402_v0, %v374_v52  ;;  %v381_v7 = vpop.f32.mrf.mxu3 }
  0xb8   : > { %v609_v8 = vpack.c.bf16 %v376_v5, %v374_v52  ;;  %v614_v9 = vpack.c.bf16 %v381_v7, %v379_v53  ;;  %v418_v11 = vmul.f32 %v376_v5, %v376_v5  ;;  %v420_v17 = vmul.f32 %v381_v7, %v381_v7 }
  0xb9   : > { %v404_v10 = vadd.f32 %v403_v6, %v376_v5  ;;  %v424_v12 = vadd.f32 %v423_v4, %v417_v3 }
  0xba   : > { %620 = vst [vmem:[%s233_s26 + $0x10] sm:$0xff] %v609_v8  }
  0xbb   : > { %v425_v14 = vadd.f32 %v424_v12, %v418_v11  ;;  %621 = vst [vmem:[%s233_s26 + $0x18] sm:$0xff] %v614_v9   ;;  %v405_v15 = vadd.f32 %v404_v10, %v379_v53 }
  0xbd   : > { %v406_v16 = vadd.f32 %v405_v15, %v381_v7  ;;  %v426_v18 = vadd.f32 %v425_v14, %v419_v13 }
  0xbf   : > { %v407_v19 = vrot.slane %v406_v16, 4  ;;  %v427_v20 = vadd.f32 %v426_v18, %v420_v17 }
  0xc1   : > { %v408_v21 = vadd.f32 %v407_v19, %v406_v16  ;;  %v428_v22 = vrot.slane %v427_v20, 4 }
  0xc3   : > { %v409_v24 = vrot.slane %v408_v21, 2  ;;  %v429_v25 = vadd.f32 %v428_v22, %v427_v20 }
  0xc5   : > { %v410_v26 = vadd.f32 %v409_v24, %v408_v21  ;;  %v430_v27 = vrot.slane %v429_v25, 2 }
  0xc7   : > { %v431_v29 = vadd.f32 %v430_v27, %v429_v25  ;;  %v411_v30 = vrot.slane %v410_v26, 1 }
  0xc9   : > { %v432_v31 = vrot.slane %v431_v29, 1  ;;  %v412_v33 = vadd.f32 %v411_v30, %v410_v26 }
  0xcb   : > { %v433_v32 = vadd.f32 %v432_v31, %v431_v29 }
  0xcd   : > { %v438_v34 = vsel %vm437_vm0, %v433_v32, 0.0 }
  0xce   : > { %v439_v35 = vsel %vm436_vm1, %v412_v33, %v438_v34 }
  0xcf   : > { %440 = vst [vmem:[%s238_s28] sm:$0xff] %v439_v35 }
  0xd0 PF: > { %s16_s18 = sadd.s32 1, %s662_s18  }
  0xd1   : > { %p13_p5 = scmp.ge.s32.totalorder %s16_s18, 4  }
  0xd3   :  { %15 = sbr.rel (!%p13_p5) target bundleno = 1 (0x1), region = 78 }

// kernel: bottleneck_forward.10
= control target key start
LH: loop header
LB: loop body
LE: loop exit
PB: predicated region body
PF: predicated region fallthrough
CT: control target
= control target key end

     0   :  { %s609_s12 = smov 0   ;;  %s661_s0 = inlined_call_operand.vmem [shape: bf16[128,128], index: 0, kind: input, shape index: {}]   ;;  %s662_s1 = inlined_call_operand.vmem [shape: bf16[128,128], index: 1, kind: input, shape index: {}]   ;;  %s663_s2 = inlined_call_operand.vmem [shape: bf16[128,128], index: 2, kind: output, shape index: {0}]   ;;  %s664_s3 = inlined_call_operand.vmem [shape: f32[16,128], index: 3, kind: output, shape index: {1}]  }
   0x1 LB: > { %s615_s13 = sadd.s32 4294967295, %s587_s12   ;;  %p458_p0 = scmp.ge.s32.totalorder %s587_s12, 1  ;;  %s587_s12 = sphi %s609_s12, %s14_s12  }
   0x2   : > { %p141_p1 = scmp.lt.s32.totalorder %s587_s12, 3 }
   0x4   : > { %p142_p2 = pnand %p458_p0, %p141_p1 }
   0x5   : > { %s459_s22 = sshll.u32 (!%p142_p2), %s615_s13, 3  ;;  %p181_p4 = scmp.lt.s32.totalorder (!%p142_p2), %s615_s13, 1 }
   0x6   : > { %145 = sbr.rel (%p142_p2) target bundleno = 208 (0xd0), region = 28  ;;  %p170_p3 = scmp.lt.s32.totalorder (!%p142_p2), %s459_s22, 15 }
   0xb   : > { %v525_v0 = vld [vmem:[%s662_s1 + $0x38] sm:$0xff]  ;;  %v524_v1 = vld [vmem:[%s662_s1 + $0x30] sm:$0xff]  ;;  %v523_v2 = vld [vmem:[%s662_s1 + $0x28] sm:$0xff]  ;;  %s666_s22 = smov (!%p170_p3, %s459_s22), 15  ;;  %v360_v49 = vlaneseq  ;;  %s668_s13 = smov (!%p181_p4, %s615_s13), 1 }
   0xc   : > { %281 = vmatpush.bf16.msra.mxu0 %v525_v0  ;;  %549 = vmatpush.bf16.msra.mxu1 %v525_v0  ;;  %v522_v3 = vld [vmem:[%s662_s1 + $0x20] sm:$0xff]  ;;  %v521_v4 = vld [vmem:[%s662_s1 + $0x18] sm:$0xff]  ;;  %v520_v5 = vld [vmem:[%s662_s1 + $0x10] sm:$0xff]  ;;  %s460_s29 = sshll.u32 %s666_s22, 2  ;;  %s463_s11 = sshll.u32 %s668_s13, 3 }
   0xd   : > { %550 = vmatpush.bf16.msra.mxu2 %v525_v0  ;;  %551 = vmatpush.bf16.msra.mxu3 %v525_v0  ;;  %v519_v6 = vld [vmem:[%s662_s1 + $0x8] sm:$0xff]  ;;  %v518_v7 = vld [vmem:[%s662_s1] sm:$0xff]  ;;  %s173_s7 = scalar_lea.vmem %s661_s0, %s460_s29  ;;  %s179_s10 = scalar_lea.vmem %s663_s2, %s460_s29  ;;  %v361_v54 = vshrl.u32 %v360_v49, 7 }
   0xe   : > { %v514_v8 = vld [vmem:[%s173_s7] sm:$0xff]  ;;  %v515_v9 = vld [vmem:[%s173_s7 + $0x8] sm:$0xff]  ;;  %v516_v10 = vld [vmem:[%s173_s7 + $0x10] sm:$0xff]  ;;  %s184_s16 = scalar_lea.vmem %s664_s3, %s463_s11 }
   0xf   : > { %v517_v11 = vld [vmem:[%s173_s7 + $0x18] sm:$0xff]  ;;  %vm363_vm0 = vcmp.eq.s32.totalorder %v361_v54, 1  ;;  %vm362_vm1 = vcmp.eq.s32.totalorder %v361_v54, 0 }
  0x10   : > { %282 = vmatpush.bf16.msra.mxu0 %v524_v1  ;;  %552 = vmatpush.bf16.msra.mxu1 %v524_v1 }
  0x11   : > { %553 = vmatpush.bf16.msra.mxu2 %v524_v1  ;;  %554 = vmatpush.bf16.msra.mxu3 %v524_v1 }
  0x14   : > { %283 = vmatpush.bf16.msra.mxu0 %v523_v2  ;;  %555 = vmatpush.bf16.msra.mxu1 %v523_v2 }
  0x15   : > { %556 = vmatpush.bf16.msra.mxu2 %v523_v2  ;;  %557 = vmatpush.bf16.msra.mxu3 %v523_v2 }
  0x18   : > { %284 = vmatpush.bf16.msra.mxu0 %v522_v3  ;;  %558 = vmatpush.bf16.msra.mxu1 %v522_v3 }
  0x19   : > { %559 = vmatpush.bf16.msra.mxu2 %v522_v3  ;;  %560 = vmatpush.bf16.msra.mxu3 %v522_v3 }
  0x1c   : > { %285 = vmatpush.bf16.msra.mxu0 %v521_v4  ;;  %561 = vmatpush.bf16.msra.mxu1 %v521_v4 }
  0x1d   : > { %562 = vmatpush.bf16.msra.mxu2 %v521_v4  ;;  %563 = vmatpush.bf16.msra.mxu3 %v521_v4 }
  0x20   : > { %286 = vmatpush.bf16.msra.mxu0 %v520_v5  ;;  %564 = vmatpush.bf16.msra.mxu1 %v520_v5 }
  0x21   : > { %565 = vmatpush.bf16.msra.mxu2 %v520_v5  ;;  %566 = vmatpush.bf16.msra.mxu3 %v520_v5 }
  0x24   : > { %287 = vmatpush.bf16.msra.mxu0 %v519_v6  ;;  %567 = vmatpush.bf16.msra.mxu1 %v519_v6 }
  0x25   : > { %568 = vmatpush.bf16.msra.mxu2 %v519_v6  ;;  %569 = vmatpush.bf16.msra.mxu3 %v519_v6 }
  0x28   : > { %288 = vmatpush.bf16.msra.mxu0 %v518_v7  ;;  %570 = vmatpush.bf16.msra.mxu1 %v518_v7 }
  0x29   : > { %571 = vmatpush.bf16.msra.mxu2 %v518_v7  ;;  %572 = vmatpush.bf16.msra.mxu3 %v518_v7 }
  0x2b   : > { %289 = vmatmul.bf16.vlgmr.msra.gmra.mxu0 %v514_v8  ;;  %294 = vmatmul.bf16.vlgmr.msra.gmra.mxu1 %v515_v9 }
  0x2c   : > { %299 = vmatmul.bf16.vlgmr.msra.gmra.mxu2 %v516_v10  ;;  %304 = vmatmul.bf16.vlgmr.msra.gmra.mxu3 %v517_v11 }
  0xa8   : > { %v290_v12 = vpop.f32.mrf.mxu0  ;;  %v295_v13 = vpop.f32.mrf.mxu1 }
  0xa9   : > { %v339_v16 = vmul.f32 %v290_v12, %v290_v12  ;;  %v341_v23 = vmul.f32 %v295_v13, %v295_v13 }
  0xaf   : > { %v300_v14 = vpop.f32.mrf.mxu2  ;;  %v305_v15 = vpop.f32.mrf.mxu3 }
  0xb0   : > { %v292_v17 = vpop.f32.mrf.mxu0  ;;  %v297_v18 = vpop.f32.mrf.mxu1  ;;  %v343_v29 = vmul.f32 %v300_v14, %v300_v14  ;;  %v345_v39 = vmul.f32 %v305_v15, %v305_v15 }
  0xb1   : > { %v529_v19 = vpack.c.bf16 %v292_v17, %v290_v12  ;;  %v326_v20 = vadd.f32 %v292_v17, %v290_v12  ;;  %v340_v21 = vmul.f32 %v292_v17, %v292_v17  ;;  %v534_v22 = vpack.c.bf16 %v297_v18, %v295_v13 }
  0xb2   : > { %v342_v27 = vmul.f32 %v297_v18, %v297_v18 }
  0xb3   : > { %530 = vst [vmem:[%s179_s10] sm:$0xff] %v529_v19   ;;  %v347_v24 = vadd.f32 %v340_v21, %v339_v16  ;;  %v327_v25 = vadd.f32 %v326_v20, %v295_v13 }
  0xb4   : > { %546 = vst [vmem:[%s179_s10 + $0x8] sm:$0xff] %v534_v22  }
  0xb5   : > { %v328_v26 = vadd.f32 %v327_v25, %v297_v18  ;;  %v348_v28 = vadd.f32 %v347_v24, %v341_v23 }
  0xb7   : > { %v349_v30 = vadd.f32 %v348_v28, %v342_v27  ;;  %v302_v31 = vpop.f32.mrf.mxu2  ;;  %v329_v32 = vadd.f32 %v328_v26, %v300_v14  ;;  %v307_v33 = vpop.f32.mrf.mxu3 }
  0xb8   : > { %v539_v34 = vpack.c.bf16 %v302_v31, %v300_v14  ;;  %v544_v35 = vpack.c.bf16 %v307_v33, %v305_v15  ;;  %v344_v37 = vmul.f32 %v302_v31, %v302_v31  ;;  %v346_v43 = vmul.f32 %v307_v33, %v307_v33 }
  0xb9   : > { %v330_v36 = vadd.f32 %v329_v32, %v302_v31  ;;  %v350_v38 = vadd.f32 %v349_v30, %v343_v29 }
  0xba   : > { %547 = vst [vmem:[%s179_s10 + $0x10] sm:$0xff] %v539_v34  }
  0xbb   : > { %v351_v40 = vadd.f32 %v350_v38, %v344_v37  ;;  %548 = vst [vmem:[%s179_s10 + $0x18] sm:$0xff] %v544_v35   ;;  %v331_v41 = vadd.f32 %v330_v36, %v305_v15 }
  0xbd   : > { %v332_v42 = vadd.f32 %v331_v41, %v307_v33  ;;  %v352_v44 = vadd.f32 %v351_v40, %v345_v39 }
  0xbf   : > { %v333_v45 = vrot.slane %v332_v42, 4  ;;  %v353_v46 = vadd.f32 %v352_v44, %v346_v43 }
  0xc1   : > { %v334_v47 = vadd.f32 %v333_v45, %v332_v42  ;;  %v354_v48 = vrot.slane %v353_v46, 4 }
  0xc3   : > { %v335_v50 = vrot.slane %v334_v47, 2  ;;  %v355_v51 = vadd.f32 %v354_v48, %v353_v46 }
  0xc5   : > { %v336_v52 = vadd.f32 %v335_v50, %v334_v47  ;;  %v356_v53 = vrot.slane %v355_v51, 2 }
  0xc7   : > { %v357_v55 = vadd.f32 %v356_v53, %v355_v51  ;;  %v337_v56 = vrot.slane %v336_v52, 1 }
  0xc9   : > { %v358_v57 = vrot.slane %v357_v55, 1  ;;  %v338_v59 = vadd.f32 %v337_v56, %v336_v52 }
  0xcb   : > { %v359_v58 = vadd.f32 %v358_v57, %v357_v55 }
  0xcd   : > { %v364_v60 = vsel %vm363_vm0, %v359_v58, 0.0 }
  0xce   : > { %v365_v61 = vsel %vm362_vm1, %v338_v59, %v364_v60 }
  0xcf   : > { %366 = vst [vmem:[%s184_s16] sm:$0xff] %v365_v61 }
  0xd0 PF: > { %s14_s12 = sadd.s32 1, %s587_s12  }
  0xd1   : > { %p11_p5 = scmp.ge.s32.totalorder %s14_s12, 4  }
  0xd3   :  { %13 = sbr.rel (!%p11_p5) target bundleno = 1 (0x1), region = 70 }

// kernel: bottleneck_forward.8
= control target key start
LH: loop header
LB: loop body
LE: loop exit
PB: predicated region body
PF: predicated region fallthrough
CT: control target
= control target key end

     0   :  { %s2333_s12 = smov 0   ;;  %s2859_s0 = inlined_call_operand.vmem [shape: bf16[8,9,9,128], index: 0, kind: input, shape index: {}]   ;;  %s2860_s1 = inlined_call_operand.vmem [shape: bf16[9,128,128], index: 1, kind: input, shape index: {}]   ;;  %s2861_s2 = inlined_call_operand.vmem [shape: bf16[2,64,128], index: 2, kind: output, shape index: {0}]   ;;  %s2862_s3 = inlined_call_operand.vmem [shape: f32[16,128], index: 3, kind: output, shape index: {1}]  }
   0x1 LB: > { %s2339_s13 = sadd.s32 4294967295, %s2311_s12   ;;  %p1687_p0 = scmp.ge.s32.totalorder %s2311_s12, 1  ;;  %s2311_s12 = sphi %s2333_s12, %s14_s12  }
   0x2   : > { %p142_p1 = scmp.lt.s32.totalorder %s2311_s12, 3 }
   0x4   : > { %p143_p2 = pnand %p1687_p0, %p142_p1 }
   0x5   : > { %s1688_s16 = sshll.u32 (!%p143_p2), %s2339_s13, 2  ;;  %p178_p4 = scmp.lt.s32.totalorder (!%p143_p2), %s2339_s13, 1 }
   0x6   : > { %146 = sbr.rel (%p143_p2) target bundleno = 348 (0x15c), region = 28  ;;  %p172_p3 = scmp.lt.s32.totalorder (!%p143_p2), %s1688_s16, 7 }
   0xb   : > { %v2200_v0 = vld [vmem:[%s2860_s1 + $0x78] sm:$0xff]  ;;  %v2199_v2 = vld [vmem:[%s2860_s1 + $0x70] sm:$0xff]  ;;  %s2866_s16 = smov (!%p172_p3, %s1688_s16), 7  ;;  %v2198_v6 = vld [vmem:[%s2860_s1 + $0x68] sm:$0xff]  ;;  %vm476_vm0 = vsmask.f32 3328 }
   0xc   : > { %v2208_v1 = vld [vmem:[%s2860_s1 + $0xb8] sm:$0xff]  ;;  %2280 = vmatpush.bf16.msra.mxu1 %v2200_v0  ;;  %346 = vmatpush.bf16.msra.mxu0 %v2200_v0  ;;  %v2207_v3 = vld [vmem:[%s2860_s1 + $0xb0] sm:$0xff]  ;;  %s2296_s27 = smul.u32 72, %s2866_s16  ;;  %v2206_v7 = vld [vmem:[%s2860_s1 + $0xa8] sm:$0xff]  ;;  %vm477_vm1 = vsmask.f32 7440 }
   0xd   : > { %672 = vmatpush.bf16.msra.mxu2 %v2208_v1  ;;  %v2216_v4 = vld [vmem:[%s2860_s1 + $0xf8] sm:$0xff]  ;;  %v2215_v5 = vld [vmem:[%s2860_s1 + $0xf0] sm:$0xff]  ;;  %v2214_v8 = vld [vmem:[%s2860_s1 + $0xe8] sm:$0xff]  ;;  %s2868_s13 = smov (!%p178_p4, %s2339_s13), 1 }
   0xe   : > { %798 = vmatpush.bf16.msra.mxu3 %v2216_v4  ;;  %s2371_s7 = scalar_lea.vmem %s2859_s0, %s2296_s27  ;;  %v2197_v10 = vld [vmem:[%s2860_s1 + $0x60] sm:$0xff]  ;;  %v2196_v22 = vld [vmem:[%s2860_s1 + $0x58] sm:$0xff]  ;;  %v2195_v35 = vld [vmem:[%s2860_s1 + $0x50] sm:$0xff]  ;;  %s1692_s21 = sshll.u32 %s2868_s13, 3 }
   0xf   : > { %v2377_v9 = vld [vmem:[%s2371_s7] sm:$0xf]  ;;  %v2383_v11 = vld [vmem:[%s2371_s7 + $0x8] sm:$0xf]  ;;  %v188_v13 = vld [vmem:[%s2371_s7 + $0x4] sm:$0x1]  ;;  %s186_s24 = scalar_lea.vmem %s2862_s3, %s1692_s21 }
  0x10   : > { %2281 = vmatpush.bf16.msra.mxu1 %v2199_v2  ;;  %347 = vmatpush.bf16.msra.mxu0 %v2199_v2  ;;  %v2205_v12 = vld [vmem:[%s2860_s1 + $0xa0] sm:$0xff]  ;;  %v480_v14 = vshrl.u32 %v2377_v9, 16  ;;  %v483_v15 = vshll.u32 %v2377_v9, 16  ;;  %v190_v16 = vld [vmem:[%s2371_s7 + $0xc] sm:$0x1]  ;;  %v494_v17 = vshrl.u32 %v2383_v11, 16  ;;  %vm2425_vm2 = vmor %vm476_vm0, %vm477_vm1 }
  0x11   : > { %673 = vmatpush.bf16.msra.mxu2 %v2207_v3  ;;  %v497_v18 = vshll.u32 %v2383_v11, 16  ;;  %v2213_v19 = vld [vmem:[%s2860_s1 + $0xe0] sm:$0xff]  ;;  %v489_v23 = vshll.u32 %v188_v13, 16  ;;  %v2204_v26 = vld [vmem:[%s2860_s1 + $0x98] sm:$0xff]  ;;  %v503_v28 = vshll.u32 %v190_v16, 16  ;;  %v2203_v39 = vld [vmem:[%s2860_s1 + $0x90] sm:$0xff] }
  0x12   : > { %799 = vmatpush.bf16.msra.mxu3 %v2215_v5  ;;  %v482_v20 = vrot.slane %v480_v14, 4  ;;  %v485_v21 = vrot.slane %v483_v15, 5  ;;  %v496_v24 = vrot.slane %v494_v17, 4  ;;  %v2404_v29 = vld [vmem:[%s2371_s7 + $0x10] sm:$0xf]  ;;  %v2212_v34 = vld [vmem:[%s2860_s1 + $0xd8] sm:$0xff] }
  0x13   : > { %v499_v25 = vrot.slane %v497_v18, 5  ;;  %v192_v30 = vld [vmem:[%s2371_s7 + $0x14] sm:$0x1]  ;;  %v508_v32 = vshrl.u32 %v2404_v29, 16  ;;  %v511_v33 = vshll.u32 %v2404_v29, 16  ;;  %v491_v36 = vrot.slane %v489_v23, 5 }
  0x14   : > { %2282 = vmatpush.bf16.msra.mxu1 %v2198_v6  ;;  %348 = vmatpush.bf16.msra.mxu0 %v2198_v6  ;;  %v486_v27 = vor.u32 %v485_v21, %v482_v20  ;;  %v2416_v37 = vld [vmem:[%s2371_s7 + $0x18] sm:$0xf]  ;;  %v517_v38 = vshll.u32 %v192_v30, 16  ;;  %v505_v42 = vrot.slane %v503_v28, 5  ;;  %v2422_v44 = vld [vmem:[%s2371_s7 + $0x68] sm:$0xf] }
  0x15   : > { %674 = vmatpush.bf16.msra.mxu2 %v2206_v7  ;;  %v500_v31 = vor.u32 %v499_v25, %v496_v24  ;;  %v510_v43 = vrot.slane %v508_v32, 4  ;;  %v513_v46 = vrot.slane %v511_v33, 5  ;;  %v2430_v47 = vld [vmem:[%s2371_s7 + $0x70] sm:$0xf]  ;;  %v522_v49 = vshrl.u32 %v2416_v37, 16  ;;  %v2194_v51 = vld [vmem:[%s2860_s1 + $0x48] sm:$0xff] }
  0x16   : > { %800 = vmatpush.bf16.msra.mxu3 %v2214_v8  ;;  %v487_v40 = vrot.slane %v486_v27, 4  ;;  %v2211_v48 = vld [vmem:[%s2860_s1 + $0xd0] sm:$0xff]  ;;  %v525_v50 = vshll.u32 %v2416_v37, 16  ;;  %v1693_v52 = vld [vmem:[%s2371_s7 + $0x48] sm:$0xf]  ;;  %v519_v55 = vrot.slane %v517_v38, 5  ;;  %v286_v59 = vunpack.c.l.b16 %v2422_v44 }
  0x17   : > { %v501_v41 = vrot.slane %v500_v31, 4  ;;  %v2442_v53 = vld [vmem:[%s2371_s7 + $0x50] sm:$0xf]  ;;  %v514_v54 = vor.u32 %v513_v46, %v510_v43  ;;  %v2202_v56 = vld [vmem:[%s2860_s1 + $0x88] sm:$0xff]  ;;  %v287_v60 = vunpack.c.l.b16 %v2430_v47  ;;  %v282_v62 = vunpack.c.l.b16 %v1693_v52  ;;  %v2193_v3 = vld [vmem:[%s2860_s1 + $0x40] sm:$0xff] }
  0x18   : > { %2283 = vmatpush.bf16.msra.mxu1 %v2197_v10  ;;  %349 = vmatpush.bf16.msra.mxu0 %v2197_v10  ;;  %v492_v57 = vsel %vm2425_vm2, %v487_v40, %v491_v36  ;;  %v283_v63 = vunpack.c.l.b16 %v2442_v53  ;;  %v2210_v0 = vld [vmem:[%s2860_s1 + $0xc8] sm:$0xff]  ;;  %v524_v1 = vrot.slane %v522_v49, 4  ;;  %v527_v2 = vrot.slane %v525_v50, 5  ;;  %v194_v6 = vld [vmem:[%s2371_s7 + $0x1c] sm:$0x1]  ;;  %v2201_v10 = vld [vmem:[%s2860_s1 + $0x80] sm:$0xff] }
  0x19   : > { %675 = vmatpush.bf16.msra.mxu2 %v2205_v12  ;;  %v506_v58 = vsel %vm2425_vm2, %v501_v41, %v505_v42  ;;  %v515_v61 = vrot.slane %v514_v54, 4  ;;  %v608_v4 = vunpack.c.l.b16 %v492_v57  ;;  %v2192_v8 = vld [vmem:[%s2860_s1 + $0x38] sm:$0xff]  ;;  %v292_v13 = vpack.c.b16 %v287_v60, %v286_v59  ;;  %v2209_v21 = vld [vmem:[%s2860_s1 + $0xc0] sm:$0xff]  ;;  %v2191_v24 = vld [vmem:[%s2860_s1 + $0x30] sm:$0xff] }
  0x1a   : > { %801 = vmatpush.bf16.msra.mxu3 %v2213_v19  ;;  %v2460_v5 = vunpack.c.l.b16 %v506_v58  ;;  %v2224_v14 = vld [vmem:[%s2860_s1 + $0x138] sm:$0xff]  ;;  %v290_v16 = vpack.c.b16 %v283_v63, %v282_v62  ;;  %v528_v17 = vor.u32 %v527_v2, %v524_v1  ;;  %v531_v18 = vshll.u32 %v194_v6, 16  ;;  %v2239_v27 = vld [vmem:[%s2860_s1 + $0x1b0] sm:$0xff]  ;;  %v2190_v32 = vld [vmem:[%s2860_s1 + $0x28] sm:$0xff] }
  0x1b   : > { %v520_v7 = vsel %vm2425_vm2, %v515_v61, %v519_v55  ;;  %v2240_v15 = vld [vmem:[%s2860_s1 + $0x1b8] sm:$0xff]  ;;  %v2247_v33 = vld [vmem:[%s2860_s1 + $0x1f0] sm:$0xff]  ;;  %v2222_v36 = vld [vmem:[%s2860_s1 + $0x128] sm:$0xff] }
  0x1c   : > { %2284 = vmatpush.bf16.msra.mxu1 %v2196_v22  ;;  %350 = vmatpush.bf16.msra.mxu0 %v2196_v22  ;;  %v2471_v12 = vunpack.c.l.b16 %v520_v7  ;;  %v616_v20 = vpack.c.b16 %v2460_v5, %v608_v4  ;;  %v1872_v22 = vld [vmem:[%s2371_s7 + $0x90] sm:$0xf]  ;;  %v2177_v23 = vld [vmem:[%s2371_s7 + $0x94] sm:$0xf0]  ;;  %v529_v30 = vrot.slane %v528_v17, 4  ;;  %v533_v31 = vrot.slane %v531_v18, 5 }
  0x1d   : > { %676 = vmatpush.bf16.msra.mxu2 %v2204_v26  ;;  %v2248_v25 = vld [vmem:[%s2860_s1 + $0x1f8] sm:$0xff]  ;;  %v2223_v26 = vld [vmem:[%s2860_s1 + $0x130] sm:$0xff]  ;;  %v1873_v28 = vor.u32 %v2177_v23, %v1872_v22  ;;  %v2238_v38 = vld [vmem:[%s2860_s1 + $0x1a8] sm:$0xff] }
  0x1e   : > { %802 = vmatpush.bf16.msra.mxu3 %v2212_v34  ;;  %v1447_v19 = vpack.c.b16 %v2471_v12, %v2460_v5  ;;  %v2512_v34 = vld [vmem:[%s2371_s7 + $0x20] sm:$0xf]  ;;  %v2530_v41 = vld [vmem:[%s2371_s7 + $0x58] sm:$0xf]  ;;  %v534_v42 = vsel %vm2425_vm2, %v529_v30, %v533_v31  ;;  %v2246_v52 = vld [vmem:[%s2860_s1 + $0x1e8] sm:$0xff] }
  0x1f   : > { %v2527_v40 = vld [vmem:[%s2371_s7 + $0x80] sm:$0xf]  ;;  %v536_v46 = vshrl.u32 %v2512_v34, 16  ;;  %v284_v58 = vunpack.c.l.b16 %v2530_v41  ;;  %v2557_v62 = vunpack.c.l.b16 %v534_v42  ;;  %v2188_v4 = vld [vmem:[%s2860_s1 + $0x18] sm:$0xff]  ;;  %v196_v6 = vld [vmem:[%s2371_s7 + $0x24] sm:$0x1] }
  0x20   : > { %2285 = vmatpush.bf16.msra.mxu1 %v2195_v35  ;;  %351 = vmatpush.bf16.msra.mxu0 %v2195_v35  ;;  %v2515_v35 = vld [vmem:[%s2371_s7 + $0x28] sm:$0xf]  ;;  %v2535_v43 = vld [vmem:[%s2371_s7 + $0x60] sm:$0xf]  ;;  %v289_v57 = vunpack.c.l.b16 %v2527_v40  ;;  %v198_v7 = vld [vmem:[%s2371_s7 + $0x2c] sm:$0x1] }
  0x21   : > { %677 = vmatpush.bf16.msra.mxu2 %v2203_v39  ;;  %v2524_v39 = vld [vmem:[%s2371_s7 + $0x78] sm:$0xf]  ;;  %v550_v49 = vshrl.u32 %v2515_v35, 16  ;;  %v553_v50 = vshll.u32 %v2515_v35, 16  ;;  %v2221_v55 = vld [vmem:[%s2860_s1 + $0x120] sm:$0xff]  ;;  %v285_v61 = vunpack.c.l.b16 %v2535_v43  ;;  %v545_v18 = vshll.u32 %v196_v6, 16 }
  0x22   : > { %803 = vmatpush.bf16.msra.mxu3 %v2211_v48  ;;  %v539_v48 = vshll.u32 %v2512_v34, 16  ;;  %v288_v54 = vunpack.c.l.b16 %v2524_v39  ;;  %v2187_v22 = vld [vmem:[%s2860_s1 + $0x10] sm:$0xff]  ;;  %v2186_v31 = vld [vmem:[%s2860_s1 + $0x8] sm:$0xff]  ;;  %v1936_v6 = vld [vmem:[%s2371_s7 + $0xd8] sm:$0xf] }
  0x23   : > { %v552_v2 = vrot.slane %v550_v49, 4  ;;  %v2219_v23 = vld [vmem:[%s2860_s1 + $0x110] sm:$0xff]  ;;  %v2244_v49 = vld [vmem:[%s2860_s1 + $0x1d8] sm:$0xff] }
  0x24   : > { %2286 = vmatpush.bf16.msra.mxu1 %v2194_v51  ;;  %352 = vmatpush.bf16.msra.mxu0 %v2194_v51  ;;  %v2189_v51 = vld [vmem:[%s2860_s1 + $0x20] sm:$0xff]  ;;  %v541_v1 = vrot.slane %v539_v48, 5  ;;  %v2235_v42 = vld [vmem:[%s2860_s1 + $0x190] sm:$0xff] }
  0x25   : > { %678 = vmatpush.bf16.msra.mxu2 %v2202_v56  ;;  %v2237_v56 = vld [vmem:[%s2860_s1 + $0x1a0] sm:$0xff] }
  0x26   : > { %804 = vmatpush.bf16.msra.mxu3 %v2210_v0  ;;  %v538_v0 = vrot.slane %v536_v46, 4 }
  0x28   : > { %2287 = vmatpush.bf16.msra.mxu1 %v2193_v3  ;;  %353 = vmatpush.bf16.msra.mxu0 %v2193_v3  ;;  %v555_v3 = vrot.slane %v553_v50, 5  ;;  %v542_v17 = vor.u32 %v541_v1, %v538_v0  ;;  %v2185_v50 = vld [vmem:[%s2860_s1] sm:$0xff]  ;;  %v2232_v0 = vld [vmem:[%s2860_s1 + $0x178] sm:$0xff] }
  0x29   : > { %679 = vmatpush.bf16.msra.mxu2 %v2201_v10  ;;  %v293_v10 = vpack.c.b16 %v289_v57, %v288_v54  ;;  %v2217_v1 = vld [vmem:[%s2860_s1 + $0x100] sm:$0xff] }
  0x2a   : > { %805 = vmatpush.bf16.msra.mxu3 %v2209_v21  ;;  %v559_v21 = vshll.u32 %v198_v7, 16  ;;  %v2181_v7 = vld [vmem:[%s2371_s7 + $0xdc] sm:$0xf0] }
  0x2b   : > { %364 = vmatmul.bf16.vlgmr.msra.gmra.mxu1 %v292_v13  ;;  %354 = vmatmul.bf16.vlgmr.msra.gmra.mxu0 %v290_v16  ;;  %v291_v13 = vpack.c.b16 %v285_v61, %v284_v58  ;;  %v2178_v16 = vld [vmem:[%s2371_s7 + $0xa4] sm:$0xf0] }
  0x2c   : > { %447 = vmatpush.bf16.msrb.mxu1 %v2192_v8  ;;  %924 = vmatpush.bf16.msrb.mxu0 %v2224_v14  ;;  %v2220_v8 = vld [vmem:[%s2860_s1 + $0x118] sm:$0xff]  ;;  %v617_v14 = vpack.c.b16 %v2557_v62, %v2471_v12  ;;  %v561_v30 = vrot.slane %v559_v21, 5  ;;  %v1937_v21 = vor.u32 %v2181_v7, %v1936_v6  ;;  %v385_v7 = vunpack.c.l.b16 %v2404_v29 }
  0x2d   : > { %1266 = vmatpush.bf16.msrb.mxu2 %v2240_v15  ;;  %806 = vmatmul.bf16.vlgmr.msra.gmra.mxu3 %v1873_v28  ;;  %v1876_v15 = vld [vmem:[%s2371_s7 + $0xa0] sm:$0xf]  ;;  %v2228_v6 = vld [vmem:[%s2860_s1 + $0x158] sm:$0xff] }
  0x2e   : > { %680 = vmatmul.bf16.vlgmr.msra.gmra.mxu2 %v616_v20  ;;  %1378 = vmatpush.bf16.msrb.mxu3 %v2248_v25  ;;  %v556_v20 = vor.u32 %v555_v3, %v552_v2  ;;  %v2236_v25 = vld [vmem:[%s2860_s1 + $0x198] sm:$0xff]  ;;  %v383_v2 = vunpack.c.l.b16 %v2377_v9  ;;  %v384_v3 = vunpack.c.l.b16 %v2383_v11 }
  0x30   : > { %448 = vmatpush.bf16.msrb.mxu1 %v2191_v24  ;;  %925 = vmatpush.bf16.msrb.mxu0 %v2223_v26  ;;  %v1877_v24 = vor.u32 %v2178_v16, %v1876_v15  ;;  %v543_v26 = vrot.slane %v542_v17, 4  ;;  %v557_v28 = vrot.slane %v556_v20, 4  ;;  %v2231_v16 = vld [vmem:[%s2860_s1 + $0x170] sm:$0xff]  ;;  %v391_v20 = vpack.c.b16 %v384_v3, %v383_v2 }
  0x31   : > { %1267 = vmatpush.bf16.msrb.mxu2 %v2239_v27  ;;  %v547_v27 = vrot.slane %v545_v18, 5  ;;  %v200_v17 = vld [vmem:[%s2371_s7 + $0x34] sm:$0x1]  ;;  %v202_v18 = vld [vmem:[%s2371_s7 + $0x3c] sm:$0x1] }
  0x32   : > { %1379 = vmatpush.bf16.msrb.mxu3 %v2247_v33  ;;  %v2218_v33 = vld [vmem:[%s2860_s1 + $0x108] sm:$0xff]  ;;  %v562_v48 = vsel %vm2425_vm2, %v557_v28, %v561_v30  ;;  %v587_v30 = vshll.u32 %v202_v18, 16 }
  0x33   : > { %v548_v46 = vsel %vm2425_vm2, %v543_v26, %v547_v27  ;;  %v573_v27 = vshll.u32 %v200_v17, 16  ;;  %v2227_v17 = vld [vmem:[%s2860_s1 + $0x150] sm:$0xff] }
  0x34   : > { %449 = vmatpush.bf16.msrb.mxu1 %v2190_v32  ;;  %926 = vmatpush.bf16.msrb.mxu0 %v2222_v36  ;;  %v2245_v32 = vld [vmem:[%s2860_s1 + $0x1e0] sm:$0xff]  ;;  %v2598_v36 = vld [vmem:[%s2371_s7 + $0x30] sm:$0xf] }
  0x35   : > { %1268 = vmatpush.bf16.msrb.mxu2 %v2238_v38  ;;  %v2601_v38 = vld [vmem:[%s2371_s7 + $0x38] sm:$0xf] }
  0x36   : > { %1380 = vmatpush.bf16.msrb.mxu3 %v2246_v52  ;;  %v567_v52 = vshll.u32 %v2598_v36, 16 }
  0x38   : > { %450 = vmatpush.bf16.msrb.mxu1 %v2189_v51  ;;  %927 = vmatpush.bf16.msrb.mxu0 %v2221_v55  ;;  %v564_v51 = vshrl.u32 %v2598_v36, 16  ;;  %v578_v55 = vshrl.u32 %v2601_v38, 16  ;;  %v569_v9 = vrot.slane %v567_v52, 5  ;;  %v2243_v52 = vld [vmem:[%s2860_s1 + $0x1d0] sm:$0xff] }
  0x39   : > { %1269 = vmatpush.bf16.msrb.mxu2 %v2237_v56  ;;  %v581_v56 = vshll.u32 %v2601_v38, 16 }
  0x3a   : > { %1381 = vmatpush.bf16.msrb.mxu3 %v2245_v32  ;;  %v2234_v32 = vld [vmem:[%s2860_s1 + $0x188] sm:$0xff] }
  0x3b   : > { %369 = vmatmul.bf16.gmra.mxu1 %v293_v10  ;;  %359 = vmatmul.bf16.gmra.mxu0 %v291_v13  ;;  %v2635_v10 = vunpack.c.l.b16 %v562_v48  ;;  %v566_v13 = vrot.slane %v564_v51, 4  ;;  %v583_v15 = vrot.slane %v581_v56, 5  ;;  %v575_v48 = vrot.slane %v573_v27, 5  ;;  %v2233_v51 = vld [vmem:[%s2860_s1 + $0x180] sm:$0xff] }
  0x3c   : > { %451 = vmatpush.bf16.msrb.mxu1 %v2188_v4  ;;  %928 = vmatpush.bf16.msrb.mxu0 %v2220_v8  ;;  %v2256_v4 = vld [vmem:[%s2860_s1 + $0x238] sm:$0xff]  ;;  %v2633_v8 = vunpack.c.l.b16 %v548_v46  ;;  %v2253_v56 = vld [vmem:[%s2860_s1 + $0x220] sm:$0xff] }
  0x3d   : > { %1270 = vmatpush.bf16.msrb.mxu2 %v2236_v25  ;;  %811 = vmatmul.bf16.gmra.mxu3 %v1877_v24  ;;  %v2179_v24 = vld [vmem:[%s2371_s7 + $0xb4] sm:$0xf0]  ;;  %v2255_v25 = vld [vmem:[%s2860_s1 + $0x230] sm:$0xff]  ;;  %v570_v26 = vor.u32 %v569_v9, %v566_v13  ;;  %v386_v13 = vunpack.c.l.b16 %v2416_v37  ;;  %v1940_v9 = vld [vmem:[%s2371_s7 + $0xe8] sm:$0xf] }
  0x3e   : > { %685 = vmatmul.bf16.gmra.mxu2 %v617_v14  ;;  %1382 = vmatpush.bf16.msrb.mxu3 %v2244_v49  ;;  %v580_v14 = vrot.slane %v578_v55, 4  ;;  %v2229_v55 = vld [vmem:[%s2860_s1 + $0x160] sm:$0xff] }
  0x3f   : > { %v571_v46 = vrot.slane %v570_v26, 4  ;;  %v2251_v26 = vld [vmem:[%s2860_s1 + $0x210] sm:$0xff]  ;;  %v2225_v27 = vld [vmem:[%s2860_s1 + $0x140] sm:$0xff] }
  0x40   : > { %452 = vmatpush.bf16.msrb.mxu1 %v2187_v22  ;;  %929 = vmatpush.bf16.msrb.mxu0 %v2219_v23  ;;  %v618_v22 = vpack.c.b16 %v2635_v10, %v2633_v8  ;;  %v1880_v23 = vld [vmem:[%s2371_s7 + $0xb0] sm:$0xf]  ;;  %v584_v28 = vor.u32 %v583_v15, %v580_v14 }
  0x41   : > { %1271 = vmatpush.bf16.msrb.mxu2 %v2235_v42  ;;  %v2254_v42 = vld [vmem:[%s2860_s1 + $0x228] sm:$0xff]  ;;  %v2182_v14 = vld [vmem:[%s2371_s7 + $0xec] sm:$0xf0] }
  0x42   : > { %v585_v49 = vrot.slane %v584_v28, 4  ;;  %1383 = vmatpush.bf16.msrb.mxu3 %v2243_v52  ;;  %v1941_v29 = vor.u32 %v2182_v14, %v1940_v9  ;;  %v2250_v28 = vld [vmem:[%s2860_s1 + $0x208] sm:$0xff] }
  0x44   : > { %453 = vmatpush.bf16.msrb.mxu1 %v2186_v31  ;;  %930 = vmatpush.bf16.msrb.mxu0 %v2218_v33  ;;  %v2230_v31 = vld [vmem:[%s2860_s1 + $0x168] sm:$0xff]  ;;  %v1881_v33 = vor.u32 %v2179_v24, %v1880_v23  ;;  %v2252_v24 = vld [vmem:[%s2860_s1 + $0x218] sm:$0xff] }
  0x45   : > { %1272 = vmatpush.bf16.msrb.mxu2 %v2234_v32  ;;  %v2226_v23 = vld [vmem:[%s2860_s1 + $0x148] sm:$0xff]  ;;  %v1944_v32 = vld [vmem:[%s2371_s7 + $0xf8] sm:$0xf] }
  0x48   : > { %454 = vmatpush.bf16.msrb.mxu1 %v2185_v50  ;;  %931 = vmatpush.bf16.msrb.mxu0 %v2217_v1  ;;  %v589_v50 = vrot.slane %v587_v30, 5  ;;  %v576_v1 = vsel %vm2425_vm2, %v571_v46, %v575_v48  ;;  %v387_v30 = vunpack.c.l.b16 %v2512_v34  ;;  %v1210_v48 = vpack.c.b16 %v385_v7, %v384_v3 }
  0x49   : > { %1273 = vmatpush.bf16.msrb.mxu2 %v2233_v51  ;;  %v2686_v15 = vunpack.c.l.b16 %v576_v1  ;;  %v1322_v34 = vpack.c.b16 %v284_v58, %v283_v63  ;;  %v2249_v51 = vld [vmem:[%s2860_s1 + $0x200] sm:$0xff]  ;;  %v1703_v1 = vld [vmem:[%s2371_s7 + $0x94] sm:$0x1] }
  0x4a   : > { %v590_v2 = vsel %vm2425_vm2, %v585_v49, %v589_v50  ;;  %v1702_v49 = vld [vmem:[%s2371_s7 + $0x90] sm:$0xf]  ;;  %v1704_v50 = vld [vmem:[%s2371_s7 + $0x98] sm:$0xf]  ;;  %v971_v14 = vshll.u32 %v1703_v1, 16 }
  0x4b   : > { %455 = vmatmul.bf16.vlgmr.msrb.gmra.mxu1 %v391_v20  ;;  %932 = vmatmul.bf16.vlgmr.msrb.gmra.mxu0 %v1937_v21  ;;  %v1884_v20 = vld [vmem:[%s2371_s7 + $0xc0] sm:$0xf]  ;;  %v2180_v21 = vld [vmem:[%s2371_s7 + $0xc4] sm:$0xf0]  ;;  %v962_v11 = vshrl.u32 %v1702_v49, 16  ;;  %v965_v3 = vshll.u32 %v1702_v49, 16 }
  0x4c   : > { %1154 = vmatpush.bf16.msra.mxu1 %v2232_v0  ;;  %1503 = vmatpush.bf16.msra.mxu0 %v2256_v4  ;;  %v2242_v0 = vld [vmem:[%s2860_s1 + $0x1c8] sm:$0xff]  ;;  %v976_v52 = vshrl.u32 %v1704_v50, 16  ;;  %v203_v1 = vld [vmem:[%s2371_s7 + $0x40] sm:$0xf] }
  0x4d   : > { %816 = vmatmul.bf16.gmra.mxu3 %v1881_v33  ;;  %2288 = vmatpush.bf16.msra.mxu2 %v2256_v4  ;;  %v392_v4 = vpack.c.b16 %v386_v13, %v385_v7  ;;  %v2183_v33 = vld [vmem:[%s2371_s7 + $0xfc] sm:$0xf0]  ;;  %v964_v53 = vrot.slane %v962_v11, 4  ;;  %v967_v63 = vrot.slane %v965_v3, 5  ;;  %v2184_v7 = vld [vmem:[%s2371_s7 + $0x10c] sm:$0xf0] }
  0x4e   : > { %690 = vmatmul.bf16.gmra.mxu2 %v618_v22  ;;  %1384 = vmatpush.bf16.msrb.mxu3 %v2242_v0  ;;  %v1885_v22 = vor.u32 %v2180_v21, %v1884_v20  ;;  %v1945_v46 = vor.u32 %v2183_v33, %v1944_v32  ;;  %v978_v41 = vrot.slane %v976_v52, 4  ;;  %v390_v0 = vunpack.c.l.b16 %v2601_v38 }
  0x4f   : > { %v968_v9 = vor.u32 %v967_v63, %v964_v53  ;;  %v1211_v20 = vpack.c.b16 %v387_v30, %v386_v13  ;;  %v973_v21 = vrot.slane %v971_v14, 5 }
  0x50   : > { %1155 = vmatpush.bf16.msra.mxu1 %v2231_v16  ;;  %1504 = vmatpush.bf16.msra.mxu0 %v2255_v25  ;;  %v2688_v16 = vunpack.c.l.b16 %v590_v2  ;;  %v1705_v2 = vld [vmem:[%s2371_s7 + $0x9c] sm:$0x1] }
  0x51   : > { %2289 = vmatpush.bf16.msra.mxu2 %v2255_v25  ;;  %v2241_v25 = vld [vmem:[%s2860_s1 + $0x1c0] sm:$0xff] }
  0x52   : > { %v619_v18 = vpack.c.b16 %v2688_v16, %v2686_v15  ;;  %1385 = vmatpush.bf16.msrb.mxu3 %v2241_v25  ;;  %v1706_v25 = vld [vmem:[%s2371_s7 + $0xa0] sm:$0xf] }
  0x54   : > { %1156 = vmatpush.bf16.msra.mxu1 %v2230_v31  ;;  %1505 = vmatpush.bf16.msra.mxu0 %v2254_v42  ;;  %v388_v31 = vunpack.c.l.b16 %v2515_v35  ;;  %v1712_v35 = vld [vmem:[%s2371_s7 + $0xb8] sm:$0xf] }
  0x55   : > { %2290 = vmatpush.bf16.msra.mxu2 %v2254_v42  ;;  %v1035_v12 = vshll.u32 %v1712_v35, 16 }
  0x56   : > { %v393_v42 = vpack.c.b16 %v388_v31, %v387_v30 }
  0x58   : > { %1157 = vmatpush.bf16.msra.mxu1 %v2229_v55  ;;  %1506 = vmatpush.bf16.msra.mxu0 %v2253_v56  ;;  %v979_v55 = vshll.u32 %v1704_v50, 16 }
  0x59   : > { %2291 = vmatpush.bf16.msra.mxu2 %v2253_v56  ;;  %v389_v56 = vunpack.c.l.b16 %v2598_v36  ;;  %v969_v36 = vrot.slane %v968_v9, 4 }
  0x5a   : > { %v981_v58 = vrot.slane %v979_v55, 5 }
  0x5b   : > { %460 = vmatmul.bf16.gmra.mxu1 %v392_v4  ;;  %937 = vmatmul.bf16.gmra.mxu0 %v1941_v29  ;;  %v985_v4 = vshll.u32 %v1705_v2, 16  ;;  %v394_v29 = vpack.c.b16 %v390_v0, %v389_v56  ;;  %v974_v37 = vsel %vm2425_vm2, %v969_v36, %v973_v21  ;;  %v1212_v3 = vpack.c.b16 %v389_v56, %v388_v31  ;;  %v1713_v36 = vld [vmem:[%s2371_s7 + $0xbc] sm:$0x1]  ;;  %v1701_v21 = vld [vmem:[%s2371_s7 + $0x88] sm:$0xf] }
  0x5c   : > { %1158 = vmatpush.bf16.msra.mxu1 %v2228_v6  ;;  %1507 = vmatpush.bf16.msra.mxu0 %v2252_v24  ;;  %v1948_v6 = vld [vmem:[%s2371_s7 + $0x108] sm:$0xf]  ;;  %v1090_v33 = vunpack.c.l.b16 %v974_v37  ;;  %v1416_v31 = vshrl.u32 %v203_v1, 16  ;;  %v1419_v56 = vshll.u32 %v203_v1, 16 }
  0x5d   : > { %821 = vmatmul.bf16.gmra.mxu3 %v1885_v22  ;;  %2292 = vmatpush.bf16.msra.mxu2 %v2252_v24  ;;  %v1323_v24 = vpack.c.b16 %v286_v59, %v285_v61 }
  0x5e   : > { %695 = vmatmul.bf16.gmra.mxu2 %v619_v18  ;;  %v1949_v18 = vor.u32 %v2184_v7, %v1948_v6  ;;  %v1421_v39 = vrot.slane %v1419_v56, 5 }
  0x60   : > { %1159 = vmatpush.bf16.msra.mxu1 %v2227_v17  ;;  %1508 = vmatpush.bf16.msra.mxu0 %v2251_v26  ;;  %v982_v17 = vor.u32 %v981_v58, %v978_v41  ;;  %v1324_v41 = vpack.c.b16 %v288_v54, %v287_v60  ;;  %v1710_v58 = vld [vmem:[%s2371_s7 + $0xb0] sm:$0xf]  ;;  %v1032_v60 = vshrl.u32 %v1712_v35, 16  ;;  %v204_v54 = vld [vmem:[%s2371_s7 + $0x44] sm:$0x1] }
  0x61   : > { %2293 = vmatpush.bf16.msra.mxu2 %v2251_v26  ;;  %v1708_v26 = vld [vmem:[%s2371_s7 + $0xa8] sm:$0xf]  ;;  %v1018_v2 = vshrl.u32 %v1710_v58, 16  ;;  %v1021_v6 = vshll.u32 %v1710_v58, 16 }
  0x62   : > { %v983_v22 = vrot.slane %v982_v17, 4  ;;  %v1004_v30 = vshrl.u32 %v1708_v26, 16  ;;  %v1007_v32 = vshll.u32 %v1708_v26, 16 }
  0x63   : > { %v1020_v14 = vrot.slane %v1018_v2, 4  ;;  %v1023_v17 = vrot.slane %v1021_v6, 5 }
  0x64   : > { %1160 = vmatpush.bf16.msra.mxu1 %v2226_v23  ;;  %1509 = vmatpush.bf16.msra.mxu0 %v2250_v28  ;;  %v987_v23 = vrot.slane %v985_v4, 5  ;;  %v1006_v61 = vrot.slane %v1004_v30, 4  ;;  %v1034_v4 = vrot.slane %v1032_v60, 4 }
  0x65   : > { %2294 = vmatpush.bf16.msra.mxu2 %v2250_v28  ;;  %v993_v28 = vshll.u32 %v1706_v25, 16  ;;  %v1024_v26 = vor.u32 %v1023_v17, %v1020_v14 }
  0x66   : > { %v988_v13 = vsel %vm2425_vm2, %v983_v22, %v987_v23  ;;  %v1425_v22 = vshll.u32 %v204_v54, 16 }
  0x67   : > { %v1091_v43 = vunpack.c.l.b16 %v988_v13  ;;  %v995_v59 = vrot.slane %v993_v28, 5  ;;  %v1321_v28 = vunpack.c.l.b16 %v1701_v21 }
  0x68   : > { %1161 = vmatpush.bf16.msra.mxu1 %v2225_v27  ;;  %1510 = vmatpush.bf16.msra.mxu0 %v2249_v51  ;;  %v990_v27 = vshrl.u32 %v1706_v25, 16  ;;  %v1448_v25 = vpack.c.b16 %v2633_v8, %v2557_v62  ;;  %v1714_v8 = vld [vmem:[%s2371_s7 + $0xc0] sm:$0xf] }
  0x69   : > { %2295 = vmatpush.bf16.msra.mxu2 %v2249_v51  ;;  %v1098_v49 = vpack.c.b16 %v1091_v43, %v1090_v33  ;;  %v1427_v33 = vrot.slane %v1425_v22, 5  ;;  %v1025_v43 = vrot.slane %v1024_v26, 4  ;;  %v1325_v62 = vpack.c.b16 %v1321_v28, %v289_v57 }
  0x6a   : > { %v992_v44 = vrot.slane %v990_v27, 4  ;;  %v1041_v27 = vshll.u32 %v1713_v36, 16 }
  0x6b   : > { %465 = vmatmul.bf16.gmra.mxu1 %v393_v42  ;;  %942 = vmatmul.bf16.gmra.mxu0 %v1945_v46  ;;  %v1707_v42 = vld [vmem:[%s2371_s7 + $0xa4] sm:$0x1]  ;;  %v1009_v46 = vrot.slane %v1007_v32, 5 }
  0x6c   : > { %v996_v50 = vor.u32 %v995_v59, %v992_v44  ;;  %v1043_v59 = vrot.slane %v1041_v27, 5 }
  0x6d   : > { %1386 = vmatmul.bf16.vlgmr.msrb.gmra.mxu3 %v1322_v34  ;;  %v999_v34 = vshll.u32 %v1707_v42, 16  ;;  %v1010_v51 = vor.u32 %v1009_v46, %v1006_v61  ;;  %v1716_v61 = vld [vmem:[%s2371_s7 + $0xc8] sm:$0xf] }
  0x6e   : > { %1274 = vmatmul.bf16.vlgmr.msrb.gmra.mxu2 %v1210_v48  ;;  %v1709_v48 = vld [vmem:[%s2371_s7 + $0xac] sm:$0x1]  ;;  %v997_v55 = vrot.slane %v996_v50, 4  ;;  %v1063_v40 = vshll.u32 %v1716_v61, 16 }
  0x6f   : > { %v1013_v11 = vshll.u32 %v1709_v48, 16  ;;  %v1001_v52 = vrot.slane %v999_v34, 5  ;;  %v1011_v53 = vrot.slane %v1010_v51, 4  ;;  %v1046_v48 = vshrl.u32 %v1714_v8, 16 }
  0x70   : > { %v1049_v34 = vshll.u32 %v1714_v8, 16 }
  0x71   : > { %v1015_v63 = vrot.slane %v1013_v11, 5  ;;  %v1002_v5 = vsel %vm2425_vm2, %v997_v55, %v1001_v52  ;;  %v1048_v11 = vrot.slane %v1046_v48, 4  ;;  %v1065_v55 = vrot.slane %v1063_v40, 5 }
  0x72   : > { %v1092_v7 = vunpack.c.l.b16 %v1002_v5 }
  0x73   : > { %v1016_v47 = vsel %vm2425_vm2, %v1011_v53, %v1015_v63  ;;  %v1715_v53 = vld [vmem:[%s2371_s7 + $0xc4] sm:$0x1]  ;;  %v1717_v63 = vld [vmem:[%s2371_s7 + $0xcc] sm:$0x1] }
  0x74   : > { %v1093_v9 = vunpack.c.l.b16 %v1016_v47  ;;  %v1055_v2 = vshll.u32 %v1715_v53, 16  ;;  %v1069_v5 = vshll.u32 %v1717_v63, 16 }
  0x76   : > { %v1057_v60 = vrot.slane %v1055_v2, 5 }
  0x7b   : > { %470 = vmatmul.bf16.gmra.mxu1 %v394_v29  ;;  %947 = vmatmul.bf16.gmra.mxu0 %v1949_v18  ;;  %v1037_v29 = vrot.slane %v1035_v12, 5  ;;  %v1209_v18 = vunpack.c.l.b16 %v203_v1  ;;  %v1449_v1 = vpack.c.b16 %v2686_v15, %v2635_v10 }
  0x7d   : > { %1391 = vmatmul.bf16.gmra.mxu3 %v1323_v24  ;;  %v1099_v24 = vpack.c.b16 %v1093_v9, %v1092_v7  ;;  %v1038_v13 = vor.u32 %v1037_v29, %v1034_v4  ;;  %v1213_v30 = vpack.c.b16 %v1209_v18, %v390_v0 }
  0x7e   : > { %1279 = vmatmul.bf16.gmra.mxu2 %v1211_v20  ;;  %v1711_v20 = vld [vmem:[%s2371_s7 + $0xb4] sm:$0x1]  ;;  %s2176_s7 = sshll.u32 %s2868_s13, 5 }
  0x7f   : > { %v1027_v37 = vshll.u32 %v1711_v20, 16  ;;  %v1039_v44 = vrot.slane %v1038_v13, 4  ;;  %s2834_s20 = scalar_lea.vmem %s2861_s2, %s2176_s7 }
  0x81   : > { %v1029_v42 = vrot.slane %v1027_v37, 5  ;;  %v1044_v0 = vsel %vm2425_vm2, %v1039_v44, %v1043_v59 }
  0x82   : > { %v1095_v51 = vunpack.c.l.b16 %v1044_v0 }
  0x83   : > { %v1030_v38 = vsel %vm2425_vm2, %v1025_v43, %v1029_v42 }
  0x84   : > { %v1094_v50 = vunpack.c.l.b16 %v1030_v38 }
  0x86   : > { %v1100_v58 = vpack.c.b16 %v1095_v51, %v1094_v50 }
  0x8b   : > { %1162 = vmatmul.bf16.vlgmr.msra.gmra.mxu1 %v1098_v49  ;;  %1511 = vmatmul.bf16.vlgmr.msra.gmra.mxu0 %v1447_v19  ;;  %v1418_v19 = vrot.slane %v1416_v31, 4  ;;  %v1060_v49 = vshrl.u32 %v1716_v61, 16 }
  0x8d   : > { %1396 = vmatmul.bf16.gmra.mxu3 %v1324_v41  ;;  %v1422_v23 = vor.u32 %v1421_v39, %v1418_v19  ;;  %v1062_v52 = vrot.slane %v1060_v49, 4  ;;  %v1071_v19 = vrot.slane %v1069_v5, 5 }
  0x8e   : > { %1284 = vmatmul.bf16.gmra.mxu2 %v1212_v3  ;;  %v1051_v3 = vrot.slane %v1049_v34, 5 }
  0x8f   : > { %v1423_v32 = vrot.slane %v1422_v23, 4  ;;  %v1066_v6 = vor.u32 %v1065_v55, %v1062_v52 }
  0x90   : > { %v1052_v56 = vor.u32 %v1051_v3, %v1048_v11 }
  0x91   : > { %v1428_v46 = vsel %vm2425_vm2, %v1423_v32, %v1427_v33  ;;  %v1067_v12 = vrot.slane %v1066_v6, 4 }
  0x92   : > { %v1446_v57 = vunpack.c.l.b16 %v1428_v46  ;;  %v1053_v47 = vrot.slane %v1052_v56, 4 }
  0x93   : > { %v1072_v10 = vsel %vm2425_vm2, %v1067_v12, %v1071_v19 }
  0x94   : > { %v1450_v41 = vpack.c.b16 %v1446_v57, %v2688_v16  ;;  %v1058_v7 = vsel %vm2425_vm2, %v1053_v47, %v1057_v60  ;;  %v1097_v14 = vunpack.c.l.b16 %v1072_v10 }
  0x95   : > { %v1096_v9 = vunpack.c.l.b16 %v1058_v7 }
  0x97   : > { %v1101_v17 = vpack.c.b16 %v1097_v14, %v1096_v9 }
  0x9b   : > { %1167 = vmatmul.bf16.gmra.mxu1 %v1099_v24  ;;  %1516 = vmatmul.bf16.gmra.mxu0 %v1448_v25 }
  0x9d   : > { %1401 = vmatmul.bf16.gmra.mxu3 %v1325_v62 }
  0x9e   : > { %1289 = vmatmul.bf16.gmra.mxu2 %v1213_v30 }
  0xa8   : > { %v365_v35 = vpop.f32.mrf.mxu1  ;;  %v355_v31 = vpop.f32.mrf.mxu0 }
  0xab   : > { %1172 = vmatmul.bf16.gmra.mxu1 %v1100_v58  ;;  %1521 = vmatmul.bf16.gmra.mxu0 %v1449_v1 }
  0xae   : > { %1526 = vmatmul.bf16.vlgmr.msra.gmra.mxu2 %v1450_v41 }
  0xb0   : > { %v367_v54 = vpop.f32.mrf.mxu1  ;;  %v357_v16 = vpop.f32.mrf.mxu0 }
  0xb1   : > { %v681_v39 = vpop.f32.mrf.mxu2  ;;  %v807_v15 = vpop.f32.mrf.mxu3 }
  0xb8   : > { %v370_v29 = vpop.f32.mrf.mxu1  ;;  %v360_v18 = vpop.f32.mrf.mxu0 }
  0xb9   : > { %v683_v4 = vpop.f32.mrf.mxu2  ;;  %v2799_v20 = vpop.f32.mrf.mxu3 }
  0xbb   : > { %1177 = vmatmul.bf16.gmra.mxu1 %v1101_v17 }
  0xc0   : > { %v372_v21 = vpop.f32.mrf.mxu1  ;;  %v362_v22 = vpop.f32.mrf.mxu0 }
  0xc1   : > { %v686_v36 = vpop.f32.mrf.mxu2  ;;  %v812_v23 = vpop.f32.mrf.mxu3 }
  0xc8   : > { %v456_v25 = vpop.f32.mrf.mxu1  ;;  %v933_v26 = vpop.f32.mrf.mxu0 }
  0xc9   : > { %v688_v24 = vpop.f32.mrf.mxu2  ;;  %v457_v37 = vadd.f32 %v456_v25, %v355_v31  ;;  %v2801_v13 = vpop.f32.mrf.mxu3 }
  0xcb   : > { %v701_v45 = vadd.f32 %v681_v39, %v457_v37 }
  0xcd   : > { %v827_v27 = vadd.f32 %v807_v15, %v701_v45 }
  0xcf   : > { %v953_v28 = vadd.f32 %v933_v26, %v827_v27 }
  0xd0   : > { %v458_v32 = vpop.f32.mrf.mxu1  ;;  %v935_v33 = vpop.f32.mrf.mxu0 }
  0xd1   : > { %v691_v30 = vpop.f32.mrf.mxu2  ;;  %v459_v43 = vadd.f32 %v458_v32, %v357_v16  ;;  %v817_v44 = vpop.f32.mrf.mxu3 }
  0xd3   : > { %v702_v42 = vadd.f32 %v683_v4, %v459_v43 }
  0xd8   : > { %v461_v62 = vpop.f32.mrf.mxu1  ;;  %v938_v8 = vpop.f32.mrf.mxu0 }
  0xd9   : > { %v693_v59 = vpop.f32.mrf.mxu2  ;;  %v462_v61 = vadd.f32 %v461_v62, %v360_v18  ;;  %v2803_v34 = vpop.f32.mrf.mxu3  ;;  %v828_v18 = vadd.f32 %v2799_v20, %v702_v42 }
  0xdb   : > { %v703_v46 = vadd.f32 %v686_v36, %v462_v61 }
  0xdd   : > { %v829_v38 = vadd.f32 %v812_v23, %v703_v46 }
  0xdf   : > { %v955_v0 = vadd.f32 %v938_v8, %v829_v38 }
  0xe0   : > { %v463_v49 = vpop.f32.mrf.mxu1  ;;  %v2805_v40 = vpop.f32.mrf.mxu0 }
  0xe1   : > { %v696_v48 = vpop.f32.mrf.mxu2  ;;  %v464_v57 = vadd.f32 %v463_v49, %v362_v22  ;;  %v2807_v55 = vpop.f32.mrf.mxu3 }
  0xe3   : > { %v704_v50 = vadd.f32 %v688_v24, %v464_v57 }
  0xe8   : > { %v466_v11 = vpop.f32.mrf.mxu1  ;;  %v943_v3 = vpop.f32.mrf.mxu0 }
  0xe9   : > { %v698_v51 = vpop.f32.mrf.mxu2  ;;  %v467_v52 = vadd.f32 %v466_v11, %v365_v35  ;;  %v2815_v6 = vpop.f32.mrf.mxu3 }
  0xeb   : > { %v705_v53 = vadd.f32 %v691_v30, %v467_v52 }
  0xed   : > { %v831_v63 = vadd.f32 %v817_v44, %v705_v53 }
  0xef   : > { %v2809_v41 = vadd.f32 %v943_v3, %v831_v63 }
  0xf0   : > { %v468_v1 = vpop.f32.mrf.mxu1  ;;  %v2811_v31 = vpop.f32.mrf.mxu0 }
  0xf1   : > { %v1275_v58 = vpop.f32.mrf.mxu2  ;;  %v469_v56 = vadd.f32 %v468_v1, %v367_v54  ;;  %v1387_v19 = vpop.f32.mrf.mxu3 }
  0xf3   : > { %v2813_v2 = vadd.f32 %v693_v59, %v469_v56  ;;  %v830_v59 = vadd.f32 %v2801_v13, %v704_v50 }
  0xf8   : > { %v471_v47 = vpop.f32.mrf.mxu1  ;;  %v2817_v60 = vpop.f32.mrf.mxu0 }
  0xf9   : > { %v1277_v5 = vpop.f32.mrf.mxu2  ;;  %v472_v35 = vadd.f32 %v471_v47, %v370_v29  ;;  %v1389_v15 = vpop.f32.mrf.mxu3  ;;  %v954_v29 = vadd.f32 %v935_v33, %v828_v18 }
  0xfb   : > { %v2819_v12 = vadd.f32 %v696_v48, %v472_v35  ;;  %v956_v48 = vadd.f32 %v2805_v40, %v830_v59 }
 0x100   : > { %v473_v16 = vpop.f32.mrf.mxu1  ;;  %v2821_v7 = vpop.f32.mrf.mxu0 }
 0x101   : > { %v1280_v39 = vpop.f32.mrf.mxu2  ;;  %v474_v10 = vadd.f32 %v473_v16, %v372_v21  ;;  %v1392_v21 = vpop.f32.mrf.mxu3 }
 0x103   : > { %v2823_v54 = vadd.f32 %v698_v51, %v474_v10 }
 0x108   : > { %v1163_v9 = vpop.f32.mrf.mxu1  ;;  %v1512_v14 = vpop.f32.mrf.mxu0 }
 0x109   : > { %v1183_v17 = vadd.f32 %v1163_v9, %v953_v28  ;;  %v1282_v4 = vpop.f32.mrf.mxu2  ;;  %v1394_v61 = vpop.f32.mrf.mxu3 }
 0x10b   : > { %v1295_v36 = vadd.f32 %v1275_v58, %v1183_v17 }
 0x10d   : > { %v1407_v22 = vadd.f32 %v1387_v19, %v1295_v36  ;;  %v832_v19 = vadd.f32 %v2803_v34, %v2813_v2 }
 0x10f   : > { %v1532_v37 = vadd.f32 %v1512_v14, %v1407_v22 }
 0x110   : > { %v1165_v23 = vpop.f32.mrf.mxu1  ;;  %v1514_v24 = vpop.f32.mrf.mxu0 }
 0x111   : > { %v1184_v25 = vadd.f32 %v1165_v23, %v954_v29  ;;  %v1285_v45 = vpop.f32.mrf.mxu2  ;;  %v1569_v30 = vmul.f32 %v1532_v37, %v1532_v37  ;;  %v1397_v58 = vpop.f32.mrf.mxu3 }
 0x113   : > { %v1296_v26 = vadd.f32 %v1277_v5, %v1184_v25 }
 0x115   : > { %v1408_v27 = vadd.f32 %v1389_v15, %v1296_v26  ;;  %v958_v15 = vadd.f32 %v2811_v31, %v832_v19 }
 0x117   : > { %v1533_v28 = vadd.f32 %v1514_v24, %v1408_v27 }
 0x118   : > { %v1168_v20 = vpop.f32.mrf.mxu1  ;;  %v1517_v32 = vpop.f32.mrf.mxu0 }
 0x119   : > { %v2260_v33 = vpack.c.bf16 %v1533_v28, %v1532_v37  ;;  %v1556_v43 = vadd.f32 %v1533_v28, %v1532_v37  ;;  %v1570_v42 = vmul.f32 %v1533_v28, %v1533_v28  ;;  %v1185_v44 = vadd.f32 %v1168_v20, %v955_v0  ;;  %v1287_v38 = vpop.f32.mrf.mxu2  ;;  %v1399_v14 = vpop.f32.mrf.mxu3 }
 0x11a   : > { %v834_v28 = vadd.f32 %v2815_v6, %v2823_v54 }
 0x11b   : > { %2261 = vst [vmem:[%s2834_s20] sm:$0xff] %v2260_v33   ;;  %v1577_v62 = vadd.f32 %v1570_v42, %v1569_v30  ;;  %v1297_v8 = vadd.f32 %v1280_v39, %v1185_v44 }
 0x11d   : > { %v1409_v46 = vadd.f32 %v1392_v21, %v1297_v8 }
 0x11f   : > { %v1534_v49 = vadd.f32 %v1517_v32, %v1409_v46  ;;  %v960_v32 = vadd.f32 %v2821_v7, %v834_v28 }
 0x120   : > { %v1170_v57 = vpop.f32.mrf.mxu1  ;;  %v1519_v51 = vpop.f32.mrf.mxu0 }
 0x121   : > { %v1557_v11 = vadd.f32 %v1556_v43, %v1534_v49  ;;  %v1571_v3 = vmul.f32 %v1534_v49, %v1534_v49  ;;  %v1186_v52 = vadd.f32 %v1170_v57, %v956_v48  ;;  %v1290_v50 = vpop.f32.mrf.mxu2  ;;  %v1402_v27 = vpop.f32.mrf.mxu3 }
 0x123   : > { %v1578_v53 = vadd.f32 %v1577_v62, %v1571_v3  ;;  %v1298_v63 = vadd.f32 %v1282_v4, %v1186_v52 }
 0x125   : > { %v1410_v0 = vadd.f32 %v1394_v61, %v1298_v63 }
 0x127   : > { %v1535_v13 = vadd.f32 %v1519_v51, %v1410_v0 }
 0x128   : > { %v1173_v1 = vpop.f32.mrf.mxu1  ;;  %v1522_v40 = vpop.f32.mrf.mxu0 }
 0x129   : > { %v2265_v56 = vpack.c.bf16 %v1535_v13, %v1534_v49  ;;  %v1558_v5 = vadd.f32 %v1557_v11, %v1535_v13  ;;  %v1572_v47 = vmul.f32 %v1535_v13, %v1535_v13  ;;  %v1187_v35 = vadd.f32 %v1173_v1, %v2809_v41  ;;  %v1292_v29 = vpop.f32.mrf.mxu2  ;;  %v1404_v8 = vpop.f32.mrf.mxu3 }
 0x12a   : > { %v833_v41 = vadd.f32 %v2807_v55, %v2819_v12  ;;  %v1590_v11 = vlaneseq }
 0x12b   : > { %2277 = vst [vmem:[%s2834_s20 + $0x8] sm:$0xff] %v2265_v56   ;;  %v1579_v39 = vadd.f32 %v1578_v53, %v1572_v47  ;;  %v1299_v16 = vadd.f32 %v1285_v45, %v1187_v35 }
 0x12c   : > { %v959_v24 = vadd.f32 %v2817_v60, %v833_v41  ;;  %v1591_v0 = vshrl.u32 %v1590_v11, 7 }
 0x12d   : > { %v1411_v10 = vadd.f32 %v1397_v58, %v1299_v16 }
 0x12e   : > { %vm1593_vm3 = vcmp.eq.s32.totalorder %v1591_v0, 1  ;;  %vm1592_vm4 = vcmp.eq.s32.totalorder %v1591_v0, 0 }
 0x12f   : > { %v1536_v9 = vadd.f32 %v1522_v40, %v1411_v10 }
 0x130   : > { %v1175_v17 = vpop.f32.mrf.mxu1  ;;  %v1524_v34 = vpop.f32.mrf.mxu0 }
 0x131   : > { %v1559_v4 = vadd.f32 %v1558_v5, %v1536_v9  ;;  %v1573_v18 = vmul.f32 %v1536_v9, %v1536_v9  ;;  %v1188_v36 = vadd.f32 %v1175_v17, %v958_v15  ;;  %v1527_v55 = vpop.f32.mrf.mxu2 }
 0x133   : > { %v1580_v22 = vadd.f32 %v1579_v39, %v1573_v18  ;;  %v1300_v23 = vadd.f32 %v1287_v38, %v1188_v36 }
 0x135   : > { %v1412_v2 = vadd.f32 %v1399_v14, %v1300_v23 }
 0x137   : > { %v1537_v25 = vadd.f32 %v1524_v34, %v1412_v2 }
 0x138   : > { %v1178_v21 = vpop.f32.mrf.mxu1 }
 0x139   : > { %v2270_v31 = vpack.c.bf16 %v1537_v25, %v1536_v9  ;;  %v1560_v26 = vadd.f32 %v1559_v4, %v1537_v25  ;;  %v1574_v37 = vmul.f32 %v1537_v25, %v1537_v25  ;;  %v1189_v45 = vadd.f32 %v1178_v21, %v959_v24  ;;  %v1529_v46 = vpop.f32.mrf.mxu2 }
 0x13b   : > { %2278 = vst [vmem:[%s2834_s20 + $0x10] sm:$0xff] %v2270_v31   ;;  %v1581_v30 = vadd.f32 %v1580_v22, %v1574_v37  ;;  %v1301_v20 = vadd.f32 %v1290_v50, %v1189_v45 }
 0x13d   : > { %v1413_v12 = vadd.f32 %v1402_v27, %v1301_v20 }
 0x13f   : > { %v1538_v33 = vadd.f32 %v1527_v55, %v1413_v12 }
 0x140   : > { %v1180_v60 = vpop.f32.mrf.mxu1 }
 0x141   : > { %v1561_v43 = vadd.f32 %v1560_v26, %v1538_v33  ;;  %v1575_v42 = vmul.f32 %v1538_v33, %v1538_v33  ;;  %v1190_v44 = vadd.f32 %v1180_v60, %v960_v32 }
 0x143   : > { %v1582_v59 = vadd.f32 %v1581_v30, %v1575_v42  ;;  %v1302_v62 = vadd.f32 %v1292_v29, %v1190_v44 }
 0x145   : > { %v1414_v61 = vadd.f32 %v1404_v8, %v1302_v62 }
 0x147   : > { %v1539_v38 = vadd.f32 %v1529_v46, %v1414_v61 }
 0x149   : > { %v2275_v6 = vpack.c.bf16 %v1539_v38, %v1538_v33  ;;  %v1562_v54 = vadd.f32 %v1561_v43, %v1539_v38  ;;  %v1576_v48 = vmul.f32 %v1539_v38, %v1539_v38 }
 0x14b   : > { %2279 = vst [vmem:[%s2834_s20 + $0x18] sm:$0xff] %v2275_v6   ;;  %v1563_v49 = vrot.slane %v1562_v54, 4  ;;  %v1583_v57 = vadd.f32 %v1582_v59, %v1576_v48 }
 0x14d   : > { %v1564_v51 = vadd.f32 %v1563_v49, %v1562_v54  ;;  %v1584_v7 = vrot.slane %v1583_v57, 4 }
 0x14f   : > { %v1565_v3 = vrot.slane %v1564_v51, 2  ;;  %v1585_v52 = vadd.f32 %v1584_v7, %v1583_v57 }
 0x151   : > { %v1566_v53 = vadd.f32 %v1565_v3, %v1564_v51  ;;  %v1586_v63 = vrot.slane %v1585_v52, 2 }
 0x153   : > { %v1587_v58 = vadd.f32 %v1586_v63, %v1585_v52  ;;  %v1567_v13 = vrot.slane %v1566_v53, 1 }
 0x155   : > { %v1588_v50 = vrot.slane %v1587_v58, 1  ;;  %v1568_v56 = vadd.f32 %v1567_v13, %v1566_v53 }
 0x157   : > { %v1589_v1 = vadd.f32 %v1588_v50, %v1587_v58 }
 0x159   : > { %v1594_v5 = vsel %vm1593_vm3, %v1589_v1, 0.0 }
 0x15a   : > { %v1595_v47 = vsel %vm1592_vm4, %v1568_v56, %v1594_v5 }
 0x15b   : > { %1596 = vst [vmem:[%s186_s24] sm:$0xff] %v1595_v47 }
 0x15c PF: > { %s14_s12 = sadd.s32 1, %s2311_s12  }
 0x15d   : > { %p11_p5 = scmp.ge.s32.totalorder %s14_s12, 4  }
 0x15f   :  { %13 = sbr.rel (!%p11_p5) target bundleno = 1 (0x1), region = 81 }

// kernel: bottleneck_forward.11
= control target key start
LH: loop header
LB: loop body
LE: loop exit
PB: predicated region body
PF: predicated region fallthrough
CT: control target
= control target key end

     0   :  { %11 = vsyncpa [#allocation3], 0  ;;  %s824_s0 = inlined_call_operand.vmem [shape: bf16[128,128], index: 0, kind: input, shape index: {}]   ;;  %s825_s1 = inlined_call_operand.vmem [shape: f32[1,128], index: 1, kind: input, shape index: {}]   ;;  %s826_s2 = inlined_call_operand.vmem [shape: f32[1,128], index: 2, kind: input, shape index: {}]   ;;  %s827_s3 = inlined_call_operand.vmem [shape: bf16[128,128], index: 3, kind: input, shape index: {}]   ;;  %s828_s4 = inlined_call_operand.vmem [shape: f32[1,128], index: 4, kind: input, shape index: {}]   ;;  %s829_s5 = inlined_call_operand.vmem [shape: f32[1,128], index: 5, kind: input, shape index: {}]   ;;  %s830_s6 = inlined_call_operand.hbm [shape: f32[128,128], index: 6, kind: output, shape index: {}]  }
   0x1   :  { %13 = vsyncpa [#allocation3 + $0x1], 0  ;;  %s668_s21 = smov 0   ;;  %s670_s22 = smov 0  }
   0x2   :  { %s672_s23 = smov 0   ;;  %s674_s24 = smov 0  }
   0x3 LB: > { %s689_s25 = sadd.s32 4294967295, %s629_s24   ;;  %s469_s26 = sadd.s32 4294967294, %s629_s24   ;;  %s629_s24 = sphi %s674_s24, %s836_s24   ;;  %s625_s23 = sphi %s672_s23, %s835_s23   ;;  %s621_s22 = sphi %s670_s22, %s834_s22   ;;  %s617_s21 = sphi %s668_s21, %s833_s21  }
   0x4   : > { %s693_s27 = sadd.s32 1, %s629_s24   ;;  %s162_s28 = sadd.s32 1, %s625_s23 }
   0x5   : > { %s159_s29 = ssub.s32 %s629_s24, %s693_s27  ;;  %p172_p0 = scmp.ne.s32.totalorder %s625_s23, %s621_s22 }
   0x6   : > { %p160_p1 = scmp.eq.s32.totalorder %s159_s29, 0  ;;  %p173_p2 = scmp.eq.s32.totalorder %s689_s25, 1 }
   0x7   : > { %p178_p3 = scmp.ne.s32.totalorder %s621_s22, %s617_s21  ;;  %p179_p4 = scmp.eq.s32.totalorder %s469_s26, 1 }
   0x8   : > { %s704_s30 = scalar_select %p160_p1, %s625_s23, %s162_s28  }
   0x9   : > { %p706_p5 = por %p173_p2, %p172_p0  ;;  %p710_p6 = por %p179_p4, %p178_p3 }
   0xa   : > { %p472_p7 = scmp.ge.s32.totalorder %s629_s24, 1  ;;  %p227_p8 = scmp.lt.s32.totalorder %s629_s24, 3 }
   0xc   : > { %p228_p9 = pnand %p472_p7, %p227_p8 }
   0xd   : > { %s474_s9 = sshll.u32 (!%p228_p9), %s689_s25, 3  ;;  %s259_s29 = sand.u32 (!%p228_p9), 1, %s621_s22  }
   0xe   : > { %231 = sbr.rel (%p228_p9) target bundleno = 51 (0x33), region = 44  ;;  %p263_p10 = scmp.lt.s32.totalorder (!%p228_p9), %s474_s9, 15 }
   0xf   : > { %s473_s11 = sshll.u32 (!%p228_p9), %s259_s29, 6  ;;  %s380_s18 = scalar_lea.sflag (!%p228_p9), [#allocation3], %s259_s29 }
  0x10   : > { %s776_s12 = scalar_lea.vmem (!%p228_p9), [#allocation2], %s473_s11 }
  0x13   : > { %s838_s9 = smov (!%p263_p10, %s474_s9), 15  ;;  %v730_v0 = vld [vmem:[%s825_s1] ss:$0 sm:$0xff] }
  0x14   : > { %s475_s10 = sshll.u32 %s838_s9, 2  ;;  %v735_v1 = vld [vmem:[%s828_s4] ss:$0 sm:$0xff]  ;;  %s587_s9 = scalar_lea.hbm %s830_s6, 128 }
  0x15   : > { %s720_s13 = scalar_lea.vmem %s824_s0, %s475_s10  ;;  %s725_s16 = scalar_lea.vmem %s827_s3, %s475_s10  ;;  %v743_v6 = vld [vmem:[%s826_s2] ss:$0 sm:$0xff] }
  0x16   : > { %v485_v2 = vld [vmem:[%s720_s13] sm:$0xff]   ;;  %v516_v4 = vld [vmem:[%s720_s13 + $0x8] sm:$0xff]   ;;  %v517_v15 = vld [vmem:[%s720_s13 + $0x10] sm:$0xff]  }
  0x17   : > { %v501_v3 = vld [vmem:[%s725_s16] sm:$0xff]   ;;  %v486_v5 = vunpack.c.l.bf16 %v485_v2  ;;  %v487_v8 = vunpack.c.h.bf16 %v485_v2  ;;  %v519_v10 = vld [vmem:[%s725_s16 + $0x8] sm:$0xff]   ;;  %v490_v11 = vunpack.c.l.bf16 %v516_v4  ;;  %v491_v13 = vunpack.c.h.bf16 %v516_v4  ;;  %v520_v16 = vld [vmem:[%s725_s16 + $0x10] sm:$0xff]  }
  0x18   : > { %v502_v7 = vunpack.c.l.bf16 %v501_v3  ;;  %v503_v9 = vunpack.c.h.bf16 %v501_v3  ;;  %v506_v12 = vunpack.c.l.bf16 %v519_v10  ;;  %v507_v14 = vunpack.c.h.bf16 %v519_v10  ;;  %v566_v26 = vld [vmem:[%s829_s5] ss:$0 sm:$0xff]  ;;  %v518_v34 = vld [vmem:[%s720_s13 + $0x18] sm:$0xff]   ;;  %s483_s13 = sshll.u32 %s689_s25, 6 }
  0x19   : > { %v295_v17 = vmul.f32 %v730_v0, %v486_v5  ;;  %v296_v19 = vmul.f32 %v730_v0, %v487_v8  ;;  %v297_v21 = vmul.f32 %v730_v0, %v490_v11  ;;  %v298_v23 = vmul.f32 %v730_v0, %v491_v13  ;;  %v521_v39 = vld [vmem:[%s725_s16 + $0x18] sm:$0xff]   ;;  %s391_s25 = scalar_lea.hbm %s830_s6, %s483_s13  ;;  %s392_s16 = sshll.u32 %s776_s12, 4  ;;  %s393_s16 = int_to_ptr.vmem [resolvable:$true] %s392_s16 }
  0x1a   : > { %v335_v18 = vmul.f32 %v735_v1, %v502_v7  ;;  %v336_v20 = vmul.f32 %v735_v1, %v503_v9  ;;  %v337_v22 = vmul.f32 %v735_v1, %v506_v12  ;;  %v338_v24 = vmul.f32 %v735_v1, %v507_v14  ;;  %s394_s17 = sshll.u32 %s391_s25, 4  ;;  %s395_s17 = int_to_ptr.hbm [resolvable:$true] %s394_s17 }
  0x1b   : > { %v307_v25 = vadd.f32 %v743_v6, %v295_v17  ;;  %v308_v27 = vadd.f32 %v743_v6, %v296_v19  ;;  %v494_v28 = vunpack.c.l.bf16 %v517_v15  ;;  %v510_v29 = vunpack.c.l.bf16 %v520_v16  ;;  %s581_s19 = sshra.s32 %s395_s17, 4  ;;  %s582_s19 = int_to_ptr.hbm [resolvable:$true] %s581_s19 }
  0x1c   : > { %v309_v30 = vadd.f32 %v743_v6, %v297_v21  ;;  %v310_v31 = vadd.f32 %v743_v6, %v298_v23  ;;  %v495_v32 = vunpack.c.h.bf16 %v517_v15  ;;  %v511_v33 = vunpack.c.h.bf16 %v520_v16  ;;  %s583_s20 = scalar_lea.hbm %s582_s19, 64  ;;  %p588_p0 = scmp.lt.s32.totalorder %s582_s19, %s830_s6 }
  0x1d   : > { %v343_v35 = vadd.f32 %v335_v18, %v307_v25  ;;  %v344_v36 = vadd.f32 %v336_v20, %v308_v27  ;;  %v299_v37 = vmul.f32 %v730_v0, %v494_v28  ;;  %v339_v38 = vmul.f32 %v735_v1, %v510_v29  ;;  %p584_p11 = scmp.ne.s32.totalorder %s582_s19, %s583_s20  ;;  %p589_p1 = scmp.lt.s32.totalorder %s587_s9, %s583_s20 }
  0x1e   : > { %v345_v40 = vadd.f32 %v337_v22, %v309_v30  ;;  %v346_v41 = vadd.f32 %v338_v24, %v310_v31  ;;  %v300_v42 = vmul.f32 %v730_v0, %v495_v32  ;;  %v340_v43 = vmul.f32 %v735_v1, %v511_v33 }
  0x1f   : > { %v355_v44 = vadd.f32 %v566_v26, %v343_v35  ;;  %v356_v45 = vadd.f32 %v566_v26, %v344_v36  ;;  %v311_v46 = vadd.f32 %v743_v6, %v299_v37  ;;  %v498_v47 = vunpack.c.l.bf16 %v518_v34  ;;  %p585_p12 = pnand %p584_p11, %p706_p5  ;;  %p590_p2 = por %p589_p1, %p588_p0 }
  0x20   : > { %v357_v48 = vadd.f32 %v566_v26, %v345_v40  ;;  %v358_v49 = vadd.f32 %v566_v26, %v346_v41  ;;  %v312_v50 = vadd.f32 %v743_v6, %v300_v42  ;;  %v514_v51 = vunpack.c.l.bf16 %v521_v39 }
  0x21   : > { %v363_v52 = vmax.f32 %v355_v44, 0.0  ;;  %v364_v53 = vmax.f32 %v356_v45, 0.0  ;;  %v347_v54 = vadd.f32 %v339_v38, %v311_v46  ;;  %v301_v55 = vmul.f32 %v730_v0, %v498_v47  ;;  %p586_p13 = pneg %p585_p12 }
  0x22   : > { %v365_v56 = vmax.f32 %v357_v48, 0.0  ;;  %v366_v57 = vmax.f32 %v358_v49, 0.0  ;;  %v348_v58 = vadd.f32 %v340_v43, %v312_v50  ;;  %v341_v59 = vmul.f32 %v735_v1, %v514_v51 }
  0x23   : > { %371 = vst [vmem:[%s776_s12] sm:$0xff] %v363_v52  ;;  %v359_v60 = vadd.f32 %v566_v26, %v347_v54  ;;  %v313_v61 = vadd.f32 %v743_v6, %v301_v55  ;;  %v499_v62 = vunpack.c.h.bf16 %v518_v34  ;;  %v515_v63 = vunpack.c.h.bf16 %v521_v39  ;;  %p591_p3 = pnand %p590_p2, %p586_p13 }
  0x24   : > { %372 = vst [vmem:[%s776_s12 + $0x8] sm:$0xff] %v364_v53  ;;  %v360_v2 = vadd.f32 %v566_v26, %v348_v58 }
  0x25   : > { %373 = vst [vmem:[%s776_s12 + $0x10] sm:$0xff] %v365_v56  ;;  %v367_v3 = vmax.f32 %v359_v60, 0.0  ;;  %v349_v4 = vadd.f32 %v341_v59, %v313_v61  ;;  %v302_v5 = vmul.f32 %v730_v0, %v499_v62  ;;  %v342_v7 = vmul.f32 %v735_v1, %v515_v63 }
  0x26   : > { %374 = vst [vmem:[%s776_s12 + $0x18] sm:$0xff] %v366_v57  ;;  %v368_v8 = vmax.f32 %v360_v2, 0.0 }
  0x27   : > { %375 = vst [vmem:[%s776_s12 + $0x20] sm:$0xff] %v367_v3  ;;  %v361_v9 = vadd.f32 %v566_v26, %v349_v4  ;;  %v314_v10 = vadd.f32 %v743_v6, %v302_v5 }
  0x28   : > { %376 = vst [vmem:[%s776_s12 + $0x28] sm:$0xff] %v368_v8 }
  0x29   : > { %v369_v11 = vmax.f32 %v361_v9, 0.0  ;;  %v350_v12 = vadd.f32 %v342_v7, %v314_v10 }
  0x2b   : > { %377 = vst [vmem:[%s776_s12 + $0x30] sm:$0xff] %v369_v11  ;;  %v362_v0 = vadd.f32 %v566_v26, %v350_v12 }
  0x2d   : > { %v370_v1 = vmax.f32 %v362_v0, 0.0 }
  0x2f   : > { %378 = vst [vmem:[%s776_s12 + $0x38] sm:$0xff] %v370_v1 }
  0x30   : > { %594 = shalt.err (!%p591_p3)
}
  0x31   : > { %s631_s29 = smov 128   ;;  %s632_s12 = smov 8  }
  0x32   : > { %522 = dma.vmem_to_hbm [thread:$0]  (%p706_p5), %s393_s16, 1024, %s395_s17, %s380_s18, %s631_s29, %s631_s29, %s632_s12  }
  0x33 PF: > { %p528_p4 = scmp.ge.s32.totalorder %s629_s24, 2  ;;  %s409_s13 = sand.u32 1, %s617_s21  }
  0x34   : > { %s410_s14 = scalar_lea.sflag [#allocation3], %s409_s13 }
  0x35   : > { %p525_p7 = pnand %p528_p4, %p710_p6 }
  0x37   : > { %p526_p8 = pneg %p525_p7 }
  0x39   : > { %612 = dma.done.wait (%p526_p8), %s410_s14, 1024  }
  0x3a   : > { %614 = vsyncadd (%p526_p8), %s410_s14, 4294966272  ;;  %p16_p9 = scmp.ge.s32.totalorder %s693_s27, 4   ;;  %s833_s21 = smov %s621_s22 }
  0x3b   : > { %s834_s22 = smov %s625_s23  ;;  %s835_s23 = smov %s704_s30 }
  0x3c   : > { %s836_s24 = smov %s693_s27  ;;  %18 = sbr.rel (!%p16_p9) target bundleno = 3 (0x3), region = 82 }
  0x41   :  { %416 = vsyncpa [#allocation3], 1 }
  0x42   :  { %418 = vsyncpa [#allocation3 + $0x1], 1 }

</bundles_post_ra>
